<compile_context>
chip_gen: v6e
topology: v6e:2x2x1
jax: 0.10.0
libtpu: 0.0.40
codegen_flags: <defaults>
</compile_context>

<pallas_src>
import jax
import jax.numpy as jnp
import numpy as np
from jax.experimental import pallas as pl
from jax.experimental.pallas import tpu as pltpu


def _decoder_block_kernel(x_ref, w1_ref, b1_ref, w2_ref, b2_ref, o_ref,
                          h_scr, p1_scr, p2_scr):
    # x_ref : (1, H+2, W+2, Cin)   f32, spatially pre-padded NHWC input tile
    # w1_ref: (9*Cin, Cmid)        bf16, layer-1 im2col weight (tap-major, channel-minor)
    # b1_ref: (1, Cmid)            f32
    # w2_ref: (4*Cmid, 4*Cout)     bf16, layer-2 phase weight (rows: taps, cols: phases)
    # b2_ref: (1, 4*Cout)          f32, bias tiled over the 4 phases
    # o_ref : (1, H*W, 4*Cout)     f32, phase-packed output
    # h_scr : (H+1, W+1, Cmid)     f32 VMEM scratch: fused intermediate, zero pad bottom/right
    # p1_scr: (H*W, 9*Cin)         bf16 VMEM scratch: layer-1 im2col patch
    # p2_scr: (H*W, 4*Cmid)        bf16 VMEM scratch: layer-2 phase patch
    _, Hp, Wp, Cin = x_ref.shape
    H, W = Hp - 2, Wp - 2
    Cmid = h_scr.shape[-1]

    # ---- layer 1: Conv2d(Cin, Cmid, 3, padding=1) + ReLU as one K=9*Cin MXU matmul ----
    for dy in range(3):
        for dx in range(3):
            k = dy * 3 + dx
            tap = x_ref[0, dy:dy + H, dx:dx + W, :].reshape(H * W, Cin)
            p1_scr[:, k * Cin:(k + 1) * Cin] = tap.astype(p1_scr.dtype)
    h = jnp.dot(p1_scr[...], w1_ref[...], preferred_element_type=jnp.float32)
    h = jnp.maximum(h + b1_ref[...], 0.0)                      # (H*W, Cmid) f32

    # Keep h resident in VMEM, zero-padded by one row/col at the bottom/right
    # (that is exactly the boundary the stride-2 transposed conv needs).
    h_scr[...] = jnp.zeros(h_scr.shape, h_scr.dtype)
    h_scr[0:H, 0:W, :] = h.reshape(H, W, Cmid)

    # ---- layer 2: ConvTranspose2d(Cmid, Cout, 3, s=2, p=1, op=1) + ReLU ----
    # Sub-pixel decomposition: one K=4*Cmid matmul emits all four output phases at once.
    for k, (oy, ox) in enumerate(((0, 0), (0, 1), (1, 0), (1, 1))):
        tap = h_scr[oy:oy + H, ox:ox + W, :].reshape(H * W, Cmid)
        p2_scr[:, k * Cmid:(k + 1) * Cmid] = tap.astype(p2_scr.dtype)
    y = jnp.dot(p2_scr[...], w2_ref[...], preferred_element_type=jnp.float32)
    o_ref[0] = jnp.maximum(y + b2_ref[...], 0.0)               # (H*W, 4*Cout) f32


def decoder_block_forward(x_nchw, params):
    """Fused DecoderBlock forward: (N, Cin, H, W) f32 -> (N, Cout, 2H, 2W) f32."""
    w1, b1, w2, b2 = params                      # w1: (Cmid,Cin,3,3), w2: (Cmid,Cout,3,3)
    N, Cin, H, W = x_nchw.shape
    Cmid, Cout = w1.shape[0], w2.shape[1]

    # NCHW -> NHWC and 1-px spatial pad for the 3x3 conv (input is the smallest tensor).
    x = jnp.transpose(x_nchw, (0, 2, 3, 1)).astype(jnp.float32)
    x_pad = jnp.pad(x, ((0, 0), (1, 1), (1, 1), (0, 0)))

    # Layer-1 weight in im2col layout: (Cmid, Cin, 3, 3) -> (9*Cin, Cmid), row = (kh, kw, ci).
    w1_k = jnp.transpose(w1, (2, 3, 1, 0)).reshape(9 * Cin, Cmid).astype(jnp.bfloat16)
    b1_k = b1.reshape(1, Cmid).astype(jnp.float32)

    # Layer-2 phase weight: rows = taps [h(m,n), h(m,n+1), h(m+1,n), h(m+1,n+1)] (Cmid each),
    # cols = output phases [ee, eo, oe, oo] (Cout each).  Derived from
    # y[2m+py, 2n+px, co] = sum_{2i+ky-1 = 2m+py, 2j+kx-1 = 2n+px} h[i, j] * W2[:, co, ky, kx].
    Z = jnp.zeros((Cmid, Cout), w2.dtype)
    t = lambda ky, kx: w2[:, :, ky, kx]
    w2_k = jnp.concatenate([
        jnp.concatenate([t(1, 1), t(1, 2), t(2, 1), t(2, 2)], axis=1),
        jnp.concatenate([Z,       t(1, 0), Z,       t(2, 0)], axis=1),
        jnp.concatenate([Z,       Z,       t(0, 1), t(0, 2)], axis=1),
        jnp.concatenate([Z,       Z,       Z,       t(0, 0)], axis=1),
    ], axis=0).astype(jnp.bfloat16)                              # (4*Cmid, 4*Cout)
    b2_k = jnp.tile(b2, 4).reshape(1, 4 * Cout).astype(jnp.float32)

    out = pl.pallas_call(
        _decoder_block_kernel,
        out_shape=jax.ShapeDtypeStruct((N, H * W, 4 * Cout), jnp.float32),
        grid=(N,),
        in_specs=[
            pl.BlockSpec((1, H + 2, W + 2, Cin), lambda n: (n, 0, 0, 0)),
            pl.BlockSpec((9 * Cin, Cmid), lambda n: (0, 0)),
            pl.BlockSpec((1, Cmid), lambda n: (0, 0)),
            pl.BlockSpec((4 * Cmid, 4 * Cout), lambda n: (0, 0)),
            pl.BlockSpec((1, 4 * Cout), lambda n: (0, 0)),
        ],
        out_specs=pl.BlockSpec((1, H * W, 4 * Cout), lambda n: (n, 0, 0)),
        scratch_shapes=[
            pltpu.VMEM((H + 1, W + 1, Cmid), jnp.float32),
            pltpu.VMEM((H * W, 9 * Cin), jnp.bfloat16),
            pltpu.VMEM((H * W, 4 * Cmid), jnp.bfloat16),
        ],
        compiler_params=pltpu.CompilerParams(
            dimension_semantics=("parallel",),
            vmem_limit_bytes=64 * 1024 * 1024),
    )(x_pad, w1_k, b1_k, w2_k, b2_k)

    # (N, H*W, [py, px, co]) -> interleave phases while converting back to NCHW.
    y = out.reshape(N, H, W, 2, 2, Cout)
    y = jnp.transpose(y, (0, 5, 1, 3, 2, 4)).reshape(N, Cout, 2 * H, 2 * W)
    return y


def reference_forward(x_nchw, params):
    """Pure-JAX (lax) reference with the same bf16-operand / f32-accumulation policy."""
    w1, b1, w2, b2 = params
    h = jax.lax.conv_general_dilated(
        x_nchw.astype(jnp.bfloat16), w1.astype(jnp.bfloat16), (1, 1),
        [(1, 1), (1, 1)], dimension_numbers=("NCHW", "OIHW", "NCHW"),
        preferred_element_type=jnp.float32)
    h = jax.nn.relu(h + b1[None, :, None, None])
    w2c = jnp.transpose(jnp.flip(w2, axis=(2, 3)), (1, 0, 2, 3))  # (Cout, Cmid, 3, 3)
    y = jax.lax.conv_general_dilated(
        h.astype(jnp.bfloat16), w2c.astype(jnp.bfloat16), (1, 1),
        [(1, 2), (1, 2)], lhs_dilation=(2, 2),
        dimension_numbers=("NCHW", "OIHW", "NCHW"),
        preferred_element_type=jnp.float32)
    return jax.nn.relu(y + b2[None, :, None, None])


def init_params(key, in_channels, middle_channels, out_channels):
    k1, k2, k3, k4 = jax.random.split(key, 4)
    # Conv2d(in, mid, 3): weight (mid, in, 3, 3), bias (mid,)
    s1 = 1.0 / np.sqrt(in_channels * 9)
    w1 = jax.random.uniform(k1, (middle_channels, in_channels, 3, 3),
                            jnp.float32, -s1, s1)
    b1 = jax.random.uniform(k2, (middle_channels,), jnp.float32, -s1, s1)
    # ConvTranspose2d(mid, out, 3): weight (mid, out, 3, 3), bias (out,)
    s2 = 1.0 / np.sqrt(middle_channels * 9)
    w2 = jax.random.uniform(k3, (middle_channels, out_channels, 3, 3),
                            jnp.float32, -s2, s2)
    b2 = jax.random.uniform(k4, (out_channels,), jnp.float32, -s2, s2)
    return (w1, b1, w2, b2)


if __name__ == "__main__":
    key = jax.random.PRNGKey(0)
    kx, kp = jax.random.split(key)

    N, Cin, H, W = 2, 4, 16, 16
    Cmid, Cout = 8, 4

    x = jax.random.normal(kx, (N, Cin, H, W), jnp.float32)   # NCHW, like PyTorch
    params = init_params(kp, Cin, Cmid, Cout)

    decoder_block = jax.jit(decoder_block_forward)
    out = jax.block_until_ready(decoder_block(x, params))
    ref = jax.block_until_ready(reference_forward(x, params))

    assert out.shape == (N, Cout, 2 * H, 2 * W), out.shape
    err = float(np.max(np.abs(np.asarray(out) - np.asarray(ref))))
    # bf16 operands / f32 accumulation in both paths -> differences are accumulation-order
    # level (plus rare 1-ulp bf16 rounding of h); 2e-3 is a wide margin.
    assert np.allclose(np.asarray(out), np.asarray(ref), atol=2e-3, rtol=2e-3), err

    print("KERNEL_OK")
</pallas_src>

<mosaic_0001>
module attributes {stable_mosaic.version = 11 : i64} {
  func.func @_decoder_block_kernel(%arg0: i32, %arg1: memref<1x18x18x4xf32, #tpu.memory_space<vmem>>, %arg2: memref<36x8xbf16, #tpu.memory_space<vmem>>, %arg3: memref<1x8xf32, #tpu.memory_space<vmem>>, %arg4: memref<32x16xbf16, #tpu.memory_space<vmem>>, %arg5: memref<1x16xf32, #tpu.memory_space<vmem>>, %arg6: memref<1x256x16xf32, #tpu.memory_space<vmem>>, %arg7: memref<17x17x8xf32, #tpu.memory_space<vmem>>, %arg8: memref<256x36xbf16, #tpu.memory_space<vmem>>, %arg9: memref<256x32xbf16, #tpu.memory_space<vmem>>) attributes {dimension_semantics = [#tpu.dimension_semantics<parallel>], iteration_bounds = array<i64: 2>, scalar_prefetch = 0 : i64, scratch_operands = 3 : i64, tpu.core_type = #tpu.core_type<tc>, window_params = [{transform_indices = @transform_0, window_bounds = array<i64: 1, 18, 18, 4>}, {pipeline_mode = #tpu.pipeline_mode<synchronous>, transform_indices = @transform_1, window_bounds = array<i64: 36, 8>}, {pipeline_mode = #tpu.pipeline_mode<synchronous>, transform_indices = @transform_2, window_bounds = array<i64: 1, 8>}, {pipeline_mode = #tpu.pipeline_mode<synchronous>, transform_indices = @transform_3, window_bounds = array<i64: 32, 16>}, {pipeline_mode = #tpu.pipeline_mode<synchronous>, transform_indices = @transform_4, window_bounds = array<i64: 1, 16>}, {transform_indices = @transform_5, window_bounds = array<i64: 1, 256, 16>}]} {
    %c0 = arith.constant 0 : index
    %c0_0 = arith.constant 0 : index
    %c0_1 = arith.constant 0 : index
    %c0_2 = arith.constant 0 : index
    %0 = vector.load %arg1[%c0, %c0_0, %c0_1, %c0_2] : memref<1x18x18x4xf32, #tpu.memory_space<vmem>>, vector<1x16x16x4xf32>
    %1 = vector.shape_cast %0 : vector<1x16x16x4xf32> to vector<16x16x4xf32>
    %2 = vector.shape_cast %1 : vector<16x16x4xf32> to vector<256x4xf32>
    %3 = arith.truncf %2 : vector<256x4xf32> to vector<256x4xbf16>
    %c0_3 = arith.constant 0 : index
    %c0_4 = arith.constant 0 : index
    %4 = vector.load %arg8[%c0_3, %c0_4] : memref<256x36xbf16, #tpu.memory_space<vmem>>, vector<256x4xbf16>
    tpu.vector_store %arg8[%c0_3, %c0_4], %3 {strides = array<i32>} : memref<256x36xbf16, #tpu.memory_space<vmem>>, vector<256x4xbf16>,
    %c0_5 = arith.constant 0 : index
    %c0_6 = arith.constant 0 : index
    %c1 = arith.constant 1 : index
    %c0_7 = arith.constant 0 : index
    %5 = vector.load %arg1[%c0_5, %c0_6, %c1, %c0_7] : memref<1x18x18x4xf32, #tpu.memory_space<vmem>>, vector<1x16x16x4xf32>
    %6 = vector.shape_cast %5 : vector<1x16x16x4xf32> to vector<16x16x4xf32>
    %7 = vector.shape_cast %6 : vector<16x16x4xf32> to vector<256x4xf32>
    %8 = arith.truncf %7 : vector<256x4xf32> to vector<256x4xbf16>
    %c0_8 = arith.constant 0 : index
    %c4 = arith.constant 4 : index
    %9 = vector.load %arg8[%c0_8, %c4] : memref<256x36xbf16, #tpu.memory_space<vmem>>, vector<256x4xbf16>
    tpu.vector_store %arg8[%c0_8, %c4], %8 {strides = array<i32>} : memref<256x36xbf16, #tpu.memory_space<vmem>>, vector<256x4xbf16>,
    %c0_9 = arith.constant 0 : index
    %c0_10 = arith.constant 0 : index
    %c2 = arith.constant 2 : index
    %c0_11 = arith.constant 0 : index
    %10 = vector.load %arg1[%c0_9, %c0_10, %c2, %c0_11] : memref<1x18x18x4xf32, #tpu.memory_space<vmem>>, vector<1x16x16x4xf32>
    %11 = vector.shape_cast %10 : vector<1x16x16x4xf32> to vector<16x16x4xf32>
    %12 = vector.shape_cast %11 : vector<16x16x4xf32> to vector<256x4xf32>
    %13 = arith.truncf %12 : vector<256x4xf32> to vector<256x4xbf16>
    %c0_12 = arith.constant 0 : index
    %c8 = arith.constant 8 : index
    %14 = vector.load %arg8[%c0_12, %c8] : memref<256x36xbf16, #tpu.memory_space<vmem>>, vector<256x4xbf16>
    tpu.vector_store %arg8[%c0_12, %c8], %13 {strides = array<i32>} : memref<256x36xbf16, #tpu.memory_space<vmem>>, vector<256x4xbf16>,
    %c0_13 = arith.constant 0 : index
    %c1_14 = arith.constant 1 : index
    %c0_15 = arith.constant 0 : index
    %c0_16 = arith.constant 0 : index
    %15 = vector.load %arg1[%c0_13, %c1_14, %c0_15, %c0_16] : memref<1x18x18x4xf32, #tpu.memory_space<vmem>>, vector<1x16x16x4xf32>
    %16 = vector.shape_cast %15 : vector<1x16x16x4xf32> to vector<16x16x4xf32>
    %17 = vector.shape_cast %16 : vector<16x16x4xf32> to vector<256x4xf32>
    %18 = arith.truncf %17 : vector<256x4xf32> to vector<256x4xbf16>
    %c0_17 = arith.constant 0 : index
    %c12 = arith.constant 12 : index
    %19 = vector.load %arg8[%c0_17, %c12] : memref<256x36xbf16, #tpu.memory_space<vmem>>, vector<256x4xbf16>
    tpu.vector_store %arg8[%c0_17, %c12], %18 {strides = array<i32>} : memref<256x36xbf16, #tpu.memory_space<vmem>>, vector<256x4xbf16>,
    %c0_18 = arith.constant 0 : index
    %c1_19 = arith.constant 1 : index
    %c1_20 = arith.constant 1 : index
    %c0_21 = arith.constant 0 : index
    %20 = vector.load %arg1[%c0_18, %c1_19, %c1_20, %c0_21] : memref<1x18x18x4xf32, #tpu.memory_space<vmem>>, vector<1x16x16x4xf32>
    %21 = vector.shape_cast %20 : vector<1x16x16x4xf32> to vector<16x16x4xf32>
    %22 = vector.shape_cast %21 : vector<16x16x4xf32> to vector<256x4xf32>
    %23 = arith.truncf %22 : vector<256x4xf32> to vector<256x4xbf16>
    %c0_22 = arith.constant 0 : index
    %c16 = arith.constant 16 : index
    %24 = vector.load %arg8[%c0_22, %c16] : memref<256x36xbf16, #tpu.memory_space<vmem>>, vector<256x4xbf16>
    tpu.vector_store %arg8[%c0_22, %c16], %23 {strides = array<i32>} : memref<256x36xbf16, #tpu.memory_space<vmem>>, vector<256x4xbf16>,
    %c0_23 = arith.constant 0 : index
    %c1_24 = arith.constant 1 : index
    %c2_25 = arith.constant 2 : index
    %c0_26 = arith.constant 0 : index
    %25 = vector.load %arg1[%c0_23, %c1_24, %c2_25, %c0_26] : memref<1x18x18x4xf32, #tpu.memory_space<vmem>>, vector<1x16x16x4xf32>
    %26 = vector.shape_cast %25 : vector<1x16x16x4xf32> to vector<16x16x4xf32>
    %27 = vector.shape_cast %26 : vector<16x16x4xf32> to vector<256x4xf32>
    %28 = arith.truncf %27 : vector<256x4xf32> to vector<256x4xbf16>
    %c0_27 = arith.constant 0 : index
    %c20 = arith.constant 20 : index
    %29 = vector.load %arg8[%c0_27, %c20] : memref<256x36xbf16, #tpu.memory_space<vmem>>, vector<256x4xbf16>
    tpu.vector_store %arg8[%c0_27, %c20], %28 {strides = array<i32>} : memref<256x36xbf16, #tpu.memory_space<vmem>>, vector<256x4xbf16>,
    %c0_28 = arith.constant 0 : index
    %c2_29 = arith.constant 2 : index
    %c0_30 = arith.constant 0 : index
    %c0_31 = arith.constant 0 : index
    %30 = vector.load %arg1[%c0_28, %c2_29, %c0_30, %c0_31] : memref<1x18x18x4xf32, #tpu.memory_space<vmem>>, vector<1x16x16x4xf32>
    %31 = vector.shape_cast %30 : vector<1x16x16x4xf32> to vector<16x16x4xf32>
    %32 = vector.shape_cast %31 : vector<16x16x4xf32> to vector<256x4xf32>
    %33 = arith.truncf %32 : vector<256x4xf32> to vector<256x4xbf16>
    %c0_32 = arith.constant 0 : index
    %c24 = arith.constant 24 : index
    %34 = vector.load %arg8[%c0_32, %c24] : memref<256x36xbf16, #tpu.memory_space<vmem>>, vector<256x4xbf16>
    tpu.vector_store %arg8[%c0_32, %c24], %33 {strides = array<i32>} : memref<256x36xbf16, #tpu.memory_space<vmem>>, vector<256x4xbf16>,
    %c0_33 = arith.constant 0 : index
    %c2_34 = arith.constant 2 : index
    %c1_35 = arith.constant 1 : index
    %c0_36 = arith.constant 0 : index
    %35 = vector.load %arg1[%c0_33, %c2_34, %c1_35, %c0_36] : memref<1x18x18x4xf32, #tpu.memory_space<vmem>>, vector<1x16x16x4xf32>
    %36 = vector.shape_cast %35 : vector<1x16x16x4xf32> to vector<16x16x4xf32>
    %37 = vector.shape_cast %36 : vector<16x16x4xf32> to vector<256x4xf32>
    %38 = arith.truncf %37 : vector<256x4xf32> to vector<256x4xbf16>
    %c0_37 = arith.constant 0 : index
    %c28 = arith.constant 28 : index
    %39 = vector.load %arg8[%c0_37, %c28] : memref<256x36xbf16, #tpu.memory_space<vmem>>, vector<256x4xbf16>
    tpu.vector_store %arg8[%c0_37, %c28], %38 {strides = array<i32>} : memref<256x36xbf16, #tpu.memory_space<vmem>>, vector<256x4xbf16>,
    %c0_38 = arith.constant 0 : index
    %c2_39 = arith.constant 2 : index
    %c2_40 = arith.constant 2 : index
    %c0_41 = arith.constant 0 : index
    %40 = vector.load %arg1[%c0_38, %c2_39, %c2_40, %c0_41] : memref<1x18x18x4xf32, #tpu.memory_space<vmem>>, vector<1x16x16x4xf32>
    %41 = vector.shape_cast %40 : vector<1x16x16x4xf32> to vector<16x16x4xf32>
    %42 = vector.shape_cast %41 : vector<16x16x4xf32> to vector<256x4xf32>
    %43 = arith.truncf %42 : vector<256x4xf32> to vector<256x4xbf16>
    %c0_42 = arith.constant 0 : index
    %c32 = arith.constant 32 : index
    %44 = vector.load %arg8[%c0_42, %c32] : memref<256x36xbf16, #tpu.memory_space<vmem>>, vector<256x4xbf16>
    tpu.vector_store %arg8[%c0_42, %c32], %43 {strides = array<i32>} : memref<256x36xbf16, #tpu.memory_space<vmem>>, vector<256x4xbf16>,
    %c0_43 = arith.constant 0 : index
    %c0_44 = arith.constant 0 : index
    %45 = vector.load %arg8[%c0_43, %c0_44] : memref<256x36xbf16, #tpu.memory_space<vmem>>, vector<256x36xbf16>
    %c0_45 = arith.constant 0 : index
    %c0_46 = arith.constant 0 : index
    %46 = vector.load %arg2[%c0_45, %c0_46] : memref<36x8xbf16, #tpu.memory_space<vmem>>, vector<36x8xbf16>
    %cst = arith.constant dense<0.000000e+00> : vector<256x8xf32>
    %47 = tpu.matmul %45, %46, %cst {dimension_numbers = #tpu.dot_dimension_numbers<[1], [0], [0], [1], [0, 0, 1, 1], [], []>} : vector<256x36xbf16>, vector<36x8xbf16>, vector<256x8xf32> -> vector<256x8xf32>
    %c0_47 = arith.constant 0 : index
    %c0_48 = arith.constant 0 : index
    %48 = vector.load %arg3[%c0_47, %c0_48] : memref<1x8xf32, #tpu.memory_space<vmem>>, vector<1x8xf32>
    %49 = vector.broadcast %48 : vector<1x8xf32> to vector<256x8xf32>
    %50 = arith.addf %47, %49 : vector<256x8xf32>
    %cst_49 = arith.constant 0.000000e+00 : f32
    %51 = vector.broadcast %cst_49 : f32 to vector<256x8xf32>
    %52 = arith.maximumf %50, %51 : vector<256x8xf32>
    %cst_50 = arith.constant 0.000000e+00 : f32
    %53 = vector.broadcast %cst_50 : f32 to vector<17x17x8xf32>
    %c0_51 = arith.constant 0 : index
    %c0_52 = arith.constant 0 : index
    %c0_53 = arith.constant 0 : index
    %54 = vector.load %arg7[%c0_51, %c0_52, %c0_53] : memref<17x17x8xf32, #tpu.memory_space<vmem>>, vector<17x17x8xf32>
    tpu.vector_store %arg7[%c0_51, %c0_52, %c0_53], %53 {strides = array<i32>} : memref<17x17x8xf32, #tpu.memory_space<vmem>>, vector<17x17x8xf32>,
    %55 = vector.shape_cast %52 : vector<256x8xf32> to vector<16x16x8xf32>
    %c0_54 = arith.constant 0 : index
    %c0_55 = arith.constant 0 : index
    %c0_56 = arith.constant 0 : index
    %56 = vector.load %arg7[%c0_54, %c0_55, %c0_56] : memref<17x17x8xf32, #tpu.memory_space<vmem>>, vector<16x16x8xf32>
    tpu.vector_store %arg7[%c0_54, %c0_55, %c0_56], %55 {strides = array<i32>} : memref<17x17x8xf32, #tpu.memory_space<vmem>>, vector<16x16x8xf32>,
    %c0_57 = arith.constant 0 : index
    %c0_58 = arith.constant 0 : index
    %c0_59 = arith.constant 0 : index
    %57 = vector.load %arg7[%c0_57, %c0_58, %c0_59] : memref<17x17x8xf32, #tpu.memory_space<vmem>>, vector<16x16x8xf32>
    %58 = vector.shape_cast %57 : vector<16x16x8xf32> to vector<256x8xf32>
    %59 = arith.truncf %58 : vector<256x8xf32> to vector<256x8xbf16>
    %c0_60 = arith.constant 0 : index
    %c0_61 = arith.constant 0 : index
    %60 = vector.load %arg9[%c0_60, %c0_61] : memref<256x32xbf16, #tpu.memory_space<vmem>>, vector<256x8xbf16>
    tpu.vector_store %arg9[%c0_60, %c0_61], %59 {strides = array<i32>} : memref<256x32xbf16, #tpu.memory_space<vmem>>, vector<256x8xbf16>,
    %c0_62 = arith.constant 0 : index
    %c1_63 = arith.constant 1 : index
    %c0_64 = arith.constant 0 : index
    %61 = vector.load %arg7[%c0_62, %c1_63, %c0_64] : memref<17x17x8xf32, #tpu.memory_space<vmem>>, vector<16x16x8xf32>
    %62 = vector.shape_cast %61 : vector<16x16x8xf32> to vector<256x8xf32>
    %63 = arith.truncf %62 : vector<256x8xf32> to vector<256x8xbf16>
    %c0_65 = arith.constant 0 : index
    %c8_66 = arith.constant 8 : index
    %64 = vector.load %arg9[%c0_65, %c8_66] : memref<256x32xbf16, #tpu.memory_space<vmem>>, vector<256x8xbf16>
    tpu.vector_store %arg9[%c0_65, %c8_66], %63 {strides = array<i32>} : memref<256x32xbf16, #tpu.memory_space<vmem>>, vector<256x8xbf16>,
    %c1_67 = arith.constant 1 : index
    %c0_68 = arith.constant 0 : index
    %c0_69 = arith.constant 0 : index
    %65 = vector.load %arg7[%c1_67, %c0_68, %c0_69] : memref<17x17x8xf32, #tpu.memory_space<vmem>>, vector<16x16x8xf32>
    %66 = vector.shape_cast %65 : vector<16x16x8xf32> to vector<256x8xf32>
    %67 = arith.truncf %66 : vector<256x8xf32> to vector<256x8xbf16>
    %c0_70 = arith.constant 0 : index
    %c16_71 = arith.constant 16 : index
    %68 = vector.load %arg9[%c0_70, %c16_71] : memref<256x32xbf16, #tpu.memory_space<vmem>>, vector<256x8xbf16>
    tpu.vector_store %arg9[%c0_70, %c16_71], %67 {strides = array<i32>} : memref<256x32xbf16, #tpu.memory_space<vmem>>, vector<256x8xbf16>,
    %c1_72 = arith.constant 1 : index
    %c1_73 = arith.constant 1 : index
    %c0_74 = arith.constant 0 : index
    %69 = vector.load %arg7[%c1_72, %c1_73, %c0_74] : memref<17x17x8xf32, #tpu.memory_space<vmem>>, vector<16x16x8xf32>
    %70 = vector.shape_cast %69 : vector<16x16x8xf32> to vector<256x8xf32>
    %71 = arith.truncf %70 : vector<256x8xf32> to vector<256x8xbf16>
    %c0_75 = arith.constant 0 : index
    %c24_76 = arith.constant 24 : index
    %72 = vector.load %arg9[%c0_75, %c24_76] : memref<256x32xbf16, #tpu.memory_space<vmem>>, vector<256x8xbf16>
    tpu.vector_store %arg9[%c0_75, %c24_76], %71 {strides = array<i32>} : memref<256x32xbf16, #tpu.memory_space<vmem>>, vector<256x8xbf16>,
    %c0_77 = arith.constant 0 : index
    %c0_78 = arith.constant 0 : index
    %73 = vector.load %arg9[%c0_77, %c0_78] : memref<256x32xbf16, #tpu.memory_space<vmem>>, vector<256x32xbf16>
    %c0_79 = arith.constant 0 : index
    %c0_80 = arith.constant 0 : index
    %74 = vector.load %arg4[%c0_79, %c0_80] : memref<32x16xbf16, #tpu.memory_space<vmem>>, vector<32x16xbf16>
    %cst_81 = arith.constant dense<0.000000e+00> : vector<256x16xf32>
    %75 = tpu.matmul %73, %74, %cst_81 {dimension_numbers = #tpu.dot_dimension_numbers<[1], [0], [0], [1], [0, 0, 1, 1], [], []>} : vector<256x32xbf16>, vector<32x16xbf16>, vector<256x16xf32> -> vector<256x16xf32>
    %c0_82 = arith.constant 0 : index
    %c0_83 = arith.constant 0 : index
    %76 = vector.load %arg5[%c0_82, %c0_83] : memref<1x16xf32, #tpu.memory_space<vmem>>, vector<1x16xf32>
    %77 = vector.broadcast %76 : vector<1x16xf32> to vector<256x16xf32>
    %78 = arith.addf %75, %77 : vector<256x16xf32>
    %cst_84 = arith.constant 0.000000e+00 : f32
    %79 = vector.broadcast %cst_84 : f32 to vector<256x16xf32>
    %80 = arith.maximumf %78, %79 : vector<256x16xf32>
    %c0_85 = arith.constant 0 : index
    %c0_86 = arith.constant 0 : index
    %c0_87 = arith.constant 0 : index
    %81 = vector.load %arg6[%c0_85, %c0_86, %c0_87] : memref<1x256x16xf32, #tpu.memory_space<vmem>>, vector<1x256x16xf32>
    %82 = vector.shape_cast %81 : vector<1x256x16xf32> to vector<256x16xf32>
    %83 = vector.shape_cast %80 : vector<256x16xf32> to vector<1x256x16xf32>
    tpu.vector_store %arg6[%c0_85, %c0_86, %c0_87], %83 {strides = array<i32>} : memref<1x256x16xf32, #tpu.memory_space<vmem>>, vector<1x256x16xf32>,
    return
  }
  func.func @transform_0(%arg0: i32) -> (i32, i32, i32, i32) {
    %c0_i32 = arith.constant 0 : i32
    %c0_i32_0 = arith.constant 0 : i32
    %c0_i32_1 = arith.constant 0 : i32
    %c0_i32_2 = arith.constant 0 : i32
    return %arg0, %c0_i32, %c0_i32_0, %c0_i32_1 : i32, i32, i32, i32
  }
  func.func @transform_1(%arg0: i32) -> (i32, i32) {
    %c0_i32 = arith.constant 0 : i32
    %c0_i32_0 = arith.constant 0 : i32
    %c0_i32_1 = arith.constant 0 : i32
    return %c0_i32, %c0_i32_0 : i32, i32
  }
  func.func @transform_2(%arg0: i32) -> (i32, i32) {
    %c0_i32 = arith.constant 0 : i32
    %c0_i32_0 = arith.constant 0 : i32
    %c0_i32_1 = arith.constant 0 : i32
    return %c0_i32, %c0_i32_0 : i32, i32
  }
  func.func @transform_3(%arg0: i32) -> (i32, i32) {
    %c0_i32 = arith.constant 0 : i32
    %c0_i32_0 = arith.constant 0 : i32
    %c0_i32_1 = arith.constant 0 : i32
    return %c0_i32, %c0_i32_0 : i32, i32
  }
  func.func @transform_4(%arg0: i32) -> (i32, i32) {
    %c0_i32 = arith.constant 0 : i32
    %c0_i32_0 = arith.constant 0 : i32
    %c0_i32_1 = arith.constant 0 : i32
    return %c0_i32, %c0_i32_0 : i32, i32
  }
  func.func @transform_5(%arg0: i32) -> (i32, i32, i32) {
    %c0_i32 = arith.constant 0 : i32
    %c0_i32_0 = arith.constant 0 : i32
    %c0_i32_1 = arith.constant 0 : i32
    return %arg0, %c0_i32, %c0_i32_0 : i32, i32, i32
  }
}

</mosaic_0001>

<bundles_post_ra>
// kernel: tile.9
= control target key start
LH: loop header
LB: loop body
LE: loop exit
PB: predicated region body
PF: predicated region fallthrough
CT: control target
= control target key end

     0   :  { %vm8_vm0 = vcmask 31744   ;;  %s40_s8 = smov 4   ;;  %s41_s9 = smov 8   ;;  %vm14_vm1 = vcmask 130144   ;;  %vm20_vm2 = vcmask 97344   ;;  %vm26_vm3 = vcmask 64544   ;;  %s58_s0 = inlined_call_operand.vmem [shape: f32[4,4], index: 0, kind: input, shape index: {}]   ;;  %s59_s1 = inlined_call_operand.vmem [shape: f32[1,16], index: 1, kind: output, shape index: {}]  }
   0x1   :  { %v5_v0 = vld [vmem:[%s58_s0] sm:$0xf]  ;;  %s39_s0 = smov 12  }
   0x2   :  { %6 = vst [vmem:[#allocation1] sm:$0xf] %v5_v0 }
   0x9   :  { %v11_v1 = vld [vmem:[#allocation1 + $0x3] sm:$0x1]   ;;  %v23_v2 = vld [vmem:[#allocation1 + $0x1] sm:$0x1]   ;;  %v7_v3 = vld [vmem:[#allocation1] sm:$0x1]  }
   0xa   :  { %12 = vrot.lane.b32.xlu0 %v11_v1, %s39_s0  ;;  %24 = vrot.lane.b32.xlu1 %v23_v2, %s40_s8  ;;  %v17_v4 = vld [vmem:[#allocation1 + $0x2] sm:$0x1]   ;;  %9 = vst.msk [vmem:[#allocation0] sm:$0x1] %vm8_vm0, %v7_v3  }
   0xe   :  { %18 = vrot.lane.b32.xlu0 %v17_v4, %s41_s9 }
  0x7c   :  { %v13_v5 = vpop.permute.xlu0 %12   ;;  %v25_v6 = vpop.permute.xlu1 %24  }
  0x7d   :  { %15 = vst.msk [vmem:[#allocation0] sm:$0x1] %vm14_vm1, %v13_v5  }
  0x80   :  { %v19_v7 = vpop.permute.xlu0 %18  }
  0x81   :  { %21 = vst.msk [vmem:[#allocation0] sm:$0x1] %vm20_vm2, %v19_v7  }
  0x82   :  { %27 = vst.msk [vmem:[#allocation0] sm:$0x1] %vm26_vm3, %v25_v6  }
  0x89   :  { %v32_v8 = vld [vmem:[#allocation0] sm:$0x1] }
  0x8a   :  { %35 = vst [vmem:[%s59_s1] sm:$0x1] %v32_v8 }

// kernel: tile.8
= control target key start
LH: loop header
LB: loop body
LE: loop exit
PB: predicated region body
PF: predicated region fallthrough
CT: control target
= control target key end

     0   :  { %s22_s0 = inlined_call_operand.vmem [shape: f32[4], index: 0, kind: input, shape index: {}]   ;;  %s23_s1 = inlined_call_operand.vmem [shape: f32[4,4], index: 1, kind: output, shape index: {}]  }
   0x1   :  { %v4_v0 = vld [vmem:[%s22_s0] ss:$0 sm:$0xff] }
   0x2   :  { %5 = vst [vmem:[%s23_s1] sm:$0xf] %v4_v0 }

// kernel: decoder_block_forward.1
= control target key start
LH: loop header
LB: loop body
LE: loop exit
PB: predicated region body
PF: predicated region fallthrough
CT: control target
= control target key end

     0   :  { %s5698_s18 = smov 0   ;;  %s7218_s0 = inlined_call_operand.vmem [shape: f32[2,18,18,4], index: 0, kind: input, shape index: {}]   ;;  %s7219_s1 = inlined_call_operand.vmem [shape: bf16[36,8], index: 1, kind: input, shape index: {}]   ;;  %s7220_s2 = inlined_call_operand.vmem [shape: f32[1,8], index: 2, kind: input, shape index: {}]   ;;  %s7221_s3 = inlined_call_operand.vmem [shape: bf16[32,16], index: 3, kind: input, shape index: {}]   ;;  %s7222_s4 = inlined_call_operand.vmem [shape: f32[1,16], index: 4, kind: input, shape index: {}]   ;;  %s7223_s5 = inlined_call_operand.vmem [shape: f32[2,256,16], index: 5, kind: output, shape index: {}]  }
   0x1 LB: > { %s4377_s19 = sadd.s32 4294967295, %s5657_s18   ;;  %p4381_p0 = scmp.ge.s32.totalorder %s5657_s18, 1  ;;  %s5657_s18 = sphi %s5698_s18, %s15_s18  }
   0x2   : > { %p187_p1 = scmp.lt.s32.totalorder %s5657_s18, 3 }
   0x4   : > { %p188_p2 = pnand %p4381_p0, %p187_p1 }
   0x5   : > { %p215_p3 = scmp.lt.s32.totalorder (!%p188_p2), %s4377_s19, 1  ;;  %s5659_s24 = smov (!%p188_p2), 4  }
   0x6   : > { %191 = sbr.rel (%p188_p2) target bundleno = 1221 (0x4c5), region = 40  ;;  %s5660_s25 = smov (!%p188_p2), 8  }
   0x7   : > { %s5661_s26 = smov (!%p188_p2), 12   ;;  %s5662_s27 = smov (!%p188_p2), 16  }
   0x8   : > { %s5663_s28 = smov (!%p188_p2), 20   ;;  %s5664_s29 = smov (!%p188_p2), 24  }
   0x9   : > { %s5665_s7 = smov (!%p188_p2), 28   ;;  %s5666_s12 = smov (!%p188_p2), 32  }
   0xb   : > { %s7225_s19 = smov (!%p215_p3, %s4377_s19), 1  ;;  %vm386_vm0 = vcmask 27648   ;;  %vm2665_vm1 = vcmask 1041408   ;;  %vm643_vm2 = vcmask 60448   ;;  %vm900_vm3 = vcmask 93248  }
   0xc   : > { %s5595_s20 = smul.u32 432, %s7225_s19  ;;  %vm1158_vm4 = vcmask 126048   ;;  %vm1415_vm5 = vcmask 158848   ;;  %vm1672_vm6 = vcmask 191648   ;;  %vm1930_vm7 = vcmask 224448  }
   0xd   : > { %vm2187_vm8 = vcmask 257248   ;;  %vm2444_vm9 = vcmask 290048   ;;  %vm2616_vm10 = vcmask 293888   ;;  %vm2862_vm11 = vcmask 64512  }
   0xe   : > { %s5712_s23 = scalar_lea.vmem %s7218_s0, %s5595_s20  ;;  %vm2865_vm12 = vcmask 57344   ;;  %vm3107_vm13 = vcmask 60416   ;;  %vm3364_vm14 = vcmask 126016   ;;  %vm3622_vm15 = vcmask 191616  }
   0xf   : > { %v421_v0 = vld [vmem:[%s5712_s23 + $0x19] sm:$0xff]  ;;  %v419_v1 = vld [vmem:[%s5712_s23 + $0x1] sm:$0xff]  ;;  %v420_v5 = vld [vmem:[%s5712_s23 + $0x9] sm:$0xff] }
  0x10   : > { %v422_v2 = vld [vmem:[%s5712_s23 + $0x21] sm:$0xff]  ;;  %v5717_v3 = vpack.c.bf16 %v421_v0, %v421_v0  ;;  %v5099_v4 = vpack.c.bf16 %v419_v1, %v419_v1  ;;  %v5100_v7 = vpack.c.bf16 %v420_v5, %v420_v5  ;;  %v424_v8 = vld [vmem:[%s5712_s23 + $0x39] sm:$0xff]  ;;  %v423_v9 = vld [vmem:[%s5712_s23 + $0x31] sm:$0xff] }
  0x11   : > { %v5723_v6 = vpack.c.bf16 %v422_v2, %v422_v2  ;;  %v5730_v10 = vpack.c.bf16 %v424_v8, %v424_v8  ;;  %v5732_v11 = vpack.c.bf16 %v423_v9, %v423_v9  ;;  %v426_v12 = vld [vmem:[%s5712_s23 + $0x51] sm:$0xff]  ;;  %v425_v13 = vld [vmem:[%s5712_s23 + $0x49] sm:$0xff]  ;;  %v427_v17 = vld [vmem:[%s5712_s23 + $0x61] sm:$0xff] }
  0x12   : > { %551 = vrot.lane.b32.xlu1 %v5717_v3, %s5659_s24  ;;  %547 = vrot.lane.b32.xlu0 %v5099_v4, %s5659_s24  ;;  %v5740_v14 = vpack.c.bf16 %v426_v12, %v426_v12  ;;  %v5742_v15 = vpack.c.bf16 %v425_v13, %v425_v13  ;;  %v428_v16 = vld [vmem:[%s5712_s23 + $0x69] sm:$0xff]  ;;  %v430_v18 = vld [vmem:[%s5712_s23 + $0x81] sm:$0xff]  ;;  %v5755_v22 = vpack.c.bf16 %v427_v17, %v427_v17 }
  0x13   : > { %v429_v19 = vld [vmem:[%s5712_s23 + $0x79] sm:$0xff]  ;;  %v5753_v21 = vpack.c.bf16 %v428_v16, %v428_v16  ;;  %v4483_v24 = vld [vmem:[%s5712_s23 + $0x30] sm:$0xff]  ;;  %v4675_v29 = vld [vmem:[%s5712_s23 + $0x48] sm:$0xff]  ;;  %v5768_v31 = vpack.c.bf16 %v430_v18, %v430_v18 }
  0x14   : > { %v4481_v20 = vld [vmem:[%s5712_s23 + $0x18] sm:$0xff]  ;;  %v4482_v25 = vld [vmem:[%s5712_s23 + $0x20] sm:$0xff]  ;;  %v5761_v26 = vpack.c.bf16 %v4483_v24, %v4483_v24  ;;  %v4676_v30 = vld [vmem:[%s5712_s23 + $0x50] sm:$0xff]  ;;  %v5773_v34 = vpack.c.bf16 %v4675_v29, %v4675_v29  ;;  %v5782_v39 = vpack.c.bf16 %v429_v19, %v429_v19 }
  0x15   : > { %v5757_v23 = vpack.c.bf16 %v4481_v20, %v4481_v20  ;;  %v5763_v27 = vpack.c.bf16 %v4482_v25, %v4482_v25  ;;  %v4484_v28 = vld [vmem:[%s5712_s23 + $0x38] sm:$0xff]  ;;  %v5775_v35 = vpack.c.bf16 %v4676_v30, %v4676_v30  ;;  %v226_v36 = vld [vmem:[%s5712_s23] sm:$0xff]  ;;  %v227_v37 = vld [vmem:[%s5712_s23 + $0x8] sm:$0xff] }
  0x16   : > { %553 = vrot.lane.b32.xlu1 %v5723_v6, %s5659_s24  ;;  %549 = vrot.lane.b32.xlu0 %v5100_v7, %s5659_s24  ;;  %v432_v32 = vld [vmem:[%s5712_s23 + $0x99] sm:$0xff]  ;;  %v5771_v33 = vpack.c.bf16 %v4484_v28, %v4484_v28  ;;  %v235_v38 = vld [vmem:[%s5712_s23 + $0x68] sm:$0xff]  ;;  %v5067_v41 = vpack.c.bf16 %v226_v36, %v226_v36  ;;  %v5068_v42 = vpack.c.bf16 %v227_v37, %v227_v37 }
  0x17   : > { %389 = vst.msk [vmem:[#allocation3 + $0x8] sm:$0xf] %vm386_vm0, %v5757_v23  ;;  %v431_v40 = vld [vmem:[%s5712_s23 + $0x91] sm:$0xff]  ;;  %390 = vst.msk [vmem:[#allocation3 + $0xc] sm:$0xf] %vm386_vm0, %v5763_v27  ;;  %v5789_v43 = vpack.c.bf16 %v235_v38, %v235_v38  ;;  %v234_v44 = vld [vmem:[%s5712_s23 + $0x60] sm:$0xff]  ;;  %v5836_v61 = vpack.c.bf16 %v432_v32, %v432_v32 }
  0x18   : > { %391 = vst.msk [vmem:[#allocation3 + $0x10] sm:$0xf] %vm386_vm0, %v5761_v26  ;;  %v237_v45 = vld [vmem:[%s5712_s23 + $0x80] sm:$0xff]  ;;  %v236_v46 = vld [vmem:[%s5712_s23 + $0x78] sm:$0xff]  ;;  %392 = vst.msk [vmem:[#allocation3 + $0x14] sm:$0xf] %vm386_vm0, %v5771_v33  ;;  %v5804_v47 = vpack.c.bf16 %v234_v44, %v234_v44  ;;  %v5850_v1 = vpack.c.bf16 %v431_v40, %v431_v40 }
  0x19   : > { %394 = vst.msk [vmem:[#allocation3 + $0x1c] sm:$0xf] %vm386_vm0, %v5775_v35  ;;  %393 = vst.msk [vmem:[#allocation3 + $0x18] sm:$0xf] %vm386_vm0, %v5773_v34  ;;  %v5806_v48 = vpack.c.bf16 %v237_v45, %v237_v45  ;;  %v5808_v49 = vpack.c.bf16 %v236_v46, %v236_v46  ;;  %v239_v50 = vld [vmem:[%s5712_s23 + $0x98] sm:$0xff]  ;;  %v238_v51 = vld [vmem:[%s5712_s23 + $0x90] sm:$0xff] }
  0x1a   : > { %557 = vrot.lane.b32.xlu1 %v5730_v10, %s5659_s24  ;;  %555 = vrot.lane.b32.xlu0 %v5732_v11, %s5659_s24  ;;  %387 = vst.msk [vmem:[#allocation3] sm:$0xf] %vm386_vm0, %v5067_v41  ;;  %388 = vst.msk [vmem:[#allocation3 + $0x4] sm:$0xf] %vm386_vm0, %v5068_v42  ;;  %v5816_v52 = vpack.c.bf16 %v239_v50, %v239_v50  ;;  %v5818_v53 = vpack.c.bf16 %v238_v51, %v238_v51  ;;  %v241_v54 = vld [vmem:[%s5712_s23 + $0xb0] sm:$0xff]  ;;  %v240_v55 = vld [vmem:[%s5712_s23 + $0xa8] sm:$0xff] }
  0x1b   : > { %396 = vst.msk [vmem:[#allocation3 + $0x24] sm:$0xf] %vm386_vm0, %v5789_v43  ;;  %v243_v56 = vld [vmem:[%s5712_s23 + $0xc8] sm:$0xff]  ;;  %395 = vst.msk [vmem:[#allocation3 + $0x20] sm:$0xf] %vm386_vm0, %v5804_v47  ;;  %v5829_v57 = vpack.c.bf16 %v241_v54, %v241_v54  ;;  %v5831_v58 = vpack.c.bf16 %v240_v55, %v240_v55  ;;  %v242_v60 = vld [vmem:[%s5712_s23 + $0xc0] sm:$0xff] }
  0x1c   : > { %398 = vst.msk [vmem:[#allocation3 + $0x2c] sm:$0xf] %vm386_vm0, %v5806_v48  ;;  %397 = vst.msk [vmem:[#allocation3 + $0x28] sm:$0xf] %vm386_vm0, %v5808_v49  ;;  %v5833_v59 = vpack.c.bf16 %v243_v56, %v243_v56  ;;  %v5842_v62 = vpack.c.bf16 %v242_v60, %v242_v60  ;;  %v245_v63 = vld [vmem:[%s5712_s23 + $0xe0] sm:$0xff]  ;;  %v244_v0 = vld [vmem:[%s5712_s23 + $0xd8] sm:$0xff] }
  0x1d   : > { %400 = vst.msk [vmem:[#allocation3 + $0x34] sm:$0xf] %vm386_vm0, %v5816_v52  ;;  %399 = vst.msk [vmem:[#allocation3 + $0x30] sm:$0xf] %vm386_vm0, %v5818_v53  ;;  %v434_v2 = vld [vmem:[%s5712_s23 + $0xb1] sm:$0xff]  ;;  %v5859_v4 = vpack.c.bf16 %v245_v63, %v245_v63  ;;  %v5861_v5 = vpack.c.bf16 %v244_v0, %v244_v0  ;;  %v433_v7 = vld [vmem:[%s5712_s23 + $0xa9] sm:$0xff] }
  0x1e   : > { %561 = vrot.lane.b32.xlu1 %v5740_v14, %s5659_s24  ;;  %559 = vrot.lane.b32.xlu0 %v5742_v15, %s5659_s24  ;;  %402 = vst.msk [vmem:[#allocation3 + $0x3c] sm:$0xf] %vm386_vm0, %v5829_v57  ;;  %401 = vst.msk [vmem:[#allocation3 + $0x38] sm:$0xf] %vm386_vm0, %v5831_v58  ;;  %v5870_v8 = vpack.c.bf16 %v434_v2, %v434_v2  ;;  %v247_v9 = vld [vmem:[%s5712_s23 + $0xf8] sm:$0xff]  ;;  %v246_v12 = vld [vmem:[%s5712_s23 + $0xf0] sm:$0xff]  ;;  %v5878_v13 = vpack.c.bf16 %v433_v7, %v433_v7 }
  0x1f   : > { %404 = vst.msk [vmem:[#allocation3 + $0x44] sm:$0xf] %vm386_vm0, %v5833_v59  ;;  %403 = vst.msk [vmem:[#allocation3 + $0x40] sm:$0xf] %vm386_vm0, %v5842_v62  ;;  %v436_v16 = vld [vmem:[%s5712_s23 + $0xc9] sm:$0xff]  ;;  %v5881_v17 = vpack.c.bf16 %v247_v9, %v247_v9  ;;  %v5883_v18 = vpack.c.bf16 %v246_v12, %v246_v12  ;;  %v435_v19 = vld [vmem:[%s5712_s23 + $0xc1] sm:$0xff] }
  0x20   : > { %406 = vst.msk [vmem:[#allocation3 + $0x4c] sm:$0xf] %vm386_vm0, %v5859_v4  ;;  %405 = vst.msk [vmem:[#allocation3 + $0x48] sm:$0xf] %vm386_vm0, %v5861_v5  ;;  %v5116_v20 = vpack.c.bf16 %v436_v16, %v436_v16  ;;  %v249_v24 = vld [vmem:[%s5712_s23 + $0x110] sm:$0xff]  ;;  %v248_v25 = vld [vmem:[%s5712_s23 + $0x108] sm:$0xff]  ;;  %v5115_v28 = vpack.c.bf16 %v435_v19, %v435_v19 }
  0x21   : > { %408 = vst.msk [vmem:[#allocation3 + $0x54] sm:$0xf] %vm386_vm0, %v5881_v17  ;;  %407 = vst.msk [vmem:[#allocation3 + $0x50] sm:$0xf] %vm386_vm0, %v5883_v18  ;;  %v438_v29 = vld [vmem:[%s5712_s23 + $0xe1] sm:$0xff]  ;;  %v5897_v30 = vpack.c.bf16 %v249_v24, %v249_v24  ;;  %v5899_v32 = vpack.c.bf16 %v248_v25, %v248_v25  ;;  %v437_v36 = vld [vmem:[%s5712_s23 + $0xd9] sm:$0xff] }
  0x22   : > { %565 = vrot.lane.b32.xlu1 %v5753_v21, %s5659_s24  ;;  %563 = vrot.lane.b32.xlu0 %v5755_v22, %s5659_s24  ;;  %v5118_v37 = vpack.c.bf16 %v438_v29, %v438_v29  ;;  %v251_v38 = vld [vmem:[%s5712_s23 + $0x128] sm:$0xff]  ;;  %v250_v40 = vld [vmem:[%s5712_s23 + $0x120] sm:$0xff]  ;;  %v5117_v41 = vpack.c.bf16 %v437_v36, %v437_v36 }
  0x23   : > { %410 = vst.msk [vmem:[#allocation3 + $0x5c] sm:$0xf] %vm386_vm0, %v5897_v30  ;;  %409 = vst.msk [vmem:[#allocation3 + $0x58] sm:$0xf] %vm386_vm0, %v5899_v32  ;;  %v440_v42 = vld [vmem:[%s5712_s23 + $0xf9] sm:$0xff]  ;;  %v5092_v44 = vpack.c.bf16 %v251_v38, %v251_v38  ;;  %v5091_v45 = vpack.c.bf16 %v250_v40, %v250_v40  ;;  %v439_v46 = vld [vmem:[%s5712_s23 + $0xf1] sm:$0xff] }
  0x24   : > { %v5120_v50 = vpack.c.bf16 %v440_v42, %v440_v42  ;;  %v253_v51 = vld [vmem:[%s5712_s23 + $0x140] sm:$0xff]  ;;  %v252_v54 = vld [vmem:[%s5712_s23 + $0x138] sm:$0xff]  ;;  %v5119_v55 = vpack.c.bf16 %v439_v46, %v439_v46  ;;  %v441_v0 = vld [vmem:[%s5712_s23 + $0x109] sm:$0xff] }
  0x25   : > { %412 = vst.msk [vmem:[#allocation3 + $0x64] sm:$0xf] %vm386_vm0, %v5092_v44  ;;  %411 = vst.msk [vmem:[#allocation3 + $0x60] sm:$0xf] %vm386_vm0, %v5091_v45  ;;  %v442_v56 = vld [vmem:[%s5712_s23 + $0x111] sm:$0xff]  ;;  %v5094_v60 = vpack.c.bf16 %v253_v51, %v253_v51  ;;  %v5093_v63 = vpack.c.bf16 %v252_v54, %v252_v54  ;;  %v5121_v12 = vpack.c.bf16 %v441_v0, %v441_v0  ;;  %v444_v16 = vld [vmem:[%s5712_s23 + $0x129] sm:$0xff] }
  0x26   : > { %569 = vrot.lane.b32.xlu1 %v5768_v31, %s5659_s24  ;;  %567 = vrot.lane.b32.xlu0 %v5782_v39, %s5659_s24  ;;  %v5122_v2 = vpack.c.bf16 %v442_v56, %v442_v56  ;;  %v255_v7 = vld [vmem:[%s5712_s23 + $0x158] sm:$0xff]  ;;  %v254_v9 = vld [vmem:[%s5712_s23 + $0x150] sm:$0xff]  ;;  %v5124_v25 = vpack.c.bf16 %v444_v16, %v444_v16 }
  0x27   : > { %414 = vst.msk [vmem:[#allocation3 + $0x6c] sm:$0xf] %vm386_vm0, %v5094_v60  ;;  %413 = vst.msk [vmem:[#allocation3 + $0x68] sm:$0xf] %vm386_vm0, %v5093_v63  ;;  %v5096_v19 = vpack.c.bf16 %v255_v7, %v255_v7  ;;  %v443_v24 = vld [vmem:[%s5712_s23 + $0x121] sm:$0xff]  ;;  %v448_v45 = vld [vmem:[%s5712_s23 + $0x159] sm:$0xff] }
  0x28   : > { %v256_v29 = vld [vmem:[%s5712_s23 + $0x168] sm:$0xff]  ;;  %v5123_v36 = vpack.c.bf16 %v443_v24, %v443_v24  ;;  %v447_v46 = vld [vmem:[%s5712_s23 + $0x151] sm:$0xff] }
  0x29   : > { %416 = vst.msk [vmem:[#allocation3 + $0x74] sm:$0xf] %vm386_vm0, %v5096_v19  ;;  %v5097_v38 = vpack.c.bf16 %v256_v29, %v256_v29  ;;  %v446_v40 = vld [vmem:[%s5712_s23 + $0x141] sm:$0xff]  ;;  %v5127_v51 = vpack.c.bf16 %v447_v46, %v447_v46  ;;  %v450_v54 = vld [vmem:[%s5712_s23 + $0x171] sm:$0xff] }
  0x2a   : > { %573 = vrot.lane.b32.xlu1 %v5836_v61, %s5659_s24  ;;  %571 = vrot.lane.b32.xlu0 %v5850_v1, %s5659_s24  ;;  %v5126_v42 = vpack.c.bf16 %v446_v40, %v446_v40  ;;  %v5130_v56 = vpack.c.bf16 %v450_v54, %v450_v54  ;;  %v677_v63 = vld [vmem:[%s5712_s23 + $0xa] sm:$0xff]  ;;  %v676_v0 = vld [vmem:[%s5712_s23 + $0x2] sm:$0xff] }
  0x2b   : > { %417 = vst.msk [vmem:[#allocation3 + $0x78] sm:$0xf] %vm386_vm0, %v5097_v38  ;;  %v5131_v7 = vpack.c.bf16 %v676_v0, %v676_v0  ;;  %v680_v24 = vld [vmem:[%s5712_s23 + $0x32] sm:$0xff]  ;;  %v684_v40 = vld [vmem:[%s5712_s23 + $0x62] sm:$0xff] }
  0x2c   : > { %v683_v29 = vld [vmem:[%s5712_s23 + $0x52] sm:$0xff] }
  0x2e   : > { %577 = vrot.lane.b32.xlu1 %v5870_v8, %s5659_s24  ;;  %575 = vrot.lane.b32.xlu0 %v5878_v13, %s5659_s24 }
  0x32   : > { %581 = vrot.lane.b32.xlu1 %v5116_v20, %s5659_s24  ;;  %579 = vrot.lane.b32.xlu0 %v5115_v28, %s5659_s24  ;;  %v5095_v20 = vpack.c.bf16 %v254_v9, %v254_v9  ;;  %v257_v28 = vld [vmem:[%s5712_s23 + $0x170] sm:$0xff]  ;;  %v679_v9 = vld [vmem:[%s5712_s23 + $0x22] sm:$0xff] }
  0x33   : > { %v5134_v16 = vpack.c.bf16 %v679_v9, %v679_v9 }
  0x34   : > { %415 = vst.msk [vmem:[#allocation3 + $0x70] sm:$0xf] %vm386_vm0, %v5095_v20  ;;  %v681_v20 = vld [vmem:[%s5712_s23 + $0x3a] sm:$0xff] }
  0x36   : > { %585 = vrot.lane.b32.xlu1 %v5118_v37, %s5659_s24  ;;  %583 = vrot.lane.b32.xlu0 %v5117_v41, %s5659_s24  ;;  %v5098_v37 = vpack.c.bf16 %v257_v28, %v257_v28  ;;  %v445_v41 = vld [vmem:[%s5712_s23 + $0x139] sm:$0xff]  ;;  %v5135_v28 = vpack.c.bf16 %v680_v24, %v680_v24 }
  0x37   : > { %v5125_v44 = vpack.c.bf16 %v445_v41, %v445_v41  ;;  %v5976_v41 = vpack.c.bf16 %v684_v40, %v684_v40 }
  0x38   : > { %418 = vst.msk [vmem:[#allocation3 + $0x7c] sm:$0xf] %vm386_vm0, %v5098_v37  ;;  %v5967_v37 = vpack.c.bf16 %v683_v29, %v683_v29  ;;  %vm3879_vm0 = vcmask 257216  }
  0x3a   : > { %589 = vrot.lane.b32.xlu1 %v5120_v50, %s5659_s24  ;;  %587 = vrot.lane.b32.xlu0 %v5119_v55, %s5659_s24  ;;  %v5128_v50 = vpack.c.bf16 %v448_v45, %v448_v45  ;;  %v449_v55 = vld [vmem:[%s5712_s23 + $0x169] sm:$0xff] }
  0x3b   : > { %v5129_v60 = vpack.c.bf16 %v449_v55, %v449_v55 }
  0x3e   : > { %593 = vrot.lane.b32.xlu1 %v5122_v2, %s5659_s24  ;;  %591 = vrot.lane.b32.xlu0 %v5121_v12, %s5659_s24  ;;  %v5132_v2 = vpack.c.bf16 %v677_v63, %v677_v63  ;;  %v678_v12 = vld [vmem:[%s5712_s23 + $0x1a] sm:$0xff] }
  0x3f   : > { %v5133_v19 = vpack.c.bf16 %v678_v12, %v678_v12 }
  0x42   : > { %597 = vrot.lane.b32.xlu1 %v5124_v25, %s5659_s24  ;;  %595 = vrot.lane.b32.xlu0 %v5123_v36, %s5659_s24  ;;  %v5960_v25 = vpack.c.bf16 %v681_v20, %v681_v20  ;;  %v682_v36 = vld [vmem:[%s5712_s23 + $0x4a] sm:$0xff] }
  0x43   : > { %v5969_v38 = vpack.c.bf16 %v682_v36, %v682_v36 }
  0x46   : > { %601 = vrot.lane.b32.xlu1 %v5126_v42, %s5659_s24  ;;  %599 = vrot.lane.b32.xlu0 %v5125_v44, %s5659_s24  ;;  %v5615_v42 = vld [vmem:[%s7219_s1] sm:$0xff]  }
  0x4a   : > { %605 = vrot.lane.b32.xlu1 %v5128_v50, %s5659_s24  ;;  %603 = vrot.lane.b32.xlu0 %v5127_v51, %s5659_s24 }
  0x4e   : > { %609 = vrot.lane.b32.xlu1 %v5130_v56, %s5659_s24  ;;  %607 = vrot.lane.b32.xlu0 %v5129_v60, %s5659_s24 }
  0x52   : > { %806 = vrot.lane.b32.xlu1 %v5132_v2, %s5660_s25  ;;  %804 = vrot.lane.b32.xlu0 %v5131_v7, %s5660_s25 }
  0x56   : > { %810 = vrot.lane.b32.xlu1 %v5134_v16, %s5660_s25  ;;  %808 = vrot.lane.b32.xlu0 %v5133_v19, %s5660_s25 }
  0x5a   : > { %814 = vrot.lane.b32.xlu1 %v5960_v25, %s5660_s25  ;;  %812 = vrot.lane.b32.xlu0 %v5135_v28, %s5660_s25 }
  0x5e   : > { %818 = vrot.lane.b32.xlu1 %v5967_v37, %s5660_s25  ;;  %816 = vrot.lane.b32.xlu0 %v5969_v38, %s5660_s25 }
  0x62   : > { %1062 = vrot.lane.b32.xlu1 %v5757_v23, %s5661_s26  ;;  %820 = vrot.lane.b32.xlu0 %v5976_v41, %s5660_s25 }
  0x66   : > { %1066 = vrot.lane.b32.xlu1 %v5761_v26, %s5661_s26  ;;  %1064 = vrot.lane.b32.xlu0 %v5763_v27, %s5661_s26  ;;  %v5614_v27 = vld [vmem:[%s7219_s1 + $0x8] sm:$0xff]  }
  0x6a   : > { %1319 = vrot.lane.b32.xlu1 %v5717_v3, %s5662_s27  ;;  %1068 = vrot.lane.b32.xlu0 %v5771_v33, %s5661_s26  ;;  %v5613_v3 = vld [vmem:[%s7219_s1 + $0x10] ss:$0 sps:$4 sm:$0x33]  }
  0x6b   : > { %5594 = vmatprep.subr.msk.bf16.mxu0 %vm2665_vm1, %v5613_v3 }
  0x6e   : > { %1323 = vrot.lane.b32.xlu1 %v5732_v11, %s5662_s27  ;;  %1321 = vrot.lane.b32.xlu0 %v5723_v6, %s5662_s27  ;;  %v2667_v6 = vsel %vm2665_vm1, %v5613_v3, 0  ;;  %vm4047_vm1 = vcmask 261120  }
  0x6f   : > { %5521 = vmatpush3.bf16.msra.mxu0 %v2667_v6 }
  0x70   : > { %5522 = vmatprep.subr.bf16.mxu0 %v5614_v27 }
  0x72   : > { %1576 = vrot.lane.b32.xlu1 %v5133_v19, %s5663_s28  ;;  %1325 = vrot.lane.b32.xlu0 %v5730_v10, %s5662_s27 }
  0x73   : > { %5523 = vmatpush3.bf16.msra.mxu0 %v5614_v27 }
  0x74   : > { %5524 = vmatprep.subr.bf16.mxu0 %v5615_v42 }
  0x76   : > { %1580 = vrot.lane.b32.xlu1 %v5135_v28, %s5663_s28  ;;  %1578 = vrot.lane.b32.xlu0 %v5134_v16, %s5663_s28 }
  0x77   : > { %5525 = vmatpush3.bf16.msra.mxu0 %v5615_v42  ;;  %v4619_v42 = vld [vmem:[%s5712_s23 + $0x92] sm:$0xff] }
  0x7a   : > { %1834 = vrot.lane.b32.xlu1 %v5761_v26, %s5664_s29  ;;  %1582 = vrot.lane.b32.xlu0 %v5960_v25, %s5663_s28 }
  0x7e   : > { %1838 = vrot.lane.b32.xlu1 %v5773_v34, %s5664_s29  ;;  %1836 = vrot.lane.b32.xlu0 %v5771_v33, %s5664_s29 }
  0x82   : > { %2091 = vrot.lane.b32.xlu1 %v5732_v11, %s5665_s7  ;;  %1840 = vrot.lane.b32.xlu0 %v5775_v35, %s5664_s29 }
  0x84   : > { %v552_v23 = vpop.permute.xlu1 %551  ;;  %v548_v26 = vpop.permute.xlu0 %547 }
  0x85   : > { %646 = vst.msk [vmem:[#allocation3 + $0x8] sm:$0xf] %vm643_vm2, %v552_v23  ;;  %644 = vst.msk [vmem:[#allocation3] sm:$0xf] %vm643_vm2, %v548_v26 }
  0x86   : > { %2095 = vrot.lane.b32.xlu1 %v5742_v15, %s5665_s7  ;;  %2093 = vrot.lane.b32.xlu0 %v5730_v10, %s5665_s7 }
  0x88   : > { %v554_v11 = vpop.permute.xlu1 %553  ;;  %v550_v33 = vpop.permute.xlu0 %549 }
  0x89   : > { %647 = vst.msk [vmem:[#allocation3 + $0xc] sm:$0xf] %vm643_vm2, %v554_v11  ;;  %645 = vst.msk [vmem:[#allocation3 + $0x4] sm:$0xf] %vm643_vm2, %v550_v33  ;;  %v4620_v33 = vld [vmem:[%s5712_s23 + $0x9a] sm:$0xff] }
  0x8a   : > { %2348 = vrot.lane.b32.xlu1 %v5135_v28, %s5666_s12  ;;  %2097 = vrot.lane.b32.xlu0 %v5740_v14, %s5665_s7  ;;  %v4808_v28 = vld [vmem:[%s5712_s23 + $0x82] sm:$0xff] }
  0x8c   : > { %v558_v10 = vpop.permute.xlu1 %557  ;;  %v556_v44 = vpop.permute.xlu0 %555 }
  0x8d   : > { %649 = vst.msk [vmem:[#allocation3 + $0x14] sm:$0xf] %vm643_vm2, %v558_v10  ;;  %648 = vst.msk [vmem:[#allocation3 + $0x10] sm:$0xf] %vm643_vm2, %v556_v44  ;;  %v5237_v44 = vpack.c.bf16 %v4619_v42, %v4619_v42 }
  0x8e   : > { %2352 = vrot.lane.b32.xlu1 %v5969_v38, %s5666_s12  ;;  %2350 = vrot.lane.b32.xlu0 %v5960_v25, %s5666_s12 }
  0x90   : > { %v562_v45 = vpop.permute.xlu1 %561  ;;  %v560_v46 = vpop.permute.xlu0 %559 }
  0x91   : > { %651 = vst.msk [vmem:[#allocation3 + $0x1c] sm:$0xf] %vm643_vm2, %v562_v45  ;;  %650 = vst.msk [vmem:[#allocation3 + $0x18] sm:$0xf] %vm643_vm2, %v560_v46 }
  0x92   : > { %1070 = vrot.lane.b32.xlu1 %v5773_v34, %s5661_s26  ;;  %2354 = vrot.lane.b32.xlu0 %v5967_v37, %s5666_s12 }
  0x94   : > { %v566_v50 = vpop.permute.xlu1 %565  ;;  %v564_v51 = vpop.permute.xlu0 %563 }
  0x95   : > { %653 = vst.msk [vmem:[#allocation3 + $0x24] sm:$0xf] %vm643_vm2, %v566_v50  ;;  %652 = vst.msk [vmem:[#allocation3 + $0x20] sm:$0xf] %vm643_vm2, %v564_v51 }
  0x96   : > { %1074 = vrot.lane.b32.xlu1 %v5804_v47, %s5661_s26  ;;  %1072 = vrot.lane.b32.xlu0 %v5775_v35, %s5661_s26 }
  0x98   : > { %v570_v54 = vpop.permute.xlu1 %569  ;;  %v568_v55 = vpop.permute.xlu0 %567 }
  0x99   : > { %655 = vst.msk [vmem:[#allocation3 + $0x2c] sm:$0xf] %vm643_vm2, %v570_v54  ;;  %654 = vst.msk [vmem:[#allocation3 + $0x28] sm:$0xf] %vm643_vm2, %v568_v55 }
  0x9a   : > { %1327 = vrot.lane.b32.xlu1 %v5742_v15, %s5662_s27  ;;  %1076 = vrot.lane.b32.xlu0 %v5789_v43, %s5661_s26  ;;  %v4616_v15 = vld [vmem:[%s5712_s23 + $0x6a] sm:$0xff] }
  0x9c   : > { %v574_v34 = vpop.permute.xlu1 %573  ;;  %v572_v56 = vpop.permute.xlu0 %571 }
  0x9d   : > { %657 = vst.msk [vmem:[#allocation3 + $0x34] sm:$0xf] %vm643_vm2, %v574_v34  ;;  %656 = vst.msk [vmem:[#allocation3 + $0x30] sm:$0xf] %vm643_vm2, %v572_v56 }
  0x9e   : > { %1331 = vrot.lane.b32.xlu1 %v5755_v22, %s5662_s27  ;;  %1329 = vrot.lane.b32.xlu0 %v5740_v14, %s5662_s27  ;;  %v5234_v14 = vpack.c.bf16 %v4616_v15, %v4616_v15 }
  0xa0   : > { %v578_v35 = vpop.permute.xlu1 %577  ;;  %v576_v60 = vpop.permute.xlu0 %575 }
  0xa1   : > { %659 = vst.msk [vmem:[#allocation3 + $0x3c] sm:$0xf] %vm643_vm2, %v578_v35  ;;  %658 = vst.msk [vmem:[#allocation3 + $0x38] sm:$0xf] %vm643_vm2, %v576_v60  ;;  %v4812_v35 = vld [vmem:[%s5712_s23 + $0xb2] sm:$0xff]  ;;  %v4811_v60 = vld [vmem:[%s5712_s23 + $0xaa] sm:$0xff] }
  0xa2   : > { %1584 = vrot.lane.b32.xlu1 %v5969_v38, %s5663_s28  ;;  %1333 = vrot.lane.b32.xlu0 %v5753_v21, %s5662_s27 }
  0xa4   : > { %v582_v63 = vpop.permute.xlu1 %581  ;;  %v580_v0 = vpop.permute.xlu0 %579 }
  0xa5   : > { %661 = vst.msk [vmem:[#allocation3 + $0x44] sm:$0xf] %vm643_vm2, %v582_v63  ;;  %660 = vst.msk [vmem:[#allocation3 + $0x40] sm:$0xf] %vm643_vm2, %v580_v0  ;;  %v6183_v63 = vpack.c.bf16 %v4811_v60, %v4811_v60 }
  0xa6   : > { %1588 = vrot.lane.b32.xlu1 %v5976_v41, %s5663_s28  ;;  %1586 = vrot.lane.b32.xlu0 %v5967_v37, %s5663_s28 }
  0xa8   : > { %v586_v2 = vpop.permute.xlu1 %585  ;;  %v584_v7 = vpop.permute.xlu0 %583 }
  0xa9   : > { %663 = vst.msk [vmem:[#allocation3 + $0x4c] sm:$0xf] %vm643_vm2, %v586_v2  ;;  %662 = vst.msk [vmem:[#allocation3 + $0x48] sm:$0xf] %vm643_vm2, %v584_v7 }
  0xaa   : > { %1842 = vrot.lane.b32.xlu1 %v5804_v47, %s5664_s29  ;;  %1590 = vrot.lane.b32.xlu0 %v5234_v14, %s5663_s28 }
  0xac   : > { %v590_v9 = vpop.permute.xlu1 %589  ;;  %v588_v12 = vpop.permute.xlu0 %587 }
  0xad   : > { %665 = vst.msk [vmem:[#allocation3 + $0x54] sm:$0xf] %vm643_vm2, %v590_v9  ;;  %664 = vst.msk [vmem:[#allocation3 + $0x50] sm:$0xf] %vm643_vm2, %v588_v12 }
  0xae   : > { %1846 = vrot.lane.b32.xlu1 %v5808_v49, %s5664_s29  ;;  %1844 = vrot.lane.b32.xlu0 %v5789_v43, %s5664_s29  ;;  %v4807_v43 = vld [vmem:[%s5712_s23 + $0x7a] sm:$0xff] }
  0xb0   : > { %v594_v16 = vpop.permute.xlu1 %593  ;;  %v592_v19 = vpop.permute.xlu0 %591 }
  0xb1   : > { %667 = vst.msk [vmem:[#allocation3 + $0x5c] sm:$0xf] %vm643_vm2, %v594_v16  ;;  %666 = vst.msk [vmem:[#allocation3 + $0x58] sm:$0xf] %vm643_vm2, %v592_v19  ;;  %v4558_v16 = vld [vmem:[%s5712_s23 + $0xb1] sm:$0xff]  ;;  %v4557_v19 = vld [vmem:[%s5712_s23 + $0xa9] sm:$0xff] }
  0xb2   : > { %2099 = vrot.lane.b32.xlu1 %v5755_v22, %s5665_s7  ;;  %1848 = vrot.lane.b32.xlu0 %v5806_v48, %s5664_s29  ;;  %v5329_v22 = vpack.c.bf16 %v4807_v43, %v4807_v43  ;;  %v5208_v43 = vpack.c.bf16 %v4558_v16, %v4558_v16 }
  0xb4   : > { %v598_v47 = vpop.permute.xlu1 %597  ;;  %v596_v20 = vpop.permute.xlu0 %595 }
  0xb5   : > { %669 = vst.msk [vmem:[#allocation3 + $0x64] sm:$0xf] %vm643_vm2, %v598_v47  ;;  %668 = vst.msk [vmem:[#allocation3 + $0x60] sm:$0xf] %vm643_vm2, %v596_v20 }
  0xb6   : > { %2103 = vrot.lane.b32.xlu1 %v5782_v39, %s5665_s7  ;;  %2101 = vrot.lane.b32.xlu0 %v5753_v21, %s5665_s7  ;;  %v5330_v21 = vpack.c.bf16 %v4808_v28, %v4808_v28 }
  0xb8   : > { %v602_v24 = vpop.permute.xlu1 %601  ;;  %v600_v25 = vpop.permute.xlu0 %599 }
  0xb9   : > { %671 = vst.msk [vmem:[#allocation3 + $0x6c] sm:$0xf] %vm643_vm2, %v602_v24  ;;  %670 = vst.msk [vmem:[#allocation3 + $0x68] sm:$0xf] %vm643_vm2, %v600_v25  ;;  %v5207_v24 = vpack.c.bf16 %v4557_v19, %v4557_v19  ;;  %v4559_v25 = vld [vmem:[%s5712_s23 + $0xc1] sm:$0xff] }
  0xba   : > { %2356 = vrot.lane.b32.xlu1 %v5976_v41, %s5666_s12  ;;  %2105 = vrot.lane.b32.xlu0 %v5768_v31, %s5665_s7 }
  0xbc   : > { %v606_v29 = vpop.permute.xlu1 %605  ;;  %v604_v36 = vpop.permute.xlu0 %603 }
  0xbd   : > { %673 = vst.msk [vmem:[#allocation3 + $0x74] sm:$0xf] %vm643_vm2, %v606_v29  ;;  %672 = vst.msk [vmem:[#allocation3 + $0x70] sm:$0xf] %vm643_vm2, %v604_v36  ;;  %v5209_v36 = vpack.c.bf16 %v4559_v25, %v4559_v25 }
  0xbe   : > { %2360 = vrot.lane.b32.xlu1 %v5329_v22, %s5666_s12  ;;  %2358 = vrot.lane.b32.xlu0 %v5234_v14, %s5666_s12 }
  0xc0   : > { %v610_v37 = vpop.permute.xlu1 %609  ;;  %v608_v38 = vpop.permute.xlu0 %607 }
  0xc1   : > { %675 = vst.msk [vmem:[#allocation3 + $0x7c] sm:$0xf] %vm643_vm2, %v610_v37  ;;  %674 = vst.msk [vmem:[#allocation3 + $0x78] sm:$0xf] %vm643_vm2, %v608_v38  ;;  %vm4289_vm2 = vcmask 130048  }
  0xc2   : > { %822 = vrot.lane.b32.xlu1 %v5234_v14, %s5660_s25  ;;  %2362 = vrot.lane.b32.xlu0 %v5330_v21, %s5666_s12 }
  0xc4   : > { %v807_v40 = vpop.permute.xlu1 %806  ;;  %v805_v41 = vpop.permute.xlu0 %804 }
  0xc5   : > { %902 = vst.msk [vmem:[#allocation3 + $0x4] sm:$0xf] %vm900_vm3, %v807_v40  ;;  %901 = vst.msk [vmem:[#allocation3] sm:$0xf] %vm900_vm3, %v805_v41  ;;  %v4624_v40 = vld [vmem:[%s5712_s23 + $0xca] sm:$0xff]  ;;  %v4623_v41 = vld [vmem:[%s5712_s23 + $0xc2] sm:$0xff] }
  0xc6   : > { %826 = vrot.lane.b32.xlu1 %v5330_v21, %s5660_s25  ;;  %824 = vrot.lane.b32.xlu0 %v5329_v22, %s5660_s25 }
  0xc8   : > { %v811_v3 = vpop.permute.xlu1 %810  ;;  %v809_v6 = vpop.permute.xlu0 %808 }
  0xc9   : > { %904 = vst.msk [vmem:[#allocation3 + $0xc] sm:$0xf] %vm900_vm3, %v811_v3  ;;  %903 = vst.msk [vmem:[#allocation3 + $0x8] sm:$0xf] %vm900_vm3, %v809_v6 }
  0xca   : > { %1080 = vrot.lane.b32.xlu1 %v5806_v48, %s5661_s26  ;;  %1078 = vrot.lane.b32.xlu0 %v5808_v49, %s5661_s26 }
  0xcc   : > { %v815_v23 = vpop.permute.xlu1 %814  ;;  %v813_v26 = vpop.permute.xlu0 %812 }
  0xcd   : > { %906 = vst.msk [vmem:[#allocation3 + $0x14] sm:$0xf] %vm900_vm3, %v815_v23  ;;  %905 = vst.msk [vmem:[#allocation3 + $0x10] sm:$0xf] %vm900_vm3, %v813_v26  ;;  %v5242_v23 = vpack.c.bf16 %v4624_v40, %v4624_v40  ;;  %v5241_v26 = vpack.c.bf16 %v4623_v41, %v4623_v41 }
  0xce   : > { %1084 = vrot.lane.b32.xlu1 %v5816_v52, %s5661_s26  ;;  %1082 = vrot.lane.b32.xlu0 %v5818_v53, %s5661_s26 }
  0xd0   : > { %v819_v27 = vpop.permute.xlu1 %818  ;;  %v817_v11 = vpop.permute.xlu0 %816 }
  0xd1   : > { %908 = vst.msk [vmem:[#allocation3 + $0x1c] sm:$0xf] %vm900_vm3, %v819_v27  ;;  %907 = vst.msk [vmem:[#allocation3 + $0x18] sm:$0xf] %vm900_vm3, %v817_v11 }
  0xd2   : > { %1337 = vrot.lane.b32.xlu1 %v5768_v31, %s5662_s27  ;;  %1335 = vrot.lane.b32.xlu0 %v5782_v39, %s5662_s27  ;;  %v5238_v39 = vpack.c.bf16 %v4620_v33, %v4620_v33 }
  0xd4   : > { %v1063_v48 = vpop.permute.xlu1 %1062  ;;  %v821_v49 = vpop.permute.xlu0 %820 }
  0xd5   : > { %1159 = vst.msk [vmem:[#allocation3] sm:$0xf] %vm1158_vm4, %v1063_v48 }
  0xd6   : > { %909 = vst.msk [vmem:[#allocation3 + $0x20] sm:$0xf] %vm900_vm3, %v821_v49  ;;  %1341 = vrot.lane.b32.xlu1 %v5836_v61, %s5662_s27  ;;  %1339 = vrot.lane.b32.xlu0 %v5850_v1, %s5662_s27 }
  0xd8   : > { %v1067_v10 = vpop.permute.xlu1 %1066  ;;  %v1065_v31 = vpop.permute.xlu0 %1064 }
  0xd9   : > { %1161 = vst.msk [vmem:[#allocation3 + $0x8] sm:$0xf] %vm1158_vm4, %v1067_v10  ;;  %1160 = vst.msk [vmem:[#allocation3 + $0x4] sm:$0xf] %vm1158_vm4, %v1065_v31  ;;  %v4752_v10 = vld [vmem:[%s5712_s23 + $0xe1] sm:$0xff]  ;;  %v4751_v31 = vld [vmem:[%s5712_s23 + $0xd9] sm:$0xff] }
  0xda   : > { %1594 = vrot.lane.b32.xlu1 %v5330_v21, %s5663_s28  ;;  %1592 = vrot.lane.b32.xlu0 %v5329_v22, %s5663_s28 }
  0xdc   : > { %v1320_v45 = vpop.permute.xlu1 %1319  ;;  %v1069_v46 = vpop.permute.xlu0 %1068 }
  0xdd   : > { %1416 = vst.msk [vmem:[#allocation3] sm:$0xf] %vm1415_vm5, %v1320_v45 }
  0xde   : > { %1162 = vst.msk [vmem:[#allocation3 + $0xc] sm:$0xf] %vm1158_vm4, %v1069_v46  ;;  %1598 = vrot.lane.b32.xlu1 %v5238_v39, %s5663_s28  ;;  %1596 = vrot.lane.b32.xlu0 %v5237_v44, %s5663_s28 }
  0xe0   : > { %v1324_v50 = vpop.permute.xlu1 %1323  ;;  %v1322_v51 = vpop.permute.xlu0 %1321 }
  0xe1   : > { %1418 = vst.msk [vmem:[#allocation3 + $0x8] sm:$0xf] %vm1415_vm5, %v1324_v50  ;;  %1417 = vst.msk [vmem:[#allocation3 + $0x4] sm:$0xf] %vm1415_vm5, %v1322_v51  ;;  %v4816_v50 = vld [vmem:[%s5712_s23 + $0xe2] sm:$0xff]  ;;  %v4815_v51 = vld [vmem:[%s5712_s23 + $0xda] sm:$0xff] }
  0xe2   : > { %1852 = vrot.lane.b32.xlu1 %v5816_v52, %s5664_s29  ;;  %1850 = vrot.lane.b32.xlu0 %v5818_v53, %s5664_s29 }
  0xe4   : > { %v1577_v54 = vpop.permute.xlu1 %1576  ;;  %v1326_v55 = vpop.permute.xlu0 %1325 }
  0xe5   : > { %1673 = vst.msk [vmem:[#allocation3] sm:$0xf] %vm1672_vm6, %v1577_v54 }
  0xe6   : > { %1419 = vst.msk [vmem:[#allocation3 + $0xc] sm:$0xf] %vm1415_vm5, %v1326_v55  ;;  %1856 = vrot.lane.b32.xlu1 %v5829_v57, %s5664_s29  ;;  %1854 = vrot.lane.b32.xlu0 %v5831_v58, %s5664_s29 }
  0xe8   : > { %v1581_v34 = vpop.permute.xlu1 %1580  ;;  %v1579_v52 = vpop.permute.xlu0 %1578 }
  0xe9   : > { %1675 = vst.msk [vmem:[#allocation3 + $0x8] sm:$0xf] %vm1672_vm6, %v1581_v34  ;;  %1674 = vst.msk [vmem:[#allocation3 + $0x4] sm:$0xf] %vm1672_vm6, %v1579_v52  ;;  %v5338_v34 = vpack.c.bf16 %v4816_v50, %v4816_v50  ;;  %v5337_v52 = vpack.c.bf16 %v4815_v51, %v4815_v51  ;;  %v4504_v50 = vld [vmem:[%s5712_s23 + $0x128] sm:$0xff]  ;;  %v4503_v51 = vld [vmem:[%s5712_s23 + $0x120] sm:$0xff] }
  0xea   : > { %2109 = vrot.lane.b32.xlu1 %v5836_v61, %s5665_s7  ;;  %2107 = vrot.lane.b32.xlu0 %v5850_v1, %s5665_s7  ;;  %v6181_v1 = vpack.c.bf16 %v4812_v35, %v4812_v35 }
  0xec   : > { %v1835_v53 = vpop.permute.xlu1 %1834  ;;  %v1583_v56 = vpop.permute.xlu0 %1582 }
  0xed   : > { %1931 = vst.msk [vmem:[#allocation3] sm:$0xf] %vm1930_vm7, %v1835_v53 }
  0xee   : > { %1676 = vst.msk [vmem:[#allocation3 + $0xc] sm:$0xf] %vm1672_vm6, %v1583_v56  ;;  %2113 = vrot.lane.b32.xlu1 %v5870_v8, %s5665_s7  ;;  %2111 = vrot.lane.b32.xlu0 %v5878_v13, %s5665_s7 }
  0xf0   : > { %v1839_v15 = vpop.permute.xlu1 %1838  ;;  %v1837_v61 = vpop.permute.xlu0 %1836 }
  0xf1   : > { %1933 = vst.msk [vmem:[#allocation3 + $0x8] sm:$0xf] %vm1930_vm7, %v1839_v15  ;;  %1932 = vst.msk [vmem:[#allocation3 + $0x4] sm:$0xf] %vm1930_vm7, %v1837_v61 }
  0xf2   : > { %2366 = vrot.lane.b32.xlu1 %v5238_v39, %s5666_s12  ;;  %2364 = vrot.lane.b32.xlu0 %v5237_v44, %s5666_s12 }
  0xf4   : > { %v2092_v8 = vpop.permute.xlu1 %2091  ;;  %v1841_v0 = vpop.permute.xlu0 %1840 }
  0xf5   : > { %2188 = vst.msk [vmem:[#allocation3] sm:$0xf] %vm2187_vm8, %v2092_v8 }
  0xf6   : > { %1934 = vst.msk [vmem:[#allocation3 + $0xc] sm:$0xf] %vm1930_vm7, %v1841_v0  ;;  %2370 = vrot.lane.b32.xlu1 %v6181_v1, %s5666_s12  ;;  %2368 = vrot.lane.b32.xlu0 %v6183_v63, %s5666_s12 }
  0xf8   : > { %v2096_v13 = vpop.permute.xlu1 %2095  ;;  %v2094_v14 = vpop.permute.xlu0 %2093 }
  0xf9   : > { %2190 = vst.msk [vmem:[#allocation3 + $0x8] sm:$0xf] %vm2187_vm8, %v2096_v13  ;;  %2189 = vst.msk [vmem:[#allocation3 + $0x4] sm:$0xf] %vm2187_vm8, %v2094_v14 }
  0xfa   : > { %830 = vrot.lane.b32.xlu1 %v5238_v39, %s5660_s25  ;;  %828 = vrot.lane.b32.xlu0 %v5237_v44, %s5660_s25  ;;  %v5305_v44 = vpack.c.bf16 %v4751_v31, %v4751_v31  ;;  %v4502_v31 = vld [vmem:[%s5712_s23 + $0x110] sm:$0xff] }
  0xfc   : > { %v2349_v2 = vpop.permute.xlu1 %2348  ;;  %v2098_v7 = vpop.permute.xlu0 %2097 }
  0xfd   : > { %2445 = vst.msk [vmem:[#allocation3] sm:$0xf] %vm2444_vm9, %v2349_v2 }
  0xfe   : > { %2191 = vst.msk [vmem:[#allocation3 + $0xc] sm:$0xf] %vm2187_vm8, %v2098_v7  ;;  %834 = vrot.lane.b32.xlu1 %v6181_v1, %s5660_s25  ;;  %832 = vrot.lane.b32.xlu0 %v6183_v63, %s5660_s25 }
 0x100   : > { %v2353_v9 = vpop.permute.xlu1 %2352  ;;  %v2351_v12 = vpop.permute.xlu0 %2350 }
 0x101   : > { %2447 = vst.msk [vmem:[#allocation3 + $0x8] sm:$0xf] %vm2444_vm9, %v2353_v9  ;;  %2446 = vst.msk [vmem:[#allocation3 + $0x4] sm:$0xf] %vm2444_vm9, %v2351_v12 }
 0x102   : > { %1088 = vrot.lane.b32.xlu1 %v5829_v57, %s5661_s26  ;;  %1086 = vrot.lane.b32.xlu0 %v5831_v58, %s5661_s26  ;;  %v4560_v57 = vld [vmem:[%s5712_s23 + $0xc9] sm:$0xff] }
 0x103   : > { %v5210_v29 = vpack.c.bf16 %v4560_v57, %v4560_v57 }
 0x104   : > { %v1071_v47 = vpop.permute.xlu1 %1070  ;;  %v2355_v20 = vpop.permute.xlu0 %2354 }
 0x105   : > { %1163 = vst.msk [vmem:[#allocation3 + $0x10] sm:$0xf] %vm1158_vm4, %v1071_v47  ;;  %v4628_v47 = vld [vmem:[%s5712_s23 + $0xfa] sm:$0xff] }
 0x106   : > { %2448 = vst.msk [vmem:[#allocation3 + $0xc] sm:$0xf] %vm2444_vm9, %v2355_v20  ;;  %1092 = vrot.lane.b32.xlu1 %v5833_v59, %s5661_s26  ;;  %1090 = vrot.lane.b32.xlu0 %v5842_v62, %s5661_s26  ;;  %v4627_v20 = vld [vmem:[%s5712_s23 + $0xf2] sm:$0xff]  ;;  %v6315_v57 = vpack.c.bf16 %v4628_v47, %v4628_v47 }
 0x107   : > { %v6317_v25 = vpack.c.bf16 %v4627_v20, %v4627_v20  ;;  %v4695_v47 = vld [vmem:[%s5712_s23 + $0x138] sm:$0xff] }
 0x108   : > { %v1075_v22 = vpop.permute.xlu1 %1074  ;;  %v1073_v58 = vpop.permute.xlu0 %1072  ;;  %v5616_v28 = vld [vmem:[#allocation3] sm:$0xff]  }
 0x109   : > { %1165 = vst.msk [vmem:[#allocation3 + $0x18] sm:$0xf] %vm1158_vm4, %v1075_v22  ;;  %1164 = vst.msk [vmem:[#allocation3 + $0x14] sm:$0xf] %vm1158_vm4, %v1073_v58  ;;  %5526 = vmatprep.mubr.msk.bf16.mxu0 %vm2616_vm10, %v5616_v28 }
 0x10a   : > { %1345 = vrot.lane.b32.xlu1 %v5208_v43, %s5662_s27  ;;  %1343 = vrot.lane.b32.xlu0 %v5207_v24, %s5662_s27 }
 0x10c   : > { %v1328_v21 = vpop.permute.xlu1 %1327  ;;  %v1077_v37 = vpop.permute.xlu0 %1076 }
 0x10d   : > { %v5617_v38 = vld [vmem:[#allocation3 + $0x8] sm:$0xff]   ;;  %1420 = vst.msk [vmem:[#allocation3 + $0x10] sm:$0xf] %vm1415_vm5, %v1328_v21  ;;  %v4756_v21 = vld [vmem:[%s5712_s23 + $0x111] sm:$0xff] }
 0x10e   : > { %1166 = vst.msk [vmem:[#allocation3 + $0x1c] sm:$0xf] %vm1158_vm4, %v1077_v37  ;;  %1349 = vrot.lane.b32.xlu1 %v5210_v29, %s5662_s27  ;;  %1347 = vrot.lane.b32.xlu0 %v5209_v36, %s5662_s27  ;;  %v4755_v37 = vld [vmem:[%s5712_s23 + $0x109] sm:$0xff] }
 0x10f   : > { %5527 = vmatmul.mubr.msk.bf16.vlgmr.msra.gmra.mxu0 %vm2616_vm10, %v5617_v38 }
 0x110   : > { %v1332_v3 = vpop.permute.xlu1 %1331  ;;  %v1330_v6 = vpop.permute.xlu0 %1329 }
 0x111   : > { %1422 = vst.msk [vmem:[#allocation3 + $0x18] sm:$0xf] %vm1415_vm5, %v1332_v3  ;;  %1421 = vst.msk [vmem:[#allocation3 + $0x14] sm:$0xf] %vm1415_vm5, %v1330_v6  ;;  %v4820_v6 = vld [vmem:[%s5712_s23 + $0x112] sm:$0xff] }
 0x112   : > { %1602 = vrot.lane.b32.xlu1 %v6181_v1, %s5663_s28  ;;  %1600 = vrot.lane.b32.xlu0 %v6183_v63, %s5663_s28 }
 0x114   : > { %v1585_v27 = vpop.permute.xlu1 %1584  ;;  %v1334_v11 = vpop.permute.xlu0 %1333 }
 0x115   : > { %1677 = vst.msk [vmem:[#allocation3 + $0x10] sm:$0xf] %vm1672_vm6, %v1585_v27 }
 0x116   : > { %1423 = vst.msk [vmem:[#allocation3 + $0x1c] sm:$0xf] %vm1415_vm5, %v1334_v11  ;;  %1606 = vrot.lane.b32.xlu1 %v5242_v23, %s5663_s28  ;;  %1604 = vrot.lane.b32.xlu0 %v5241_v26, %s5663_s28  ;;  %v6414_v11 = vpack.c.bf16 %v4820_v6, %v4820_v6 }
 0x118   : > { %v1589_v48 = vpop.permute.xlu1 %1588  ;;  %v1587_v49 = vpop.permute.xlu0 %1586 }
 0x119   : > { %1679 = vst.msk [vmem:[#allocation3 + $0x18] sm:$0xf] %vm1672_vm6, %v1589_v48  ;;  %1678 = vst.msk [vmem:[#allocation3 + $0x14] sm:$0xf] %vm1672_vm6, %v1587_v49 }
 0x11a   : > { %1860 = vrot.lane.b32.xlu1 %v5833_v59, %s5664_s29  ;;  %1858 = vrot.lane.b32.xlu0 %v5842_v62, %s5664_s29  ;;  %v5306_v62 = vpack.c.bf16 %v4752_v10, %v4752_v10 }
 0x11c   : > { %v1843_v33 = vpop.permute.xlu1 %1842  ;;  %v1591_v42 = vpop.permute.xlu0 %1590 }
 0x11d   : > { %1935 = vst.msk [vmem:[#allocation3 + $0x10] sm:$0xf] %vm1930_vm7, %v1843_v33 }
 0x11e   : > { %1680 = vst.msk [vmem:[#allocation3 + $0x1c] sm:$0xf] %vm1672_vm6, %v1591_v42  ;;  %1864 = vrot.lane.b32.xlu1 %v5859_v4, %s5664_s29  ;;  %1862 = vrot.lane.b32.xlu0 %v5861_v5, %s5664_s29 }
 0x120   : > { %v1847_v59 = vpop.permute.xlu1 %1846  ;;  %v1845_v39 = vpop.permute.xlu0 %1844 }
 0x121   : > { %1937 = vst.msk [vmem:[#allocation3 + $0x18] sm:$0xf] %vm1930_vm7, %v1847_v59  ;;  %1936 = vst.msk [vmem:[#allocation3 + $0x14] sm:$0xf] %vm1930_vm7, %v1845_v39  ;;  %v4501_v59 = vld [vmem:[%s5712_s23 + $0x108] sm:$0xff] }
 0x122   : > { %2117 = vrot.lane.b32.xlu1 %v5210_v29, %s5665_s7  ;;  %2115 = vrot.lane.b32.xlu0 %v5209_v36, %s5665_s7  ;;  %v5667_v36 = vmov 0.0  }
 0x123   : > { %2867 = vst.msk [vmem:[#allocation2 + $0x18] sm:$0xff] %vm2862_vm11, %v5667_v36  ;;  %2863 = vst.msk [vmem:[#allocation2] sm:$0xff] %vm2862_vm11, %v5667_v36 }
 0x124   : > { %v2100_v45 = vpop.permute.xlu1 %2099  ;;  %v1849_v46 = vpop.permute.xlu0 %1848  ;;  %2864 = vst.msk [vmem:[#allocation2 + $0x8] sm:$0xff] %vm2862_vm11, %v5667_v36  ;;  %2868 = vst.msk [vmem:[#allocation2 + $0x20] sm:$0xff] %vm2862_vm11, %v5667_v36 }
 0x125   : > { %2192 = vst.msk [vmem:[#allocation3 + $0x10] sm:$0xf] %vm2187_vm8, %v2100_v45  ;;  %v5184_v45 = vpack.c.bf16 %v4502_v31, %v4502_v31 }
 0x126   : > { %1938 = vst.msk [vmem:[#allocation3 + $0x1c] sm:$0xf] %vm1930_vm7, %v1849_v46  ;;  %2121 = vrot.lane.b32.xlu1 %v5306_v62, %s5665_s7  ;;  %2119 = vrot.lane.b32.xlu0 %v5305_v44, %s5665_s7  ;;  %v5183_v46 = vpack.c.bf16 %v4501_v59, %v4501_v59 }
 0x127   : > { %2870 = vst.msk [vmem:[#allocation2 + $0x30] sm:$0xff] %vm2862_vm11, %v5667_v36  ;;  %2871 = vst.msk [vmem:[#allocation2 + $0x38] sm:$0xff] %vm2862_vm11, %v5667_v36 }
 0x128   : > { %v2104_v54 = vpop.permute.xlu1 %2103  ;;  %v2102_v55 = vpop.permute.xlu0 %2101  ;;  %2873 = vst.msk [vmem:[#allocation2 + $0x48] sm:$0xff] %vm2862_vm11, %v5667_v36  ;;  %2874 = vst.msk [vmem:[#allocation2 + $0x50] sm:$0xff] %vm2862_vm11, %v5667_v36 }
 0x129   : > { %2194 = vst.msk [vmem:[#allocation3 + $0x18] sm:$0xf] %vm2187_vm8, %v2104_v54  ;;  %2193 = vst.msk [vmem:[#allocation3 + $0x14] sm:$0xf] %vm2187_vm8, %v2102_v55 }
 0x12a   : > { %2374 = vrot.lane.b32.xlu1 %v5242_v23, %s5666_s12  ;;  %2372 = vrot.lane.b32.xlu0 %v5241_v26, %s5666_s12  ;;  %2876 = vst.msk [vmem:[#allocation2 + $0x60] sm:$0xff] %vm2862_vm11, %v5667_v36  ;;  %2877 = vst.msk [vmem:[#allocation2 + $0x68] sm:$0xff] %vm2862_vm11, %v5667_v36 }
 0x12b   : > { %2879 = vst.msk [vmem:[#allocation2 + $0x78] sm:$0xff] %vm2862_vm11, %v5667_v36  ;;  %2880 = vst.msk [vmem:[#allocation2 + $0x80] sm:$0xff] %vm2862_vm11, %v5667_v36 }
 0x12c   : > { %v2357_v53 = vpop.permute.xlu1 %2356  ;;  %v2106_v56 = vpop.permute.xlu0 %2105  ;;  %2882 = vst.msk [vmem:[#allocation2 + $0x90] sm:$0xff] %vm2862_vm11, %v5667_v36  ;;  %2883 = vst.msk [vmem:[#allocation2 + $0x98] sm:$0xff] %vm2862_vm11, %v5667_v36 }
 0x12d   : > { %2449 = vst.msk [vmem:[#allocation3 + $0x10] sm:$0xf] %vm2444_vm9, %v2357_v53  ;;  %v5185_v53 = vpack.c.bf16 %v4503_v51, %v4503_v51 }
 0x12e   : > { %2195 = vst.msk [vmem:[#allocation3 + $0x1c] sm:$0xf] %vm2187_vm8, %v2106_v56  ;;  %2378 = vrot.lane.b32.xlu1 %v5338_v34, %s5666_s12  ;;  %2376 = vrot.lane.b32.xlu0 %v5337_v52, %s5666_s12 }
 0x12f   : > { %2885 = vst.msk [vmem:[#allocation2 + $0xa8] sm:$0xff] %vm2862_vm11, %v5667_v36  ;;  %2886 = vst.msk [vmem:[#allocation2 + $0xb0] sm:$0xff] %vm2862_vm11, %v5667_v36 }
 0x130   : > { %v2361_v35 = vpop.permute.xlu1 %2360  ;;  %v2359_v60 = vpop.permute.xlu0 %2358  ;;  %2888 = vst.msk [vmem:[#allocation2 + $0xc0] sm:$0xff] %vm2862_vm11, %v5667_v36  ;;  %2889 = vst.msk [vmem:[#allocation2 + $0xc8] sm:$0xff] %vm2862_vm11, %v5667_v36 }
 0x131   : > { %2451 = vst.msk [vmem:[#allocation3 + $0x18] sm:$0xf] %vm2444_vm9, %v2361_v35  ;;  %2450 = vst.msk [vmem:[#allocation3 + $0x14] sm:$0xf] %vm2444_vm9, %v2359_v60  ;;  %v4568_v60 = vld [vmem:[%s5712_s23 + $0x129] sm:$0xff] }
 0x132   : > { %838 = vrot.lane.b32.xlu1 %v5242_v23, %s5660_s25  ;;  %836 = vrot.lane.b32.xlu0 %v5241_v26, %s5660_s25  ;;  %2891 = vst.msk [vmem:[#allocation2 + $0xd8] sm:$0xff] %vm2862_vm11, %v5667_v36  ;;  %2892 = vst.msk [vmem:[#allocation2 + $0xe0] sm:$0xff] %vm2862_vm11, %v5667_v36  ;;  %v4819_v23 = vld [vmem:[%s5712_s23 + $0x10a] sm:$0xff] }
 0x133   : > { %2894 = vst.msk [vmem:[#allocation2 + $0xf0] sm:$0xff] %vm2862_vm11, %v5667_v36  ;;  %2895 = vst.msk [vmem:[#allocation2 + $0xf8] sm:$0xff] %vm2862_vm11, %v5667_v36  ;;  %v6416_v48 = vpack.c.bf16 %v4819_v23, %v4819_v23 }
 0x134   : > { %v823_v15 = vpop.permute.xlu1 %822  ;;  %v2363_v61 = vpop.permute.xlu0 %2362  ;;  %2897 = vst.msk [vmem:[#allocation2 + $0x108] sm:$0xff] %vm2862_vm11, %v5667_v36  ;;  %2898 = vst.msk [vmem:[#allocation2 + $0x110] sm:$0xff] %vm2862_vm11, %v5667_v36 }
 0x135   : > { %910 = vst.msk [vmem:[#allocation3 + $0x24] sm:$0xf] %vm900_vm3, %v823_v15  ;;  %v4567_v15 = vld [vmem:[%s5712_s23 + $0x121] sm:$0xff] }
 0x136   : > { %2452 = vst.msk [vmem:[#allocation3 + $0x1c] sm:$0xf] %vm2444_vm9, %v2363_v61  ;;  %842 = vrot.lane.b32.xlu1 %v5338_v34, %s5660_s25  ;;  %840 = vrot.lane.b32.xlu0 %v5337_v52, %s5660_s25 }
 0x137   : > { %2900 = vst.msk [vmem:[#allocation2 + $0x120] sm:$0xff] %vm2862_vm11, %v5667_v36  ;;  %2901 = vst.msk [vmem:[#allocation2 + $0x128] sm:$0xff] %vm2862_vm11, %v5667_v36 }
 0x138   : > { %v827_v1 = vpop.permute.xlu1 %826  ;;  %v825_v63 = vpop.permute.xlu0 %824  ;;  %v5618_v8 = vld [vmem:[#allocation3 + $0x10] sm:$0xff]   ;;  %2903 = vst.msk [vmem:[#allocation2 + $0x138] sm:$0xff] %vm2862_vm11, %v5667_v36  ;;  %2904 = vst.msk [vmem:[#allocation2 + $0x140] sm:$0xff] %vm2862_vm11, %v5667_v36 }
 0x139   : > { %912 = vst.msk [vmem:[#allocation3 + $0x2c] sm:$0xf] %vm900_vm3, %v827_v1  ;;  %911 = vst.msk [vmem:[#allocation3 + $0x28] sm:$0xf] %vm900_vm3, %v825_v63  ;;  %5530 = vmatprep.mubr.msk.bf16.mxu0 %vm2616_vm10, %v5618_v8  ;;  %v5218_v63 = vpack.c.bf16 %v4568_v60, %v4568_v60  ;;  %v5217_v8 = vpack.c.bf16 %v4567_v15, %v4567_v15 }
 0x13a   : > { %1096 = vrot.lane.b32.xlu1 %v5859_v4, %s5661_s26  ;;  %1094 = vrot.lane.b32.xlu0 %v5861_v5, %s5661_s26  ;;  %v4564_v4 = vld [vmem:[%s5712_s23 + $0xf9] sm:$0xff]  ;;  %v4563_v5 = vld [vmem:[%s5712_s23 + $0xf1] sm:$0xff]  ;;  %2906 = vst.msk [vmem:[#allocation2 + $0x150] sm:$0xff] %vm2862_vm11, %v5667_v36  ;;  %2907 = vst.msk [vmem:[#allocation2 + $0x158] sm:$0xff] %vm2862_vm11, %v5667_v36 }
 0x13b   : > { %v6299_v9 = vpack.c.bf16 %v4564_v4, %v4564_v4  ;;  %v6301_v12 = vpack.c.bf16 %v4563_v5, %v4563_v5  ;;  %2909 = vst.msk [vmem:[#allocation2 + $0x168] sm:$0xff] %vm2862_vm11, %v5667_v36  ;;  %2910 = vst.msk [vmem:[#allocation2 + $0x170] sm:$0xff] %vm2862_vm11, %v5667_v36  ;;  %v4631_v4 = vld [vmem:[%s5712_s23 + $0x122] sm:$0xff] }
 0x13c   : > { %v1081_v0 = vpop.permute.xlu1 %1080  ;;  %v1079_v13 = vpop.permute.xlu0 %1078  ;;  %2912 = vst.msk [vmem:[#allocation2 + $0x180] sm:$0xff] %vm2862_vm11, %v5667_v36  ;;  %2913 = vst.msk [vmem:[#allocation2 + $0x188] sm:$0xff] %vm2862_vm11, %v5667_v36 }
 0x13d   : > { %v5619_v14 = vld [vmem:[#allocation3 + $0x18] sm:$0xff]   ;;  %1168 = vst.msk [vmem:[#allocation3 + $0x24] sm:$0xf] %vm1158_vm4, %v1081_v0  ;;  %1167 = vst.msk [vmem:[#allocation3 + $0x20] sm:$0xf] %vm1158_vm4, %v1079_v13 }
 0x13e   : > { %1100 = vrot.lane.b32.xlu1 %v5881_v17, %s5661_s26  ;;  %1098 = vrot.lane.b32.xlu0 %v5883_v18, %s5661_s26  ;;  %2866 = vst.msk [vmem:[#allocation2 + $0x10] sm:$0x1] %vm2865_vm12, %v5667_v36  ;;  %2869 = vst.msk [vmem:[#allocation2 + $0x28] sm:$0x1] %vm2865_vm12, %v5667_v36 }
 0x13f   : > { %5531 = vmatmul.mubr.msk.bf16.gmra.mxu0 %vm2616_vm10, %v5619_v14  ;;  %2872 = vst.msk [vmem:[#allocation2 + $0x40] sm:$0x1] %vm2865_vm12, %v5667_v36  ;;  %2875 = vst.msk [vmem:[#allocation2 + $0x58] sm:$0x1] %vm2865_vm12, %v5667_v36  ;;  %v4632_v14 = vld [vmem:[%s5712_s23 + $0x12a] sm:$0xff] }
 0x140   : > { %v1085_v2 = vpop.permute.xlu1 %1084  ;;  %v1083_v7 = vpop.permute.xlu0 %1082  ;;  %2878 = vst.msk [vmem:[#allocation2 + $0x70] sm:$0x1] %vm2865_vm12, %v5667_v36  ;;  %2881 = vst.msk [vmem:[#allocation2 + $0x88] sm:$0x1] %vm2865_vm12, %v5667_v36 }
 0x141   : > { %1170 = vst.msk [vmem:[#allocation3 + $0x2c] sm:$0xf] %vm1158_vm4, %v1085_v2  ;;  %1169 = vst.msk [vmem:[#allocation3 + $0x28] sm:$0xf] %vm1158_vm4, %v1083_v7  ;;  %v5250_v7 = vpack.c.bf16 %v4632_v14, %v4632_v14 }
 0x142   : > { %1353 = vrot.lane.b32.xlu1 %v5306_v62, %s5662_s27  ;;  %1351 = vrot.lane.b32.xlu0 %v5305_v44, %s5662_s27  ;;  %2884 = vst.msk [vmem:[#allocation2 + $0xa0] sm:$0x1] %vm2865_vm12, %v5667_v36  ;;  %2887 = vst.msk [vmem:[#allocation2 + $0xb8] sm:$0x1] %vm2865_vm12, %v5667_v36 }
 0x143   : > { %2890 = vst.msk [vmem:[#allocation2 + $0xd0] sm:$0x1] %vm2865_vm12, %v5667_v36  ;;  %2893 = vst.msk [vmem:[#allocation2 + $0xe8] sm:$0x1] %vm2865_vm12, %v5667_v36 }
 0x144   : > { %v1338_v16 = vpop.permute.xlu1 %1337  ;;  %v1336_v19 = vpop.permute.xlu0 %1335  ;;  %2896 = vst.msk [vmem:[#allocation2 + $0x100] sm:$0x1] %vm2865_vm12, %v5667_v36  ;;  %2899 = vst.msk [vmem:[#allocation2 + $0x118] sm:$0x1] %vm2865_vm12, %v5667_v36 }
 0x145   : > { %1425 = vst.msk [vmem:[#allocation3 + $0x24] sm:$0xf] %vm1415_vm5, %v1338_v16  ;;  %1424 = vst.msk [vmem:[#allocation3 + $0x20] sm:$0xf] %vm1415_vm5, %v1336_v19  ;;  %v4696_v19 = vld [vmem:[%s5712_s23 + $0x140] sm:$0xff] }
 0x146   : > { %1357 = vrot.lane.b32.xlu1 %v6299_v9, %s5662_s27  ;;  %1355 = vrot.lane.b32.xlu0 %v6301_v12, %s5662_s27  ;;  %2902 = vst.msk [vmem:[#allocation2 + $0x130] sm:$0x1] %vm2865_vm12, %v5667_v36  ;;  %2905 = vst.msk [vmem:[#allocation2 + $0x148] sm:$0x1] %vm2865_vm12, %v5667_v36 }
 0x147   : > { %2908 = vst.msk [vmem:[#allocation2 + $0x160] sm:$0x1] %vm2865_vm12, %v5667_v36  ;;  %2911 = vst.msk [vmem:[#allocation2 + $0x178] sm:$0x1] %vm2865_vm12, %v5667_v36 }
 0x148   : > { %v1342_v43 = vpop.permute.xlu1 %1341  ;;  %v1340_v24 = vpop.permute.xlu0 %1339  ;;  %2914 = vst.msk [vmem:[#allocation2 + $0x190] sm:$0x1] %vm2865_vm12, %v5667_v36 }
 0x149   : > { %1427 = vst.msk [vmem:[#allocation3 + $0x2c] sm:$0xf] %vm1415_vm5, %v1342_v43  ;;  %1426 = vst.msk [vmem:[#allocation3 + $0x28] sm:$0xf] %vm1415_vm5, %v1340_v24  ;;  %v5282_v24 = vpack.c.bf16 %v4696_v19, %v4696_v19 }
 0x14a   : > { %1610 = vrot.lane.b32.xlu1 %v5338_v34, %s5663_s28  ;;  %1608 = vrot.lane.b32.xlu0 %v5337_v52, %s5663_s28  ;;  %v5186_v52 = vpack.c.bf16 %v4504_v50, %v4504_v50  ;;  %v4571_v50 = vld [vmem:[%s5712_s23 + $0x151] sm:$0xff] }
 0x14c   : > { %v1595_v22 = vpop.permute.xlu1 %1594  ;;  %v1593_v58 = vpop.permute.xlu0 %1592 }
 0x14d   : > { %1682 = vst.msk [vmem:[#allocation3 + $0x24] sm:$0xf] %vm1672_vm6, %v1595_v22  ;;  %1681 = vst.msk [vmem:[#allocation3 + $0x20] sm:$0xf] %vm1672_vm6, %v1593_v58  ;;  %v4760_v58 = vld [vmem:[%s5712_s23 + $0x141] sm:$0xff] }
 0x14e   : > { %1614 = vrot.lane.b32.xlu1 %v6315_v57, %s5663_s28  ;;  %1612 = vrot.lane.b32.xlu0 %v6317_v25, %s5663_s28 }
 0x150   : > { %v1599_v28 = vpop.permute.xlu1 %1598  ;;  %v1597_v29 = vpop.permute.xlu0 %1596 }
 0x151   : > { %1684 = vst.msk [vmem:[#allocation3 + $0x2c] sm:$0xf] %vm1672_vm6, %v1599_v28  ;;  %1683 = vst.msk [vmem:[#allocation3 + $0x28] sm:$0xf] %vm1672_vm6, %v1597_v29  ;;  %v4759_v28 = vld [vmem:[%s5712_s23 + $0x139] sm:$0xff] }
 0x152   : > { %1868 = vrot.lane.b32.xlu1 %v5881_v17, %s5664_s29  ;;  %1866 = vrot.lane.b32.xlu0 %v5883_v18, %s5664_s29 }
 0x154   : > { %v1853_v17 = vpop.permute.xlu1 %1852  ;;  %v1851_v18 = vpop.permute.xlu0 %1850 }
 0x155   : > { %1940 = vst.msk [vmem:[#allocation3 + $0x24] sm:$0xf] %vm1930_vm7, %v1853_v17  ;;  %1939 = vst.msk [vmem:[#allocation3 + $0x20] sm:$0xf] %vm1930_vm7, %v1851_v18  ;;  %v5314_v17 = vpack.c.bf16 %v4760_v58, %v4760_v58  ;;  %v5313_v18 = vpack.c.bf16 %v4759_v28, %v4759_v28  ;;  %v4828_v58 = vld [vmem:[%s5712_s23 + $0x172] sm:$0xff]  ;;  %v4827_v28 = vld [vmem:[%s5712_s23 + $0x16a] sm:$0xff] }
 0x156   : > { %1872 = vrot.lane.b32.xlu1 %v5897_v30, %s5664_s29  ;;  %1870 = vrot.lane.b32.xlu0 %v5899_v32, %s5664_s29  ;;  %v6396_v30 = vpack.c.bf16 %v4756_v21, %v4756_v21  ;;  %v6398_v32 = vpack.c.bf16 %v4755_v37, %v4755_v37 }
 0x158   : > { %v1857_v38 = vpop.permute.xlu1 %1856  ;;  %v1855_v40 = vpop.permute.xlu0 %1854 }
 0x159   : > { %1942 = vst.msk [vmem:[#allocation3 + $0x2c] sm:$0xf] %vm1930_vm7, %v1857_v38  ;;  %1941 = vst.msk [vmem:[#allocation3 + $0x28] sm:$0xf] %vm1930_vm7, %v1855_v40  ;;  %v4824_v38 = vld [vmem:[%s5712_s23 + $0x142] sm:$0xff]  ;;  %v4823_v40 = vld [vmem:[%s5712_s23 + $0x13a] sm:$0xff] }
 0x15a   : > { %2125 = vrot.lane.b32.xlu1 %v6299_v9, %s5665_s7  ;;  %2123 = vrot.lane.b32.xlu0 %v6301_v12, %s5665_s7  ;;  %v5249_v9 = vpack.c.bf16 %v4631_v4, %v4631_v4 }
 0x15c   : > { %v2110_v41 = vpop.permute.xlu1 %2109  ;;  %v2108_v3 = vpop.permute.xlu0 %2107 }
 0x15d   : > { %2197 = vst.msk [vmem:[#allocation3 + $0x24] sm:$0xf] %vm2187_vm8, %v2110_v41  ;;  %2196 = vst.msk [vmem:[#allocation3 + $0x20] sm:$0xf] %vm2187_vm8, %v2108_v3  ;;  %v5346_v41 = vpack.c.bf16 %v4824_v38, %v4824_v38  ;;  %v5345_v3 = vpack.c.bf16 %v4823_v40, %v4823_v40  ;;  %v6597_v38 = vpack.c.bf16 %v4828_v58, %v4828_v58 }
 0x15e   : > { %2129 = vrot.lane.b32.xlu1 %v6396_v30, %s5665_s7  ;;  %2127 = vrot.lane.b32.xlu0 %v6398_v32, %s5665_s7  ;;  %v6599_v40 = vpack.c.bf16 %v4827_v28, %v4827_v28 }
 0x160   : > { %v2114_v26 = vpop.permute.xlu1 %2113  ;;  %v2112_v27 = vpop.permute.xlu0 %2111 }
 0x161   : > { %2199 = vst.msk [vmem:[#allocation3 + $0x2c] sm:$0xf] %vm2187_vm8, %v2114_v26  ;;  %2198 = vst.msk [vmem:[#allocation3 + $0x28] sm:$0xf] %vm2187_vm8, %v2112_v27 }
 0x162   : > { %2382 = vrot.lane.b32.xlu1 %v6315_v57, %s5666_s12  ;;  %2380 = vrot.lane.b32.xlu0 %v6317_v25, %s5666_s12 }
 0x164   : > { %v2367_v49 = vpop.permute.xlu1 %2366  ;;  %v2365_v33 = vpop.permute.xlu0 %2364 }
 0x165   : > { %2454 = vst.msk [vmem:[#allocation3 + $0x24] sm:$0xf] %vm2444_vm9, %v2367_v49  ;;  %2453 = vst.msk [vmem:[#allocation3 + $0x20] sm:$0xf] %vm2444_vm9, %v2365_v33  ;;  %v4508_v33 = vld [vmem:[%s5712_s23 + $0x158] sm:$0xff] }
 0x166   : > { %2386 = vrot.lane.b32.xlu1 %v6414_v11, %s5666_s12  ;;  %2384 = vrot.lane.b32.xlu0 %v6416_v48, %s5666_s12 }
 0x168   : > { %v2371_v42 = vpop.permute.xlu1 %2370  ;;  %v2369_v10 = vpop.permute.xlu0 %2368 }
 0x169   : > { %2456 = vst.msk [vmem:[#allocation3 + $0x2c] sm:$0xf] %vm2444_vm9, %v2371_v42  ;;  %2455 = vst.msk [vmem:[#allocation3 + $0x28] sm:$0xf] %vm2444_vm9, %v2369_v10  ;;  %v4507_v42 = vld [vmem:[%s5712_s23 + $0x150] sm:$0xff] }
 0x16a   : > { %846 = vrot.lane.b32.xlu1 %v6315_v57, %s5660_s25  ;;  %844 = vrot.lane.b32.xlu0 %v6317_v25, %s5660_s25  ;;  %v5281_v57 = vpack.c.bf16 %v4695_v47, %v4695_v47 }
 0x16c   : > { %v831_v39 = vpop.permute.xlu1 %830  ;;  %v829_v62 = vpop.permute.xlu0 %828  ;;  %v5620_v44 = vld [vmem:[#allocation3 + $0x20] sm:$0xff]  }
 0x16d   : > { %914 = vst.msk [vmem:[#allocation3 + $0x34] sm:$0xf] %vm900_vm3, %v831_v39  ;;  %913 = vst.msk [vmem:[#allocation3 + $0x30] sm:$0xf] %vm900_vm3, %v829_v62  ;;  %5534 = vmatprep.mubr.msk.bf16.mxu0 %vm2616_vm10, %v5620_v44  ;;  %v5190_v39 = vpack.c.bf16 %v4508_v33, %v4508_v33  ;;  %v5189_v62 = vpack.c.bf16 %v4507_v42, %v4507_v42 }
 0x16e   : > { %850 = vrot.lane.b32.xlu1 %v6414_v11, %s5660_s25  ;;  %848 = vrot.lane.b32.xlu0 %v6416_v48, %s5660_s25 }
 0x170   : > { %v835_v54 = vpop.permute.xlu1 %834  ;;  %v833_v55 = vpop.permute.xlu0 %832  ;;  %v5621_v34 = vld [vmem:[#allocation3 + $0x28] sm:$0xff]  }
 0x171   : > { %916 = vst.msk [vmem:[#allocation3 + $0x3c] sm:$0xf] %vm900_vm3, %v835_v54  ;;  %915 = vst.msk [vmem:[#allocation3 + $0x38] sm:$0xf] %vm900_vm3, %v833_v55  ;;  %5535 = vmatmul.mubr.msk.bf16.gmra.mxu0 %vm2616_vm10, %v5621_v34  ;;  %v5221_v34 = vpack.c.bf16 %v4571_v50, %v4571_v50 }
 0x172   : > { %1104 = vrot.lane.b32.xlu1 %v5184_v45, %s5661_s26  ;;  %1102 = vrot.lane.b32.xlu0 %v5183_v46, %s5661_s26  ;;  %v4572_v46 = vld [vmem:[%s5712_s23 + $0x159] sm:$0xff] }
 0x173   : > { %v5222_v55 = vpack.c.bf16 %v4572_v46, %v4572_v46 }
 0x174   : > { %v1089_v56 = vpop.permute.xlu1 %1088  ;;  %v1087_v35 = vpop.permute.xlu0 %1086 }
 0x175   : > { %1172 = vst.msk [vmem:[#allocation3 + $0x34] sm:$0xf] %vm1158_vm4, %v1089_v56  ;;  %1171 = vst.msk [vmem:[#allocation3 + $0x30] sm:$0xf] %vm1158_vm4, %v1087_v35  ;;  %v4636_v56 = vld [vmem:[%s5712_s23 + $0x15a] sm:$0xff]  ;;  %v4635_v35 = vld [vmem:[%s5712_s23 + $0x152] sm:$0xff] }
 0x176   : > { %1108 = vrot.lane.b32.xlu1 %v5186_v52, %s5661_s26  ;;  %1106 = vrot.lane.b32.xlu0 %v5185_v53, %s5661_s26 }
 0x178   : > { %v1093_v61 = vpop.permute.xlu1 %1092  ;;  %v1091_v1 = vpop.permute.xlu0 %1090 }
 0x179   : > { %1174 = vst.msk [vmem:[#allocation3 + $0x3c] sm:$0xf] %vm1158_vm4, %v1093_v61  ;;  %1173 = vst.msk [vmem:[#allocation3 + $0x38] sm:$0xf] %vm1158_vm4, %v1091_v1  ;;  %v6540_v61 = vpack.c.bf16 %v4636_v56, %v4636_v56  ;;  %v6542_v1 = vpack.c.bf16 %v4635_v35, %v4635_v35 }
 0x17a   : > { %1361 = vrot.lane.b32.xlu1 %v6396_v30, %s5662_s27  ;;  %1359 = vrot.lane.b32.xlu0 %v6398_v32, %s5662_s27 }
 0x17c   : > { %v1346_v0 = vpop.permute.xlu1 %1345  ;;  %v1344_v13 = vpop.permute.xlu0 %1343 }
 0x17d   : > { %1429 = vst.msk [vmem:[#allocation3 + $0x34] sm:$0xf] %vm1415_vm5, %v1346_v0  ;;  %1428 = vst.msk [vmem:[#allocation3 + $0x30] sm:$0xf] %vm1415_vm5, %v1344_v13  ;;  %v4700_v0 = vld [vmem:[%s5712_s23 + $0x170] sm:$0xff]  ;;  %v4699_v13 = vld [vmem:[%s5712_s23 + $0x168] sm:$0xff] }
 0x17e   : > { %1365 = vrot.lane.b32.xlu1 %v5218_v63, %s5662_s27  ;;  %1363 = vrot.lane.b32.xlu0 %v5217_v8, %s5662_s27 }
 0x180   : > { %v1350_v5 = vpop.permute.xlu1 %1349  ;;  %v1348_v2 = vpop.permute.xlu0 %1347 }
 0x181   : > { %1431 = vst.msk [vmem:[#allocation3 + $0x3c] sm:$0xf] %vm1415_vm5, %v1350_v5  ;;  %1430 = vst.msk [vmem:[#allocation3 + $0x38] sm:$0xf] %vm1415_vm5, %v1348_v2  ;;  %v6556_v5 = vpack.c.bf16 %v4700_v0, %v4700_v0  ;;  %v6558_v2 = vpack.c.bf16 %v4699_v13, %v4699_v13 }
 0x182   : > { %1618 = vrot.lane.b32.xlu1 %v6414_v11, %s5663_s28  ;;  %1616 = vrot.lane.b32.xlu0 %v6416_v48, %s5663_s28 }
 0x184   : > { %v1603_v12 = vpop.permute.xlu1 %1602  ;;  %v1601_v16 = vpop.permute.xlu0 %1600 }
 0x185   : > { %1686 = vst.msk [vmem:[#allocation3 + $0x34] sm:$0xf] %vm1672_vm6, %v1603_v12  ;;  %1685 = vst.msk [vmem:[#allocation3 + $0x30] sm:$0xf] %vm1672_vm6, %v1601_v16  ;;  %v4764_v12 = vld [vmem:[%s5712_s23 + $0x171] sm:$0xff]  ;;  %v4763_v16 = vld [vmem:[%s5712_s23 + $0x169] sm:$0xff] }
 0x186   : > { %1622 = vrot.lane.b32.xlu1 %v5250_v7, %s5663_s28  ;;  %1620 = vrot.lane.b32.xlu0 %v5249_v9, %s5663_s28 }
 0x188   : > { %v1607_v20 = vpop.permute.xlu1 %1606  ;;  %v1605_v43 = vpop.permute.xlu0 %1604 }
 0x189   : > { %1688 = vst.msk [vmem:[#allocation3 + $0x3c] sm:$0xf] %vm1672_vm6, %v1607_v20  ;;  %1687 = vst.msk [vmem:[#allocation3 + $0x38] sm:$0xf] %vm1672_vm6, %v1605_v43  ;;  %v6572_v20 = vpack.c.bf16 %v4764_v12, %v4764_v12  ;;  %v6574_v43 = vpack.c.bf16 %v4763_v16, %v4763_v16 }
 0x18a   : > { %1876 = vrot.lane.b32.xlu1 %v5186_v52, %s5664_s29  ;;  %1874 = vrot.lane.b32.xlu0 %v5185_v53, %s5664_s29 }
 0x18c   : > { %v1861_v25 = vpop.permute.xlu1 %1860  ;;  %v1859_v22 = vpop.permute.xlu0 %1858 }
 0x18d   : > { %1944 = vst.msk [vmem:[#allocation3 + $0x34] sm:$0xf] %vm1930_vm7, %v1861_v25  ;;  %1943 = vst.msk [vmem:[#allocation3 + $0x30] sm:$0xf] %vm1930_vm7, %v1859_v22  ;;  %v6581_v25 = vld [vmem:[%s7220_s2] ss:$0 sm:$0xff] }
 0x18e   : > { %1880 = vrot.lane.b32.xlu1 %v5282_v24, %s5664_s29  ;;  %1878 = vrot.lane.b32.xlu0 %v5281_v57, %s5664_s29 }
 0x190   : > { %v1865_v29 = vpop.permute.xlu1 %1864  ;;  %v1863_v36 = vpop.permute.xlu0 %1862 }
 0x191   : > { %1946 = vst.msk [vmem:[#allocation3 + $0x3c] sm:$0xf] %vm1930_vm7, %v1865_v29  ;;  %1945 = vst.msk [vmem:[#allocation3 + $0x38] sm:$0xf] %vm1930_vm7, %v1863_v36 }
 0x192   : > { %2133 = vrot.lane.b32.xlu1 %v5218_v63, %s5665_s7  ;;  %2131 = vrot.lane.b32.xlu0 %v5217_v8, %s5665_s7 }
 0x194   : > { %v2118_v21 = vpop.permute.xlu1 %2117  ;;  %v2116_v37 = vpop.permute.xlu0 %2115 }
 0x195   : > { %2201 = vst.msk [vmem:[#allocation3 + $0x34] sm:$0xf] %vm2187_vm8, %v2118_v21  ;;  %2200 = vst.msk [vmem:[#allocation3 + $0x30] sm:$0xf] %vm2187_vm8, %v2116_v37 }
 0x196   : > { %2137 = vrot.lane.b32.xlu1 %v5314_v17, %s5665_s7  ;;  %2135 = vrot.lane.b32.xlu0 %v5313_v18, %s5665_s7 }
 0x198   : > { %v2122_v30 = vpop.permute.xlu1 %2121  ;;  %v2120_v32 = vpop.permute.xlu0 %2119 }
 0x199   : > { %2203 = vst.msk [vmem:[#allocation3 + $0x3c] sm:$0xf] %vm2187_vm8, %v2122_v30  ;;  %2202 = vst.msk [vmem:[#allocation3 + $0x38] sm:$0xf] %vm2187_vm8, %v2120_v32 }
 0x19a   : > { %2390 = vrot.lane.b32.xlu1 %v5250_v7, %s5666_s12  ;;  %2388 = vrot.lane.b32.xlu0 %v5249_v9, %s5666_s12 }
 0x19c   : > { %v2375_v6 = vpop.permute.xlu1 %2374  ;;  %v2373_v23 = vpop.permute.xlu0 %2372 }
 0x19d   : > { %2458 = vst.msk [vmem:[#allocation3 + $0x34] sm:$0xf] %vm2444_vm9, %v2375_v6  ;;  %2457 = vst.msk [vmem:[#allocation3 + $0x30] sm:$0xf] %vm2444_vm9, %v2373_v23 }
 0x19e   : > { %2394 = vrot.lane.b32.xlu1 %v5346_v41, %s5666_s12  ;;  %2392 = vrot.lane.b32.xlu0 %v5345_v3, %s5666_s12 }
 0x1a0   : > { %v2379_v26 = vpop.permute.xlu1 %2378  ;;  %v2377_v27 = vpop.permute.xlu0 %2376 }
 0x1a1   : > { %2460 = vst.msk [vmem:[#allocation3 + $0x3c] sm:$0xf] %vm2444_vm9, %v2379_v26  ;;  %2459 = vst.msk [vmem:[#allocation3 + $0x38] sm:$0xf] %vm2444_vm9, %v2377_v27 }
 0x1a2   : > { %854 = vrot.lane.b32.xlu1 %v5250_v7, %s5660_s25  ;;  %852 = vrot.lane.b32.xlu0 %v5249_v9, %s5660_s25 }
 0x1a4   : > { %v839_v11 = vpop.permute.xlu1 %838  ;;  %v837_v48 = vpop.permute.xlu0 %836  ;;  %v5622_v49 = vld [vmem:[#allocation3 + $0x30] sm:$0xff]  }
 0x1a5   : > { %918 = vst.msk [vmem:[#allocation3 + $0x44] sm:$0xf] %vm900_vm3, %v839_v11  ;;  %917 = vst.msk [vmem:[#allocation3 + $0x40] sm:$0xf] %vm900_vm3, %v837_v48  ;;  %5538 = vmatprep.mubr.msk.bf16.mxu0 %vm2616_vm10, %v5622_v49 }
 0x1a6   : > { %858 = vrot.lane.b32.xlu1 %v5346_v41, %s5660_s25  ;;  %856 = vrot.lane.b32.xlu0 %v5345_v3, %s5660_s25 }
 0x1a8   : > { %v843_v10 = vpop.permute.xlu1 %842  ;;  %v841_v31 = vpop.permute.xlu0 %840  ;;  %v5623_v59 = vld [vmem:[#allocation3 + $0x38] sm:$0xff]  }
 0x1a9   : > { %920 = vst.msk [vmem:[#allocation3 + $0x4c] sm:$0xf] %vm900_vm3, %v843_v10  ;;  %919 = vst.msk [vmem:[#allocation3 + $0x48] sm:$0xf] %vm900_vm3, %v841_v31  ;;  %5539 = vmatmul.mubr.msk.bf16.gmra.mxu0 %vm2616_vm10, %v5623_v59 }
 0x1aa   : > { %1112 = vrot.lane.b32.xlu1 %v5282_v24, %s5661_s26  ;;  %1110 = vrot.lane.b32.xlu0 %v5281_v57, %s5661_s26 }
 0x1ac   : > { %v1097_v44 = vpop.permute.xlu1 %1096  ;;  %v1095_v45 = vpop.permute.xlu0 %1094 }
 0x1ad   : > { %1176 = vst.msk [vmem:[#allocation3 + $0x44] sm:$0xf] %vm1158_vm4, %v1097_v44  ;;  %1175 = vst.msk [vmem:[#allocation3 + $0x40] sm:$0xf] %vm1158_vm4, %v1095_v45  ;;  %v4512_v44 = vld [vmem:[%s5712_s23 + $0x188] sm:$0xff]  ;;  %v4511_v45 = vld [vmem:[%s5712_s23 + $0x180] sm:$0xff] }
 0x1ae   : > { %1116 = vrot.lane.b32.xlu1 %v5190_v39, %s5661_s26  ;;  %1114 = vrot.lane.b32.xlu0 %v5189_v62, %s5661_s26 }
 0x1b0   : > { %v1101_v51 = vpop.permute.xlu1 %1100  ;;  %v1099_v54 = vpop.permute.xlu0 %1098 }
 0x1b1   : > { %1178 = vst.msk [vmem:[#allocation3 + $0x4c] sm:$0xf] %vm1158_vm4, %v1101_v51  ;;  %1177 = vst.msk [vmem:[#allocation3 + $0x48] sm:$0xf] %vm1158_vm4, %v1099_v54 }
 0x1b2   : > { %1369 = vrot.lane.b32.xlu1 %v5314_v17, %s5662_s27  ;;  %1367 = vrot.lane.b32.xlu0 %v5313_v18, %s5662_s27 }
 0x1b4   : > { %v1354_v52 = vpop.permute.xlu1 %1353  ;;  %v1352_v53 = vpop.permute.xlu0 %1351 }
 0x1b5   : > { %1433 = vst.msk [vmem:[#allocation3 + $0x44] sm:$0xf] %vm1415_vm5, %v1354_v52  ;;  %1432 = vst.msk [vmem:[#allocation3 + $0x40] sm:$0xf] %vm1415_vm5, %v1352_v53  ;;  %v5194_v52 = vpack.c.bf16 %v4512_v44, %v4512_v44  ;;  %v5193_v53 = vpack.c.bf16 %v4511_v45, %v4511_v45 }
 0x1b6   : > { %1373 = vrot.lane.b32.xlu1 %v5222_v55, %s5662_s27  ;;  %1371 = vrot.lane.b32.xlu0 %v5221_v34, %s5662_s27 }
 0x1b8   : > { %v1358_v60 = vpop.permute.xlu1 %1357  ;;  %v1356_v15 = vpop.permute.xlu0 %1355 }
 0x1b9   : > { %1435 = vst.msk [vmem:[#allocation3 + $0x4c] sm:$0xf] %vm1415_vm5, %v1358_v60  ;;  %1434 = vst.msk [vmem:[#allocation3 + $0x48] sm:$0xf] %vm1415_vm5, %v1356_v15  ;;  %v4576_v15 = vld [vmem:[%s5712_s23 + $0x189] sm:$0xff] }
 0x1ba   : > { %1626 = vrot.lane.b32.xlu1 %v5346_v41, %s5663_s28  ;;  %1624 = vrot.lane.b32.xlu0 %v5345_v3, %s5663_s28 }
 0x1bc   : > { %v1611_v63 = vpop.permute.xlu1 %1610  ;;  %v1609_v8 = vpop.permute.xlu0 %1608 }
 0x1bd   : > { %1690 = vst.msk [vmem:[#allocation3 + $0x44] sm:$0xf] %vm1672_vm6, %v1611_v63  ;;  %1689 = vst.msk [vmem:[#allocation3 + $0x40] sm:$0xf] %vm1672_vm6, %v1609_v8  ;;  %v5226_v8 = vpack.c.bf16 %v4576_v15, %v4576_v15 }
 0x1be   : > { %1630 = vrot.lane.b32.xlu1 %v6540_v61, %s5663_s28  ;;  %1628 = vrot.lane.b32.xlu0 %v6542_v1, %s5663_s28 }
 0x1c0   : > { %v1615_v14 = vpop.permute.xlu1 %1614  ;;  %v1613_v4 = vpop.permute.xlu0 %1612 }
 0x1c1   : > { %1692 = vst.msk [vmem:[#allocation3 + $0x4c] sm:$0xf] %vm1672_vm6, %v1615_v14  ;;  %1691 = vst.msk [vmem:[#allocation3 + $0x48] sm:$0xf] %vm1672_vm6, %v1613_v4  ;;  %v4640_v4 = vld [vmem:[%s5712_s23 + $0x18a] sm:$0xff] }
 0x1c2   : > { %1884 = vrot.lane.b32.xlu1 %v5190_v39, %s5664_s29  ;;  %1882 = vrot.lane.b32.xlu0 %v5189_v62, %s5664_s29 }
 0x1c4   : > { %v1869_v7 = vpop.permute.xlu1 %1868  ;;  %v1867_v9 = vpop.permute.xlu0 %1866 }
 0x1c5   : > { %1948 = vst.msk [vmem:[#allocation3 + $0x44] sm:$0xf] %vm1930_vm7, %v1869_v7  ;;  %1947 = vst.msk [vmem:[#allocation3 + $0x40] sm:$0xf] %vm1930_vm7, %v1867_v9  ;;  %v5258_v9 = vpack.c.bf16 %v4640_v4, %v4640_v4 }
 0x1c6   : > { %1888 = vrot.lane.b32.xlu1 %v6556_v5, %s5664_s29  ;;  %1886 = vrot.lane.b32.xlu0 %v6558_v2, %s5664_s29 }
 0x1c8   : > { %v1873_v19 = vpop.permute.xlu1 %1872  ;;  %v1871_v47 = vpop.permute.xlu0 %1870 }
 0x1c9   : > { %1950 = vst.msk [vmem:[#allocation3 + $0x4c] sm:$0xf] %vm1930_vm7, %v1873_v19  ;;  %1949 = vst.msk [vmem:[#allocation3 + $0x48] sm:$0xf] %vm1930_vm7, %v1871_v47  ;;  %v4704_v47 = vld [vmem:[%s5712_s23 + $0x1a0] sm:$0xff] }
 0x1ca   : > { %2141 = vrot.lane.b32.xlu1 %v5222_v55, %s5665_s7  ;;  %2139 = vrot.lane.b32.xlu0 %v5221_v34, %s5665_s7 }
 0x1cc   : > { %v2126_v24 = vpop.permute.xlu1 %2125  ;;  %v2124_v57 = vpop.permute.xlu0 %2123 }
 0x1cd   : > { %2205 = vst.msk [vmem:[#allocation3 + $0x44] sm:$0xf] %vm2187_vm8, %v2126_v24  ;;  %2204 = vst.msk [vmem:[#allocation3 + $0x40] sm:$0xf] %vm2187_vm8, %v2124_v57  ;;  %v5290_v57 = vpack.c.bf16 %v4704_v47, %v4704_v47 }
 0x1ce   : > { %2145 = vrot.lane.b32.xlu1 %v6572_v20, %s5665_s7  ;;  %2143 = vrot.lane.b32.xlu0 %v6574_v43, %s5665_s7 }
 0x1cf   : > { %v5528_v22 = vpop.f32.mrf.mxu0 }
 0x1d0   : > { %v2712_v29 = vadd.f32 %v5528_v22, %v6581_v25  ;;  %v2130_v36 = vpop.permute.xlu1 %2129  ;;  %v2128_v17 = vpop.permute.xlu0 %2127 }
 0x1d1   : > { %2207 = vst.msk [vmem:[#allocation3 + $0x4c] sm:$0xf] %vm2187_vm8, %v2130_v36  ;;  %2206 = vst.msk [vmem:[#allocation3 + $0x48] sm:$0xf] %vm2187_vm8, %v2128_v17  ;;  %v2703_v18 = vpop.f32.mrf.mxu0  ;;  %v4768_v36 = vld [vmem:[%s5712_s23 + $0x1a1] sm:$0xff]  ;;  %v4767_v17 = vld [vmem:[%s5712_s23 + $0x199] sm:$0xff] }
 0x1d2   : > { %v2832_v21 = vmax.f32 %v2712_v29, 0.0  ;;  %v2704_v37 = vadd.f32 %v6581_v25, %v2703_v18  ;;  %2398 = vrot.lane.b32.xlu1 %v6540_v61, %s5666_s12  ;;  %2396 = vrot.lane.b32.xlu0 %v6542_v1, %s5666_s12 }
 0x1d3   : > { %v5529_v30 = vpop.f32.mrf.mxu0 }
 0x1d4   : > { %2917 = vst.msk [vmem:[#allocation2 + $0x18] sm:$0xff] %vm2862_vm11, %v2832_v21  ;;  %v2830_v32 = vmax.f32 %v2704_v37, 0.0  ;;  %v2715_v41 = vadd.f32 %v5529_v30, %v6581_v25  ;;  %v2383_v3 = vpop.permute.xlu1 %2382  ;;  %v2381_v6 = vpop.permute.xlu0 %2380 }
 0x1d5   : > { %2462 = vst.msk [vmem:[#allocation3 + $0x44] sm:$0xf] %vm2444_vm9, %v2383_v3  ;;  %2461 = vst.msk [vmem:[#allocation3 + $0x40] sm:$0xf] %vm2444_vm9, %v2381_v6  ;;  %v2706_v23 = vpop.f32.mrf.mxu0 }
 0x1d6   : > { %2915 = vst.msk [vmem:[#allocation2] sm:$0xff] %vm2862_vm11, %v2830_v32  ;;  %v2833_v26 = vmax.f32 %v2715_v41, 0.0  ;;  %v2707_v27 = vadd.f32 %v6581_v25, %v2706_v23  ;;  %2402 = vrot.lane.b32.xlu1 %v6597_v38, %s5666_s12  ;;  %2400 = vrot.lane.b32.xlu0 %v6599_v40, %s5666_s12  ;;  %v5322_v32 = vpack.c.bf16 %v4768_v36, %v4768_v36 }
 0x1d7   : > { %v5321_v41 = vpack.c.bf16 %v4767_v17, %v4767_v17 }
 0x1d8   : > { %2918 = vst.msk [vmem:[#allocation2 + $0x20] sm:$0xff] %vm2862_vm11, %v2833_v26  ;;  %v2831_v11 = vmax.f32 %v2707_v27, 0.0  ;;  %v2387_v48 = vpop.permute.xlu1 %2386  ;;  %v2385_v49 = vpop.permute.xlu0 %2384 }
 0x1d9   : > { %2464 = vst.msk [vmem:[#allocation3 + $0x4c] sm:$0xf] %vm2444_vm9, %v2387_v48  ;;  %2463 = vst.msk [vmem:[#allocation3 + $0x48] sm:$0xf] %vm2444_vm9, %v2385_v49 }
 0x1da   : > { %2916 = vst.msk [vmem:[#allocation2 + $0x8] sm:$0xff] %vm2862_vm11, %v2831_v11  ;;  %862 = vrot.lane.b32.xlu1 %v6540_v61, %s5660_s25  ;;  %860 = vrot.lane.b32.xlu0 %v6542_v1, %s5660_s25  ;;  %v4575_v61 = vld [vmem:[%s5712_s23 + $0x181] sm:$0xff] }
 0x1db   : > { %v3398_v33 = vld [vmem:[#allocation2 + $0x18] sm:$0xff]  ;;  %v5225_v0 = vpack.c.bf16 %v4575_v61, %v4575_v61 }
 0x1dc   : > { %v847_v42 = vpop.permute.xlu1 %846  ;;  %v845_v10 = vpop.permute.xlu0 %844  ;;  %v5624_v31 = vld [vmem:[#allocation3 + $0x40] sm:$0xff]   ;;  %v6619_v59 = vpack.c.bf16 %v3398_v33, %v3398_v33  ;;  %v4832_v33 = vld [vmem:[%s5712_s23 + $0x1a2] sm:$0xff] }
 0x1dd   : > { %922 = vst.msk [vmem:[#allocation3 + $0x54] sm:$0xf] %vm900_vm3, %v847_v42  ;;  %921 = vst.msk [vmem:[#allocation3 + $0x50] sm:$0xf] %vm900_vm3, %v845_v10  ;;  %v2947_v39 = vld [vmem:[#allocation2] sm:$0xff]  ;;  %5542 = vmatprep.mubr.msk.bf16.mxu0 %vm2616_vm10, %v5624_v31 }
 0x1de   : > { %866 = vrot.lane.b32.xlu1 %v6597_v38, %s5660_s25  ;;  %864 = vrot.lane.b32.xlu0 %v6599_v40, %s5660_s25  ;;  %v5355_v62 = vpack.c.bf16 %v2947_v39, %v2947_v39  ;;  %3110 = vst.msk [vmem:[#allocation4 + $0x8] sm:$0xf] %vm3107_vm13, %v6619_v59  ;;  %v4831_v42 = vld [vmem:[%s5712_s23 + $0x19a] sm:$0xff] }
 0x1df   : > { %v3399_v46 = vld [vmem:[#allocation2 + $0x20] sm:$0xff]  ;;  %v5353_v44 = vpack.c.bf16 %v4831_v42, %v4831_v42 }
 0x1e0   : > { %v851_v50 = vpop.permute.xlu1 %850  ;;  %v849_v51 = vpop.permute.xlu0 %848  ;;  %v5625_v54 = vld [vmem:[#allocation3 + $0x48] sm:$0xff]   ;;  %v6632_v55 = vpack.c.bf16 %v3399_v46, %v3399_v46  ;;  %3108 = vst.msk [vmem:[#allocation4] sm:$0xf] %vm3107_vm13, %v5355_v62  ;;  %v5354_v62 = vpack.c.bf16 %v4832_v33, %v4832_v33 }
 0x1e1   : > { %924 = vst.msk [vmem:[#allocation3 + $0x5c] sm:$0xf] %vm900_vm3, %v851_v50  ;;  %923 = vst.msk [vmem:[#allocation3 + $0x58] sm:$0xf] %vm900_vm3, %v849_v51  ;;  %v2948_v34 = vld [vmem:[#allocation2 + $0x8] sm:$0xff]  ;;  %5543 = vmatmul.mubr.msk.bf16.gmra.mxu0 %vm2616_vm10, %v5625_v54 }
 0x1e2   : > { %1120 = vrot.lane.b32.xlu1 %v6556_v5, %s5661_s26  ;;  %1118 = vrot.lane.b32.xlu0 %v6558_v2, %s5661_s26  ;;  %v5356_v56 = vpack.c.bf16 %v2948_v34, %v2948_v34  ;;  %3111 = vst.msk [vmem:[#allocation4 + $0xc] sm:$0xf] %vm3107_vm13, %v6632_v55  ;;  %v4639_v5 = vld [vmem:[%s5712_s23 + $0x182] sm:$0xff] }
 0x1e3   : > { %v5257_v12 = vpack.c.bf16 %v4639_v5, %v4639_v5  ;;  %v3141_v54 = vld [vmem:[#allocation2 + $0x9] sm:$0xff]  ;;  %v3140_v34 = vld [vmem:[#allocation2 + $0x1] sm:$0xff] }
 0x1e4   : > { %v1105_v35 = vpop.permute.xlu1 %1104  ;;  %v1103_v60 = vpop.permute.xlu0 %1102  ;;  %3109 = vst.msk [vmem:[#allocation4 + $0x4] sm:$0xf] %vm3107_vm13, %v5356_v56  ;;  %v5388_v15 = vpack.c.bf16 %v3141_v54, %v3141_v54  ;;  %v5387_v61 = vpack.c.bf16 %v3140_v34, %v3140_v34 }
 0x1e5   : > { %1180 = vst.msk [vmem:[#allocation3 + $0x54] sm:$0xf] %vm1158_vm4, %v1105_v35  ;;  %1179 = vst.msk [vmem:[#allocation3 + $0x50] sm:$0xf] %vm1158_vm4, %v1103_v60 }
 0x1e6   : > { %1124 = vrot.lane.b32.xlu1 %v5194_v52, %s5661_s26  ;;  %1122 = vrot.lane.b32.xlu0 %v5193_v53, %s5661_s26  ;;  %s5066_s26 = sshll.u32 %s7225_s19, 8 }
 0x1e7   : > { %s7056_s6 = scalar_lea.vmem %s7223_s5, %s5066_s26 }
 0x1e8   : > { %v1109_v1 = vpop.permute.xlu1 %1108  ;;  %v1107_v63 = vpop.permute.xlu0 %1106 }
 0x1e9   : > { %1182 = vst.msk [vmem:[#allocation3 + $0x5c] sm:$0xf] %vm1158_vm4, %v1109_v1  ;;  %1181 = vst.msk [vmem:[#allocation3 + $0x58] sm:$0xf] %vm1158_vm4, %v1107_v63  ;;  %v3143_v63 = vld [vmem:[#allocation2 + $0x21] sm:$0xff] }
 0x1ea   : > { %1377 = vrot.lane.b32.xlu1 %v6572_v20, %s5662_s27  ;;  %1375 = vrot.lane.b32.xlu0 %v6574_v43, %s5662_s27  ;;  %v4703_v20 = vld [vmem:[%s5712_s23 + $0x198] sm:$0xff]  ;;  %v5390_v5 = vpack.c.bf16 %v3143_v63, %v3143_v63 }
 0x1eb   : > { %v5289_v22 = vpack.c.bf16 %v4703_v20, %v4703_v20 }
 0x1ec   : > { %v1362_v13 = vpop.permute.xlu1 %1361  ;;  %v1360_v14 = vpop.permute.xlu0 %1359 }
 0x1ed   : > { %1437 = vst.msk [vmem:[#allocation3 + $0x54] sm:$0xf] %vm1415_vm5, %v1362_v13  ;;  %1436 = vst.msk [vmem:[#allocation3 + $0x50] sm:$0xf] %vm1415_vm5, %v1360_v14 }
 0x1ee   : > { %1381 = vrot.lane.b32.xlu1 %v5226_v8, %s5662_s27  ;;  %1379 = vrot.lane.b32.xlu0 %v5225_v0, %s5662_s27 }
 0x1f0   : > { %v1366_v2 = vpop.permute.xlu1 %1365  ;;  %v1364_v7 = vpop.permute.xlu0 %1363 }
 0x1f1   : > { %1439 = vst.msk [vmem:[#allocation3 + $0x5c] sm:$0xf] %vm1415_vm5, %v1366_v2  ;;  %1438 = vst.msk [vmem:[#allocation3 + $0x58] sm:$0xf] %vm1415_vm5, %v1364_v7 }
 0x1f2   : > { %1634 = vrot.lane.b32.xlu1 %v6597_v38, %s5663_s28  ;;  %1632 = vrot.lane.b32.xlu0 %v6599_v40, %s5663_s28 }
 0x1f4   : > { %v1619_v16 = vpop.permute.xlu1 %1618  ;;  %v1617_v19 = vpop.permute.xlu0 %1616 }
 0x1f5   : > { %1694 = vst.msk [vmem:[#allocation3 + $0x54] sm:$0xf] %vm1672_vm6, %v1619_v16  ;;  %1693 = vst.msk [vmem:[#allocation3 + $0x50] sm:$0xf] %vm1672_vm6, %v1617_v19  ;;  %v5632_v19 = vld [vmem:[%s7221_s3 + $0x8] sm:$0xff]  }
 0x1f6   : > { %1638 = vrot.lane.b32.xlu1 %v5258_v9, %s5663_s28  ;;  %1636 = vrot.lane.b32.xlu0 %v5257_v12, %s5663_s28 }
 0x1f7   : > { %5558 = vmatprep.subr.bf16.mxu1 %v5632_v19 }
 0x1f8   : > { %v1623_v43 = vpop.permute.xlu1 %1622  ;;  %v1621_v24 = vpop.permute.xlu0 %1620  ;;  %5559 = vmatpush3.bf16.msra.mxu1 %v5632_v19 }
 0x1f9   : > { %1696 = vst.msk [vmem:[#allocation3 + $0x5c] sm:$0xf] %vm1672_vm6, %v1623_v43  ;;  %1695 = vst.msk [vmem:[#allocation3 + $0x58] sm:$0xf] %vm1672_vm6, %v1621_v24  ;;  %v5633_v43 = vld [vmem:[%s7221_s3] sm:$0xff]  }
 0x1fa   : > { %1892 = vrot.lane.b32.xlu1 %v5194_v52, %s5664_s29  ;;  %1890 = vrot.lane.b32.xlu0 %v5193_v53, %s5664_s29 }
 0x1fb   : > { %5560 = vmatprep.subr.bf16.mxu1 %v5633_v43 }
 0x1fc   : > { %v1877_v58 = vpop.permute.xlu1 %1876  ;;  %v1875_v28 = vpop.permute.xlu0 %1874  ;;  %5561 = vmatpush3.bf16.msra.mxu1 %v5633_v43 }
 0x1fd   : > { %1952 = vst.msk [vmem:[#allocation3 + $0x54] sm:$0xf] %vm1930_vm7, %v1877_v58  ;;  %1951 = vst.msk [vmem:[#allocation3 + $0x50] sm:$0xf] %vm1930_vm7, %v1875_v28 }
 0x1fe   : > { %1896 = vrot.lane.b32.xlu1 %v5290_v57, %s5664_s29  ;;  %1894 = vrot.lane.b32.xlu0 %v5289_v22, %s5664_s29 }
 0x1ff   : > { %v5532_v29 = vpop.f32.mrf.mxu0 }
 0x200   : > { %v2728_v18 = vadd.f32 %v5532_v29, %v6581_v25  ;;  %v1881_v21 = vpop.permute.xlu1 %1880  ;;  %v1879_v37 = vpop.permute.xlu0 %1878 }
 0x201   : > { %1954 = vst.msk [vmem:[#allocation3 + $0x5c] sm:$0xf] %vm1930_vm7, %v1881_v21  ;;  %1953 = vst.msk [vmem:[#allocation3 + $0x58] sm:$0xf] %vm1930_vm7, %v1879_v37  ;;  %v2719_v38 = vpop.f32.mrf.mxu0 }
 0x202   : > { %v2836_v40 = vmax.f32 %v2728_v18, 0.0  ;;  %v2720_v30 = vadd.f32 %v6581_v25, %v2719_v38  ;;  %2149 = vrot.lane.b32.xlu1 %v5226_v8, %s5665_s7  ;;  %2147 = vrot.lane.b32.xlu0 %v5225_v0, %s5665_s7  ;;  %v3142_v8 = vld [vmem:[#allocation2 + $0x19] sm:$0xff] }
 0x203   : > { %v5533_v3 = vpop.f32.mrf.mxu0  ;;  %v5389_v2 = vpack.c.bf16 %v3142_v8, %v3142_v8 }
 0x204   : > { %2921 = vst.msk [vmem:[#allocation2 + $0x48] sm:$0xff] %vm2862_vm11, %v2836_v40  ;;  %v2834_v6 = vmax.f32 %v2720_v30, 0.0  ;;  %v2731_v23 = vadd.f32 %v5533_v3, %v6581_v25  ;;  %v2134_v26 = vpop.permute.xlu1 %2133  ;;  %v2132_v27 = vpop.permute.xlu0 %2131 }
 0x205   : > { %2209 = vst.msk [vmem:[#allocation3 + $0x54] sm:$0xf] %vm2187_vm8, %v2134_v26  ;;  %2208 = vst.msk [vmem:[#allocation3 + $0x50] sm:$0xf] %vm2187_vm8, %v2132_v27  ;;  %v2722_v11 = vpop.f32.mrf.mxu0 }
 0x206   : > { %2919 = vst.msk [vmem:[#allocation2 + $0x30] sm:$0xff] %vm2862_vm11, %v2834_v6  ;;  %v2837_v48 = vmax.f32 %v2731_v23, 0.0  ;;  %v2723_v49 = vadd.f32 %v6581_v25, %v2722_v11  ;;  %2153 = vrot.lane.b32.xlu1 %v5322_v32, %s5665_s7  ;;  %2151 = vrot.lane.b32.xlu0 %v5321_v41, %s5665_s7 }
 0x208   : > { %2922 = vst.msk [vmem:[#allocation2 + $0x50] sm:$0xff] %vm2862_vm11, %v2837_v48  ;;  %v2835_v10 = vmax.f32 %v2723_v49, 0.0  ;;  %v2138_v31 = vpop.permute.xlu1 %2137  ;;  %v2136_v39 = vpop.permute.xlu0 %2135 }
 0x209   : > { %2211 = vst.msk [vmem:[#allocation3 + $0x5c] sm:$0xf] %vm2187_vm8, %v2138_v31  ;;  %2210 = vst.msk [vmem:[#allocation3 + $0x58] sm:$0xf] %vm2187_vm8, %v2136_v39 }
 0x20a   : > { %2920 = vst.msk [vmem:[#allocation2 + $0x38] sm:$0xff] %vm2862_vm11, %v2835_v10  ;;  %2406 = vrot.lane.b32.xlu1 %v5258_v9, %s5666_s12  ;;  %2404 = vrot.lane.b32.xlu0 %v5257_v12, %s5666_s12 }
 0x20b   : > { %v3402_v45 = vld [vmem:[#allocation2 + $0x48] sm:$0xff] }
 0x20c   : > { %v2391_v46 = vpop.permute.xlu1 %2390  ;;  %v2389_v50 = vpop.permute.xlu0 %2388  ;;  %v6707_v51 = vpack.c.bf16 %v3402_v45, %v3402_v45 }
 0x20d   : > { %2466 = vst.msk [vmem:[#allocation3 + $0x54] sm:$0xf] %vm2444_vm9, %v2391_v46  ;;  %2465 = vst.msk [vmem:[#allocation3 + $0x50] sm:$0xf] %vm2444_vm9, %v2389_v50  ;;  %v3400_v52 = vld [vmem:[#allocation2 + $0x30] sm:$0xff] }
 0x20e   : > { %2410 = vrot.lane.b32.xlu1 %v5354_v62, %s5666_s12  ;;  %2408 = vrot.lane.b32.xlu0 %v5353_v44, %s5666_s12  ;;  %v5421_v53 = vpack.c.bf16 %v3400_v52, %v3400_v52  ;;  %3114 = vst.msk [vmem:[#allocation4 + $0x18] sm:$0xf] %vm3107_vm13, %v6707_v51 }
 0x20f   : > { %v3403_v56 = vld [vmem:[#allocation2 + $0x50] sm:$0xff] }
 0x210   : > { %v2395_v35 = vpop.permute.xlu1 %2394  ;;  %v2393_v60 = vpop.permute.xlu0 %2392  ;;  %v6715_v1 = vpack.c.bf16 %v3403_v56, %v3403_v56  ;;  %3112 = vst.msk [vmem:[#allocation4 + $0x10] sm:$0xf] %vm3107_vm13, %v5421_v53  ;;  %v3147_v18 = vld [vmem:[#allocation2 + $0x51] sm:$0xff]  ;;  %v3146_v21 = vld [vmem:[#allocation2 + $0x49] sm:$0xff] }
 0x211   : > { %2468 = vst.msk [vmem:[#allocation3 + $0x5c] sm:$0xf] %vm2444_vm9, %v2395_v35  ;;  %2467 = vst.msk [vmem:[#allocation3 + $0x58] sm:$0xf] %vm2444_vm9, %v2393_v60  ;;  %v3401_v0 = vld [vmem:[#allocation2 + $0x38] sm:$0xff]  ;;  %v6759_v40 = vpack.c.bf16 %v3147_v18, %v3147_v18  ;;  %v5393_v30 = vpack.c.bf16 %v3146_v21, %v3146_v21 }
 0x212   : > { %3270 = vrot.lane.b32.xlu1 %v5388_v15, %s5660_s25  ;;  %3268 = vrot.lane.b32.xlu0 %v5387_v61, %s5660_s25  ;;  %v5422_v13 = vpack.c.bf16 %v3401_v0, %v3401_v0  ;;  %3115 = vst.msk [vmem:[#allocation4 + $0x1c] sm:$0xf] %vm3107_vm13, %v6715_v1  ;;  %v3658_v24 = vld [vmem:[#allocation2 + $0x39] sm:$0xff]  ;;  %v3657_v57 = vld [vmem:[#allocation2 + $0x31] sm:$0xff] }
 0x213   : > { %v5454_v28 = vpack.c.bf16 %v3658_v24, %v3658_v24  ;;  %v5453_v29 = vpack.c.bf16 %v3657_v57, %v3657_v57 }
 0x214   : > { %v855_v14 = vpop.permute.xlu1 %854  ;;  %v853_v4 = vpop.permute.xlu0 %852  ;;  %v5626_v7 = vld [vmem:[#allocation3 + $0x50] sm:$0xff]   ;;  %3113 = vst.msk [vmem:[#allocation4 + $0x14] sm:$0xf] %vm3107_vm13, %v5422_v13 }
 0x215   : > { %926 = vst.msk [vmem:[#allocation3 + $0x64] sm:$0xf] %vm900_vm3, %v855_v14  ;;  %925 = vst.msk [vmem:[#allocation3 + $0x60] sm:$0xf] %vm900_vm3, %v853_v4  ;;  %5546 = vmatprep.mubr.msk.bf16.mxu0 %vm2616_vm10, %v5626_v7 }
 0x216   : > { %3274 = vrot.lane.b32.xlu1 %v5390_v5, %s5660_s25  ;;  %3272 = vrot.lane.b32.xlu0 %v5389_v2, %s5660_s25 }
 0x218   : > { %v859_v9 = vpop.permute.xlu1 %858  ;;  %v857_v12 = vpop.permute.xlu0 %856  ;;  %v5627_v16 = vld [vmem:[#allocation3 + $0x58] sm:$0xff]  }
 0x219   : > { %928 = vst.msk [vmem:[#allocation3 + $0x6c] sm:$0xf] %vm900_vm3, %v859_v9  ;;  %927 = vst.msk [vmem:[#allocation3 + $0x68] sm:$0xf] %vm900_vm3, %v857_v12  ;;  %5547 = vmatmul.mubr.msk.bf16.gmra.mxu0 %vm2616_vm10, %v5627_v16 }
 0x21a   : > { %3528 = vrot.lane.b32.xlu1 %v6632_v55, %s5662_s27  ;;  %3526 = vrot.lane.b32.xlu0 %v6619_v59, %s5662_s27 }
 0x21c   : > { %v1113_v47 = vpop.permute.xlu1 %1112  ;;  %v1111_v20 = vpop.permute.xlu0 %1110 }
 0x21d   : > { %1184 = vst.msk [vmem:[#allocation3 + $0x64] sm:$0xf] %vm1158_vm4, %v1113_v47  ;;  %1183 = vst.msk [vmem:[#allocation3 + $0x60] sm:$0xf] %vm1158_vm4, %v1111_v20 }
 0x21e   : > { %3532 = vrot.lane.b32.xlu1 %v5422_v13, %s5662_s27  ;;  %3530 = vrot.lane.b32.xlu0 %v5421_v53, %s5662_s27 }
 0x220   : > { %v1117_v59 = vpop.permute.xlu1 %1116  ;;  %v1115_v55 = vpop.permute.xlu0 %1114 }
 0x221   : > { %1186 = vst.msk [vmem:[#allocation3 + $0x6c] sm:$0xf] %vm1158_vm4, %v1117_v59  ;;  %1185 = vst.msk [vmem:[#allocation3 + $0x68] sm:$0xf] %vm1158_vm4, %v1115_v55 }
 0x222   : > { %3785 = vrot.lane.b32.xlu1 %v5390_v5, %s5664_s29  ;;  %3783 = vrot.lane.b32.xlu0 %v5389_v2, %s5664_s29 }
 0x224   : > { %v1370_v22 = vpop.permute.xlu1 %1369  ;;  %v1368_v58 = vpop.permute.xlu0 %1367 }
 0x225   : > { %1441 = vst.msk [vmem:[#allocation3 + $0x64] sm:$0xf] %vm1415_vm5, %v1370_v22  ;;  %1440 = vst.msk [vmem:[#allocation3 + $0x60] sm:$0xf] %vm1415_vm5, %v1368_v58 }
 0x226   : > { %3789 = vrot.lane.b32.xlu1 %v5454_v28, %s5664_s29  ;;  %3787 = vrot.lane.b32.xlu0 %v5453_v29, %s5664_s29 }
 0x228   : > { %v1374_v36 = vpop.permute.xlu1 %1373  ;;  %v1372_v17 = vpop.permute.xlu0 %1371 }
 0x229   : > { %1443 = vst.msk [vmem:[#allocation3 + $0x6c] sm:$0xf] %vm1415_vm5, %v1374_v36  ;;  %1442 = vst.msk [vmem:[#allocation3 + $0x68] sm:$0xf] %vm1415_vm5, %v1372_v17 }
 0x22a   : > { %3278 = vrot.lane.b32.xlu1 %v5454_v28, %s5660_s25  ;;  %3276 = vrot.lane.b32.xlu0 %v5453_v29, %s5660_s25 }
 0x22c   : > { %v1627_v37 = vpop.permute.xlu1 %1626  ;;  %v1625_v38 = vpop.permute.xlu0 %1624 }
 0x22d   : > { %1698 = vst.msk [vmem:[#allocation3 + $0x64] sm:$0xf] %vm1672_vm6, %v1627_v37  ;;  %1697 = vst.msk [vmem:[#allocation3 + $0x60] sm:$0xf] %vm1672_vm6, %v1625_v38 }
 0x22e   : > { %3282 = vrot.lane.b32.xlu1 %v6759_v40, %s5660_s25  ;;  %3280 = vrot.lane.b32.xlu0 %v5393_v30, %s5660_s25 }
 0x230   : > { %v1631_v32 = vpop.permute.xlu1 %1630  ;;  %v1629_v41 = vpop.permute.xlu0 %1628 }
 0x231   : > { %1700 = vst.msk [vmem:[#allocation3 + $0x6c] sm:$0xf] %vm1672_vm6, %v1631_v32  ;;  %1699 = vst.msk [vmem:[#allocation3 + $0x68] sm:$0xf] %vm1672_vm6, %v1629_v41  ;;  %v5536_v3 = vpop.f32.mrf.mxu0 }
 0x232   : > { %3536 = vrot.lane.b32.xlu1 %v6715_v1, %s5662_s27  ;;  %3534 = vrot.lane.b32.xlu0 %v6707_v51, %s5662_s27  ;;  %v2744_v6 = vadd.f32 %v5536_v3, %v6581_v25 }
 0x233   : > { %v2735_v27 = vpop.f32.mrf.mxu0 }
 0x234   : > { %v1885_v23 = vpop.permute.xlu1 %1884  ;;  %v1883_v26 = vpop.permute.xlu0 %1882  ;;  %v2840_v11 = vmax.f32 %v2744_v6, 0.0  ;;  %v2736_v48 = vadd.f32 %v6581_v25, %v2735_v27 }
 0x235   : > { %1956 = vst.msk [vmem:[#allocation3 + $0x64] sm:$0xf] %vm1930_vm7, %v1885_v23  ;;  %1955 = vst.msk [vmem:[#allocation3 + $0x60] sm:$0xf] %vm1930_vm7, %v1883_v26  ;;  %v5537_v49 = vpop.f32.mrf.mxu0 }
 0x236   : > { %2925 = vst.msk [vmem:[#allocation2 + $0x78] sm:$0xff] %vm2862_vm11, %v2840_v11  ;;  %v2838_v33 = vmax.f32 %v2736_v48, 0.0  ;;  %v2747_v42 = vadd.f32 %v5537_v49, %v6581_v25 }
 0x237   : > { %v2738_v39 = vpop.f32.mrf.mxu0 }
 0x238   : > { %v1889_v10 = vpop.permute.xlu1 %1888  ;;  %v1887_v31 = vpop.permute.xlu0 %1886  ;;  %2923 = vst.msk [vmem:[#allocation2 + $0x60] sm:$0xff] %vm2862_vm11, %v2838_v33  ;;  %v2841_v62 = vmax.f32 %v2747_v42, 0.0  ;;  %v2739_v44 = vadd.f32 %v6581_v25, %v2738_v39 }
 0x239   : > { %1958 = vst.msk [vmem:[#allocation3 + $0x6c] sm:$0xf] %vm1930_vm7, %v1889_v10  ;;  %1957 = vst.msk [vmem:[#allocation3 + $0x68] sm:$0xf] %vm1930_vm7, %v1887_v31 }
 0x23a   : > { %2926 = vst.msk [vmem:[#allocation2 + $0x80] sm:$0xff] %vm2862_vm11, %v2841_v62  ;;  %v2839_v45 = vmax.f32 %v2739_v44, 0.0 }
 0x23c   : > { %v2142_v46 = vpop.permute.xlu1 %2141  ;;  %v2140_v50 = vpop.permute.xlu0 %2139  ;;  %2924 = vst.msk [vmem:[#allocation2 + $0x68] sm:$0xff] %vm2862_vm11, %v2839_v45 }
 0x23d   : > { %2213 = vst.msk [vmem:[#allocation3 + $0x64] sm:$0xf] %vm2187_vm8, %v2142_v46  ;;  %2212 = vst.msk [vmem:[#allocation3 + $0x60] sm:$0xf] %vm2187_vm8, %v2140_v50  ;;  %v3406_v51 = vld [vmem:[#allocation2 + $0x78] sm:$0xff] }
 0x23e   : > { %v5427_v52 = vpack.c.bf16 %v3406_v51, %v3406_v51 }
 0x23f   : > { %v3404_v53 = vld [vmem:[#allocation2 + $0x60] sm:$0xff] }
 0x240   : > { %v2146_v54 = vpop.permute.xlu1 %2145  ;;  %v2144_v34 = vpop.permute.xlu0 %2143  ;;  %v5425_v56 = vpack.c.bf16 %v3404_v53, %v3404_v53  ;;  %3118 = vst.msk [vmem:[#allocation4 + $0x28] sm:$0xf] %vm3107_vm13, %v5427_v52 }
 0x241   : > { %2215 = vst.msk [vmem:[#allocation3 + $0x6c] sm:$0xf] %vm2187_vm8, %v2146_v54  ;;  %2214 = vst.msk [vmem:[#allocation3 + $0x68] sm:$0xf] %vm2187_vm8, %v2144_v34  ;;  %v3407_v35 = vld [vmem:[#allocation2 + $0x80] sm:$0xff] }
 0x242   : > { %3538 = vrot.lane.b32.xlu0 %v5425_v56, %s5662_s27  ;;  %v5428_v61 = vpack.c.bf16 %v3407_v35, %v3407_v35  ;;  %3116 = vst.msk [vmem:[#allocation4 + $0x20] sm:$0xf] %vm3107_vm13, %v5425_v56  ;;  %v3150_v12 = vld [vmem:[#allocation2 + $0x79] sm:$0xff]  ;;  %v3151_v43 = vld [vmem:[#allocation2 + $0x81] sm:$0xff] }
 0x243   : > { %v3405_v1 = vld [vmem:[#allocation2 + $0x68] sm:$0xff]  ;;  %v6810_v20 = vpack.c.bf16 %v3150_v12, %v3150_v12  ;;  %v6817_v24 = vpack.c.bf16 %v3151_v43, %v3151_v43 }
 0x244   : > { %v2399_v60 = vpop.permute.xlu1 %2398  ;;  %v2397_v15 = vpop.permute.xlu0 %2396  ;;  %v5426_v63 = vpack.c.bf16 %v3405_v1, %v3405_v1  ;;  %3119 = vst.msk [vmem:[#allocation4 + $0x2c] sm:$0xf] %vm3107_vm13, %v5428_v61  ;;  %v3661_v8 = vld [vmem:[#allocation2 + $0x61] sm:$0xff]  ;;  %v3662_v4 = vld [vmem:[#allocation2 + $0x69] sm:$0xff] }
 0x245   : > { %2470 = vst.msk [vmem:[#allocation3 + $0x64] sm:$0xf] %vm2444_vm9, %v2399_v60  ;;  %2469 = vst.msk [vmem:[#allocation3 + $0x60] sm:$0xf] %vm2444_vm9, %v2397_v15  ;;  %v5457_v14 = vpack.c.bf16 %v3661_v8, %v3661_v8  ;;  %v5458_v9 = vpack.c.bf16 %v3662_v4, %v3662_v4 }
 0x246   : > { %3540 = vrot.lane.b32.xlu1 %v5426_v63, %s5662_s27  ;;  %3791 = vrot.lane.b32.xlu0 %v5393_v30, %s5664_s29  ;;  %3117 = vst.msk [vmem:[#allocation4 + $0x24] sm:$0xf] %vm3107_vm13, %v5426_v63 }
 0x248   : > { %v2403_v0 = vpop.permute.xlu1 %2402  ;;  %v2401_v13 = vpop.permute.xlu0 %2400 }
 0x249   : > { %2472 = vst.msk [vmem:[#allocation3 + $0x6c] sm:$0xf] %vm2444_vm9, %v2403_v0  ;;  %2471 = vst.msk [vmem:[#allocation3 + $0x68] sm:$0xf] %vm2444_vm9, %v2401_v13 }
 0x24a   : > { %3793 = vrot.lane.b32.xlu1 %v6759_v40, %s5664_s29  ;;  %3795 = vrot.lane.b32.xlu0 %v5457_v14, %s5664_s29 }
 0x24c   : > { %v863_v5 = vpop.permute.xlu1 %862  ;;  %v861_v2 = vpop.permute.xlu0 %860  ;;  %v5628_v7 = vld [vmem:[#allocation3 + $0x60] sm:$0xff]  }
 0x24d   : > { %930 = vst.msk [vmem:[#allocation3 + $0x74] sm:$0xf] %vm900_vm3, %v863_v5  ;;  %929 = vst.msk [vmem:[#allocation3 + $0x70] sm:$0xf] %vm900_vm3, %v861_v2  ;;  %5550 = vmatprep.mubr.msk.bf16.mxu0 %vm2616_vm10, %v5628_v7 }
 0x24e   : > { %3797 = vrot.lane.b32.xlu1 %v5458_v9, %s5664_s29  ;;  %3284 = vrot.lane.b32.xlu0 %v5457_v14, %s5660_s25 }
 0x250   : > { %v867_v16 = vpop.permute.xlu1 %866  ;;  %v865_v19 = vpop.permute.xlu0 %864  ;;  %v5629_v47 = vld [vmem:[#allocation3 + $0x68] sm:$0xff]  }
 0x251   : > { %932 = vst.msk [vmem:[#allocation3 + $0x7c] sm:$0xf] %vm900_vm3, %v867_v16  ;;  %931 = vst.msk [vmem:[#allocation3 + $0x78] sm:$0xf] %vm900_vm3, %v865_v19  ;;  %5551 = vmatmul.mubr.msk.bf16.gmra.mxu0 %vm2616_vm10, %v5629_v47 }
 0x252   : > { %3286 = vrot.lane.b32.xlu1 %v5458_v9, %s5660_s25  ;;  %3288 = vrot.lane.b32.xlu0 %v6810_v20, %s5660_s25 }
 0x254   : > { %v1121_v59 = vpop.permute.xlu1 %1120  ;;  %v1119_v55 = vpop.permute.xlu0 %1118 }
 0x255   : > { %1188 = vst.msk [vmem:[#allocation3 + $0x74] sm:$0xf] %vm1158_vm4, %v1121_v59  ;;  %1187 = vst.msk [vmem:[#allocation3 + $0x70] sm:$0xf] %vm1158_vm4, %v1119_v55 }
 0x256   : > { %3290 = vrot.lane.b32.xlu1 %v6817_v24, %s5660_s25  ;;  %3542 = vrot.lane.b32.xlu0 %v5427_v52, %s5662_s27 }
 0x258   : > { %v1125_v57 = vpop.permute.xlu1 %1124  ;;  %v1123_v22 = vpop.permute.xlu0 %1122 }
 0x259   : > { %1190 = vst.msk [vmem:[#allocation3 + $0x7c] sm:$0xf] %vm1158_vm4, %v1125_v57  ;;  %1189 = vst.msk [vmem:[#allocation3 + $0x78] sm:$0xf] %vm1158_vm4, %v1123_v22 }
 0x25a   : > { %3544 = vrot.lane.b32.xlu1 %v5428_v61, %s5662_s27 }
 0x25c   : > { %v1378_v58 = vpop.permute.xlu1 %1377  ;;  %v1376_v28 = vpop.permute.xlu0 %1375 }
 0x25d   : > { %1445 = vst.msk [vmem:[#allocation3 + $0x74] sm:$0xf] %vm1415_vm5, %v1378_v58  ;;  %1444 = vst.msk [vmem:[#allocation3 + $0x70] sm:$0xf] %vm1415_vm5, %v1376_v28 }
 0x260   : > { %v1382_v29 = vpop.permute.xlu1 %1381  ;;  %v1380_v36 = vpop.permute.xlu0 %1379 }
 0x261   : > { %1447 = vst.msk [vmem:[#allocation3 + $0x7c] sm:$0xf] %vm1415_vm5, %v1382_v29  ;;  %1446 = vst.msk [vmem:[#allocation3 + $0x78] sm:$0xf] %vm1415_vm5, %v1380_v36 }
 0x264   : > { %v1635_v17 = vpop.permute.xlu1 %1634  ;;  %v1633_v18 = vpop.permute.xlu0 %1632 }
 0x265   : > { %1702 = vst.msk [vmem:[#allocation3 + $0x74] sm:$0xf] %vm1672_vm6, %v1635_v17  ;;  %1701 = vst.msk [vmem:[#allocation3 + $0x70] sm:$0xf] %vm1672_vm6, %v1633_v18  ;;  %v6900_v18 = vld [vmem:[%s7220_s2] ss:$0 sm:$0xff] }
 0x268   : > { %v1639_v21 = vpop.permute.xlu1 %1638  ;;  %v1637_v37 = vpop.permute.xlu0 %1636 }
 0x269   : > { %1704 = vst.msk [vmem:[#allocation3 + $0x7c] sm:$0xf] %vm1672_vm6, %v1639_v21  ;;  %1703 = vst.msk [vmem:[#allocation3 + $0x78] sm:$0xf] %vm1672_vm6, %v1637_v37  ;;  %v5540_v38 = vpop.f32.mrf.mxu0 }
 0x26a   : > { %v2760_v40 = vadd.f32 %v5540_v38, %v6581_v25 }
 0x26b   : > { %v2751_v41 = vpop.f32.mrf.mxu0 }
 0x26c   : > { %v1893_v30 = vpop.permute.xlu1 %1892  ;;  %v1891_v32 = vpop.permute.xlu0 %1890  ;;  %v2844_v3 = vmax.f32 %v2760_v40, 0.0  ;;  %v2752_v6 = vadd.f32 %v6581_v25, %v2751_v41 }
 0x26d   : > { %1960 = vst.msk [vmem:[#allocation3 + $0x74] sm:$0xf] %vm1930_vm7, %v1893_v30  ;;  %1959 = vst.msk [vmem:[#allocation3 + $0x70] sm:$0xf] %vm1930_vm7, %v1891_v32  ;;  %v5541_v23 = vpop.f32.mrf.mxu0 }
 0x26e   : > { %2929 = vst.msk [vmem:[#allocation2 + $0xa8] sm:$0xff] %vm2862_vm11, %v2844_v3  ;;  %v2842_v26 = vmax.f32 %v2752_v6, 0.0  ;;  %v2763_v27 = vadd.f32 %v5541_v23, %v6581_v25 }
 0x26f   : > { %v2754_v49 = vpop.f32.mrf.mxu0 }
 0x270   : > { %v1897_v11 = vpop.permute.xlu1 %1896  ;;  %v1895_v48 = vpop.permute.xlu0 %1894  ;;  %2927 = vst.msk [vmem:[#allocation2 + $0x90] sm:$0xff] %vm2862_vm11, %v2842_v26  ;;  %v2845_v33 = vmax.f32 %v2763_v27, 0.0  ;;  %v2755_v42 = vadd.f32 %v6581_v25, %v2754_v49 }
 0x271   : > { %1962 = vst.msk [vmem:[#allocation3 + $0x7c] sm:$0xf] %vm1930_vm7, %v1897_v11  ;;  %1961 = vst.msk [vmem:[#allocation3 + $0x78] sm:$0xf] %vm1930_vm7, %v1895_v48 }
 0x272   : > { %2930 = vst.msk [vmem:[#allocation2 + $0xb0] sm:$0xff] %vm2862_vm11, %v2845_v33  ;;  %v2843_v10 = vmax.f32 %v2755_v42, 0.0 }
 0x274   : > { %v2150_v31 = vpop.permute.xlu1 %2149  ;;  %v2148_v39 = vpop.permute.xlu0 %2147  ;;  %2928 = vst.msk [vmem:[#allocation2 + $0x98] sm:$0xff] %vm2862_vm11, %v2843_v10 }
 0x275   : > { %2217 = vst.msk [vmem:[#allocation3 + $0x74] sm:$0xf] %vm2187_vm8, %v2150_v31  ;;  %2216 = vst.msk [vmem:[#allocation3 + $0x70] sm:$0xf] %vm2187_vm8, %v2148_v39  ;;  %v3410_v62 = vld [vmem:[#allocation2 + $0xa8] sm:$0xff] }
 0x276   : > { %v5431_v46 = vpack.c.bf16 %v3410_v62, %v3410_v62 }
 0x277   : > { %v3408_v25 = vld [vmem:[#allocation2 + $0x90] sm:$0xff] }
 0x278   : > { %v2154_v44 = vpop.permute.xlu1 %2153  ;;  %v2152_v45 = vpop.permute.xlu0 %2151  ;;  %v5429_v50 = vpack.c.bf16 %v3408_v25, %v3408_v25  ;;  %3122 = vst.msk [vmem:[#allocation4 + $0x38] sm:$0xf] %vm3107_vm13, %v5431_v46 }
 0x279   : > { %2219 = vst.msk [vmem:[#allocation3 + $0x7c] sm:$0xf] %vm2187_vm8, %v2154_v44  ;;  %2218 = vst.msk [vmem:[#allocation3 + $0x78] sm:$0xf] %vm2187_vm8, %v2152_v45  ;;  %v3411_v51 = vld [vmem:[#allocation2 + $0xb0] sm:$0xff] }
 0x27a   : > { %3546 = vrot.lane.b32.xlu0 %v5429_v50, %s5662_s27  ;;  %v5432_v52 = vpack.c.bf16 %v3411_v51, %v3411_v51  ;;  %3120 = vst.msk [vmem:[#allocation4 + $0x30] sm:$0xf] %vm3107_vm13, %v5429_v50  ;;  %v3154_v14 = vld [vmem:[#allocation2 + $0xa9] sm:$0xff]  ;;  %v3155_v9 = vld [vmem:[#allocation2 + $0xb1] sm:$0xff] }
 0x27b   : > { %v3409_v53 = vld [vmem:[#allocation2 + $0x98] sm:$0xff]  ;;  %v6872_v7 = vpack.c.bf16 %v3154_v14, %v3154_v14  ;;  %v6879_v19 = vpack.c.bf16 %v3155_v9, %v3155_v9 }
 0x27c   : > { %v2407_v54 = vpop.permute.xlu1 %2406  ;;  %v2405_v34 = vpop.permute.xlu0 %2404  ;;  %v5430_v56 = vpack.c.bf16 %v3409_v53, %v3409_v53  ;;  %3123 = vst.msk [vmem:[#allocation4 + $0x3c] sm:$0xf] %vm3107_vm13, %v5432_v52  ;;  %v3665_v35 = vld [vmem:[#allocation2 + $0x91] sm:$0xff]  ;;  %v3666_v1 = vld [vmem:[#allocation2 + $0x99] sm:$0xff] }
 0x27d   : > { %2474 = vst.msk [vmem:[#allocation3 + $0x74] sm:$0xf] %vm2444_vm9, %v2407_v54  ;;  %2473 = vst.msk [vmem:[#allocation3 + $0x70] sm:$0xf] %vm2444_vm9, %v2405_v34  ;;  %v5461_v61 = vpack.c.bf16 %v3665_v35, %v3665_v35  ;;  %v5462_v13 = vpack.c.bf16 %v3666_v1, %v3666_v1 }
 0x27e   : > { %3548 = vrot.lane.b32.xlu1 %v5430_v56, %s5662_s27  ;;  %3799 = vrot.lane.b32.xlu0 %v6810_v20, %s5664_s29  ;;  %3121 = vst.msk [vmem:[#allocation4 + $0x34] sm:$0xf] %vm3107_vm13, %v5430_v56 }
 0x280   : > { %v2411_v60 = vpop.permute.xlu1 %2410  ;;  %v2409_v15 = vpop.permute.xlu0 %2408 }
 0x281   : > { %2476 = vst.msk [vmem:[#allocation3 + $0x7c] sm:$0xf] %vm2444_vm9, %v2411_v60  ;;  %2475 = vst.msk [vmem:[#allocation3 + $0x78] sm:$0xf] %vm2444_vm9, %v2409_v15 }
 0x282   : > { %3801 = vrot.lane.b32.xlu1 %v6817_v24, %s5664_s29  ;;  %3803 = vrot.lane.b32.xlu0 %v5461_v61, %s5664_s29 }
 0x284   : > { %v3271_v63 = vpop.permute.xlu1 %3270  ;;  %v3269_v8 = vpop.permute.xlu0 %3268  ;;  %v5630_v0 = vld [vmem:[#allocation3 + $0x70] sm:$0xff]  }
 0x285   : > { %3366 = vst.msk [vmem:[#allocation4 + $0x4] sm:$0xf] %vm3364_vm14, %v3271_v63  ;;  %3365 = vst.msk [vmem:[#allocation4] sm:$0xf] %vm3364_vm14, %v3269_v8  ;;  %5554 = vmatprep.mubr.msk.bf16.mxu0 %vm2616_vm10, %v5630_v0 }
 0x286   : > { %3805 = vrot.lane.b32.xlu1 %v5462_v13, %s5664_s29  ;;  %3292 = vrot.lane.b32.xlu0 %v5461_v61, %s5660_s25 }
 0x288   : > { %v3275_v4 = vpop.permute.xlu1 %3274  ;;  %v3273_v5 = vpop.permute.xlu0 %3272  ;;  %v5631_v2 = vld [vmem:[#allocation3 + $0x78] sm:$0xff]  }
 0x289   : > { %3368 = vst.msk [vmem:[#allocation4 + $0xc] sm:$0xf] %vm3364_vm14, %v3275_v4  ;;  %3367 = vst.msk [vmem:[#allocation4 + $0x8] sm:$0xf] %vm3364_vm14, %v3273_v5  ;;  %5555 = vmatmul.mubr.msk.bf16.gmra.mxu0 %vm2616_vm10, %v5631_v2 }
 0x28a   : > { %3294 = vrot.lane.b32.xlu1 %v5462_v13, %s5660_s25  ;;  %3296 = vrot.lane.b32.xlu0 %v6872_v7, %s5660_s25 }
 0x28c   : > { %v3529_v12 = vpop.permute.xlu1 %3528  ;;  %v3527_v16 = vpop.permute.xlu0 %3526 }
 0x28d   : > { %3624 = vst.msk [vmem:[#allocation4 + $0x4] sm:$0xf] %vm3622_vm15, %v3529_v12  ;;  %3623 = vst.msk [vmem:[#allocation4] sm:$0xf] %vm3622_vm15, %v3527_v16 }
 0x28e   : > { %3298 = vrot.lane.b32.xlu1 %v6879_v19, %s5660_s25  ;;  %3550 = vrot.lane.b32.xlu0 %v5431_v46, %s5662_s27 }
 0x290   : > { %v3533_v47 = vpop.permute.xlu1 %3532  ;;  %v3531_v20 = vpop.permute.xlu0 %3530 }
 0x291   : > { %3626 = vst.msk [vmem:[#allocation4 + $0xc] sm:$0xf] %vm3622_vm15, %v3533_v47  ;;  %3625 = vst.msk [vmem:[#allocation4 + $0x8] sm:$0xf] %vm3622_vm15, %v3531_v20 }
 0x292   : > { %3552 = vrot.lane.b32.xlu1 %v5432_v52, %s5662_s27 }
 0x294   : > { %v3786_v43 = vpop.permute.xlu1 %3785  ;;  %v3784_v59 = vpop.permute.xlu0 %3783 }
 0x295   : > { %3881 = vst.msk [vmem:[#allocation4 + $0x4] sm:$0xf] %vm3879_vm0, %v3786_v43  ;;  %3880 = vst.msk [vmem:[#allocation4] sm:$0xf] %vm3879_vm0, %v3784_v59 }
 0x298   : > { %v3790_v55 = vpop.permute.xlu1 %3789  ;;  %v3788_v24 = vpop.permute.xlu0 %3787 }
 0x299   : > { %3883 = vst.msk [vmem:[#allocation4 + $0xc] sm:$0xf] %vm3879_vm0, %v3790_v55  ;;  %3882 = vst.msk [vmem:[#allocation4 + $0x8] sm:$0xf] %vm3879_vm0, %v3788_v24 }
 0x29c   : > { %v3279_v57 = vpop.permute.xlu1 %3278  ;;  %v3277_v22 = vpop.permute.xlu0 %3276  ;;  %v5634_v58 = vld [vmem:[#allocation4] sm:$0xff]  }
 0x29d   : > { %3370 = vst.msk [vmem:[#allocation4 + $0x14] sm:$0xf] %vm3364_vm14, %v3279_v57  ;;  %3369 = vst.msk [vmem:[#allocation4 + $0x10] sm:$0xf] %vm3364_vm14, %v3277_v22  ;;  %5562 = vmatprep.mubr.msk.bf16.mxu1 %vm4047_vm1, %v5634_v58 }
 0x2a0   : > { %v3283_v28 = vpop.permute.xlu1 %3282  ;;  %v3281_v29 = vpop.permute.xlu0 %3280  ;;  %v5635_v36 = vld [vmem:[#allocation4 + $0x8] sm:$0xff]  }
 0x2a1   : > { %3372 = vst.msk [vmem:[#allocation4 + $0x1c] sm:$0xf] %vm3364_vm14, %v3283_v28  ;;  %3371 = vst.msk [vmem:[#allocation4 + $0x18] sm:$0xf] %vm3364_vm14, %v3281_v29  ;;  %5563 = vmatmul.mubr.msk.bf16.vlgmr.msra.gmra.mxu1 %vm4047_vm1, %v5635_v36  ;;  %v5544_v17 = vpop.f32.mrf.mxu0 }
 0x2a2   : > { %v2776_v21 = vadd.f32 %v6900_v18, %v5544_v17 }
 0x2a3   : > { %v2767_v40 = vpop.f32.mrf.mxu0 }
 0x2a4   : > { %v3537_v37 = vpop.permute.xlu1 %3536  ;;  %v3535_v38 = vpop.permute.xlu0 %3534  ;;  %v2848_v30 = vmax.f32 %v2776_v21, 0.0  ;;  %v2768_v32 = vadd.f32 %v6900_v18, %v2767_v40 }
 0x2a5   : > { %3628 = vst.msk [vmem:[#allocation4 + $0x14] sm:$0xf] %vm3622_vm15, %v3537_v37  ;;  %3627 = vst.msk [vmem:[#allocation4 + $0x10] sm:$0xf] %vm3622_vm15, %v3535_v38  ;;  %v5545_v41 = vpop.f32.mrf.mxu0 }
 0x2a6   : > { %2933 = vst.msk [vmem:[#allocation2 + $0xd8] sm:$0xff] %vm2862_vm11, %v2848_v30  ;;  %v2846_v3 = vmax.f32 %v2768_v32, 0.0  ;;  %v2779_v6 = vadd.f32 %v6900_v18, %v5545_v41 }
 0x2a7   : > { %v2770_v23 = vpop.f32.mrf.mxu0 }
 0x2a8   : > { %2931 = vst.msk [vmem:[#allocation2 + $0xc0] sm:$0xff] %vm2862_vm11, %v2846_v3  ;;  %v2849_v26 = vmax.f32 %v2779_v6, 0.0  ;;  %v2771_v27 = vadd.f32 %v6900_v18, %v2770_v23 }
 0x2aa   : > { %2934 = vst.msk [vmem:[#allocation2 + $0xe0] sm:$0xff] %vm2862_vm11, %v2849_v26  ;;  %v2847_v11 = vmax.f32 %v2771_v27, 0.0 }
 0x2ac   : > { %2932 = vst.msk [vmem:[#allocation2 + $0xc8] sm:$0xff] %vm2862_vm11, %v2847_v11 }
 0x2ad   : > { %v3414_v48 = vld [vmem:[#allocation2 + $0xd8] sm:$0xff] }
 0x2ae   : > { %v5435_v49 = vpack.c.bf16 %v3414_v48, %v3414_v48 }
 0x2af   : > { %v3412_v33 = vld [vmem:[#allocation2 + $0xc0] sm:$0xff] }
 0x2b0   : > { %v5433_v42 = vpack.c.bf16 %v3412_v33, %v3412_v33  ;;  %3126 = vst.msk [vmem:[#allocation4 + $0x48] sm:$0xf] %vm3107_vm13, %v5435_v49 }
 0x2b1   : > { %v3415_v10 = vld [vmem:[#allocation2 + $0xe0] sm:$0xff] }
 0x2b2   : > { %3554 = vrot.lane.b32.xlu0 %v5433_v42, %s5662_s27  ;;  %v5436_v31 = vpack.c.bf16 %v3415_v10, %v3415_v10  ;;  %3124 = vst.msk [vmem:[#allocation4 + $0x40] sm:$0xf] %vm3107_vm13, %v5433_v42  ;;  %v3158_v53 = vld [vmem:[#allocation2 + $0xd9] sm:$0xff]  ;;  %v3159_v15 = vld [vmem:[#allocation2 + $0xe1] sm:$0xff] }
 0x2b3   : > { %v3413_v39 = vld [vmem:[#allocation2 + $0xc8] sm:$0xff]  ;;  %v5405_v60 = vpack.c.bf16 %v3158_v53, %v3158_v53  ;;  %v5406_v63 = vpack.c.bf16 %v3159_v15, %v3159_v15 }
 0x2b4   : > { %v3539_v62 = vpop.permute.xlu0 %3538  ;;  %v5434_v44 = vpack.c.bf16 %v3413_v39, %v3413_v39  ;;  %3127 = vst.msk [vmem:[#allocation4 + $0x4c] sm:$0xf] %vm3107_vm13, %v5436_v31  ;;  %v3669_v45 = vld [vmem:[#allocation2 + $0xc1] sm:$0xff]  ;;  %v3670_v51 = vld [vmem:[#allocation2 + $0xc9] sm:$0xff] }
 0x2b5   : > { %3629 = vst.msk [vmem:[#allocation4 + $0x18] sm:$0xf] %vm3622_vm15, %v3539_v62  ;;  %v5465_v50 = vpack.c.bf16 %v3669_v45, %v3669_v45  ;;  %v5466_v52 = vpack.c.bf16 %v3670_v51, %v3670_v51 }
 0x2b6   : > { %3556 = vrot.lane.b32.xlu1 %v5434_v44, %s5662_s27  ;;  %3807 = vrot.lane.b32.xlu0 %v6872_v7, %s5664_s29  ;;  %3125 = vst.msk [vmem:[#allocation4 + $0x44] sm:$0xf] %vm3107_vm13, %v5434_v44 }
 0x2b8   : > { %v3541_v46 = vpop.permute.xlu1 %3540  ;;  %v3792_v25 = vpop.permute.xlu0 %3791 }
 0x2b9   : > { %3630 = vst.msk [vmem:[#allocation4 + $0x1c] sm:$0xf] %vm3622_vm15, %v3541_v46 }
 0x2ba   : > { %3884 = vst.msk [vmem:[#allocation4 + $0x10] sm:$0xf] %vm3879_vm0, %v3792_v25  ;;  %3809 = vrot.lane.b32.xlu1 %v6879_v19, %s5664_s29  ;;  %3811 = vrot.lane.b32.xlu0 %v5465_v50, %s5664_s29 }
 0x2bc   : > { %v3794_v54 = vpop.permute.xlu1 %3793  ;;  %v3796_v34 = vpop.permute.xlu0 %3795 }
 0x2bd   : > { %3885 = vst.msk [vmem:[#allocation4 + $0x14] sm:$0xf] %vm3879_vm0, %v3794_v54  ;;  %3886 = vst.msk [vmem:[#allocation4 + $0x18] sm:$0xf] %vm3879_vm0, %v3796_v34 }
 0x2be   : > { %3813 = vrot.lane.b32.xlu1 %v5466_v52, %s5664_s29  ;;  %3300 = vrot.lane.b32.xlu0 %v5465_v50, %s5660_s25 }
 0x2c0   : > { %v3798_v56 = vpop.permute.xlu1 %3797  ;;  %v3285_v35 = vpop.permute.xlu0 %3284 }
 0x2c1   : > { %3887 = vst.msk [vmem:[#allocation4 + $0x1c] sm:$0xf] %vm3879_vm0, %v3798_v56 }
 0x2c2   : > { %3373 = vst.msk [vmem:[#allocation4 + $0x20] sm:$0xf] %vm3364_vm14, %v3285_v35  ;;  %3302 = vrot.lane.b32.xlu1 %v5466_v52, %s5660_s25  ;;  %3304 = vrot.lane.b32.xlu0 %v5405_v60, %s5660_s25 }
 0x2c4   : > { %v3287_v61 = vpop.permute.xlu1 %3286  ;;  %v3289_v1 = vpop.permute.xlu0 %3288  ;;  %v5636_v8 = vld [vmem:[#allocation4 + $0x10] sm:$0xff]  }
 0x2c5   : > { %3374 = vst.msk [vmem:[#allocation4 + $0x24] sm:$0xf] %vm3364_vm14, %v3287_v61  ;;  %3375 = vst.msk [vmem:[#allocation4 + $0x28] sm:$0xf] %vm3364_vm14, %v3289_v1  ;;  %5566 = vmatprep.mubr.msk.bf16.mxu1 %vm4047_vm1, %v5636_v8 }
 0x2c6   : > { %3306 = vrot.lane.b32.xlu1 %v5406_v63, %s5660_s25  ;;  %3558 = vrot.lane.b32.xlu0 %v5435_v49, %s5662_s27 }
 0x2c8   : > { %v3291_v0 = vpop.permute.xlu1 %3290  ;;  %v3543_v13 = vpop.permute.xlu0 %3542  ;;  %v5637_v14 = vld [vmem:[#allocation4 + $0x18] sm:$0xff]  }
 0x2c9   : > { %3376 = vst.msk [vmem:[#allocation4 + $0x2c] sm:$0xf] %vm3364_vm14, %v3291_v0  ;;  %5567 = vmatmul.mubr.msk.bf16.gmra.mxu1 %vm4047_vm1, %v5637_v14 }
 0x2ca   : > { %3631 = vst.msk [vmem:[#allocation4 + $0x20] sm:$0xf] %vm3622_vm15, %v3543_v13  ;;  %3560 = vrot.lane.b32.xlu1 %v5436_v31, %s5662_s27 }
 0x2cc   : > { %v3545_v4 = vpop.permute.xlu1 %3544 }
 0x2cd   : > { %3632 = vst.msk [vmem:[#allocation4 + $0x24] sm:$0xf] %vm3622_vm15, %v3545_v4 }
 0x2d9   : > { %v5548_v5 = vpop.f32.mrf.mxu0 }
 0x2da   : > { %v2792_v2 = vadd.f32 %v6900_v18, %v5548_v5 }
 0x2db   : > { %v2783_v7 = vpop.f32.mrf.mxu0 }
 0x2dc   : > { %v2852_v9 = vmax.f32 %v2792_v2, 0.0  ;;  %v2784_v12 = vadd.f32 %v6900_v18, %v2783_v7 }
 0x2dd   : > { %v5549_v16 = vpop.f32.mrf.mxu0 }
 0x2de   : > { %2937 = vst.msk [vmem:[#allocation2 + $0x108] sm:$0xff] %vm2862_vm11, %v2852_v9  ;;  %v2850_v19 = vmax.f32 %v2784_v12, 0.0  ;;  %v2795_v47 = vadd.f32 %v6900_v18, %v5549_v16 }
 0x2df   : > { %v2786_v20 = vpop.f32.mrf.mxu0 }
 0x2e0   : > { %2935 = vst.msk [vmem:[#allocation2 + $0xf0] sm:$0xff] %vm2862_vm11, %v2850_v19  ;;  %v2853_v43 = vmax.f32 %v2795_v47, 0.0  ;;  %v2787_v59 = vadd.f32 %v6900_v18, %v2786_v20 }
 0x2e2   : > { %2938 = vst.msk [vmem:[#allocation2 + $0x110] sm:$0xff] %vm2862_vm11, %v2853_v43  ;;  %v2851_v55 = vmax.f32 %v2787_v59, 0.0 }
 0x2e4   : > { %2936 = vst.msk [vmem:[#allocation2 + $0xf8] sm:$0xff] %vm2862_vm11, %v2851_v55 }
 0x2e5   : > { %v3418_v24 = vld [vmem:[#allocation2 + $0x108] sm:$0xff] }
 0x2e6   : > { %v5439_v57 = vpack.c.bf16 %v3418_v24, %v3418_v24 }
 0x2e7   : > { %v3416_v22 = vld [vmem:[#allocation2 + $0xf0] sm:$0xff] }
 0x2e8   : > { %v5437_v58 = vpack.c.bf16 %v3416_v22, %v3416_v22  ;;  %3130 = vst.msk [vmem:[#allocation4 + $0x58] sm:$0xf] %vm3107_vm13, %v5439_v57 }
 0x2e9   : > { %v3419_v28 = vld [vmem:[#allocation2 + $0x110] sm:$0xff] }
 0x2ea   : > { %3562 = vrot.lane.b32.xlu0 %v5437_v58, %s5662_s27  ;;  %v5440_v29 = vpack.c.bf16 %v3419_v28, %v3419_v28  ;;  %3128 = vst.msk [vmem:[#allocation4 + $0x50] sm:$0xf] %vm3107_vm13, %v5437_v58  ;;  %v3162_v23 = vld [vmem:[#allocation2 + $0x109] sm:$0xff]  ;;  %v3163_v48 = vld [vmem:[#allocation2 + $0x111] sm:$0xff] }
 0x2eb   : > { %v3417_v36 = vld [vmem:[#allocation2 + $0xf8] sm:$0xff]  ;;  %v5409_v11 = vpack.c.bf16 %v3162_v23, %v3162_v23  ;;  %v5410_v42 = vpack.c.bf16 %v3163_v48, %v3163_v48 }
 0x2ec   : > { %v3547_v17 = vpop.permute.xlu0 %3546  ;;  %v5438_v21 = vpack.c.bf16 %v3417_v36, %v3417_v36  ;;  %3131 = vst.msk [vmem:[#allocation4 + $0x5c] sm:$0xf] %vm3107_vm13, %v5440_v29  ;;  %v3673_v37 = vld [vmem:[#allocation2 + $0xf1] sm:$0xff]  ;;  %v3674_v32 = vld [vmem:[#allocation2 + $0xf9] sm:$0xff] }
 0x2ed   : > { %3633 = vst.msk [vmem:[#allocation4 + $0x28] sm:$0xf] %vm3622_vm15, %v3547_v17  ;;  %v5469_v30 = vpack.c.bf16 %v3673_v37, %v3673_v37  ;;  %v5470_v6 = vpack.c.bf16 %v3674_v32, %v3674_v32 }
 0x2ee   : > { %3564 = vrot.lane.b32.xlu1 %v5438_v21, %s5662_s27  ;;  %3815 = vrot.lane.b32.xlu0 %v5405_v60, %s5664_s29  ;;  %3129 = vst.msk [vmem:[#allocation4 + $0x54] sm:$0xf] %vm3107_vm13, %v5438_v21 }
 0x2f0   : > { %v3549_v38 = vpop.permute.xlu1 %3548  ;;  %v3800_v40 = vpop.permute.xlu0 %3799 }
 0x2f1   : > { %3634 = vst.msk [vmem:[#allocation4 + $0x2c] sm:$0xf] %vm3622_vm15, %v3549_v38 }
 0x2f2   : > { %3888 = vst.msk [vmem:[#allocation4 + $0x20] sm:$0xf] %vm3879_vm0, %v3800_v40  ;;  %3817 = vrot.lane.b32.xlu1 %v5406_v63, %s5664_s29  ;;  %3819 = vrot.lane.b32.xlu0 %v5469_v30, %s5664_s29 }
 0x2f4   : > { %v3802_v41 = vpop.permute.xlu1 %3801  ;;  %v3804_v3 = vpop.permute.xlu0 %3803 }
 0x2f5   : > { %3889 = vst.msk [vmem:[#allocation4 + $0x24] sm:$0xf] %vm3879_vm0, %v3802_v41  ;;  %3890 = vst.msk [vmem:[#allocation4 + $0x28] sm:$0xf] %vm3879_vm0, %v3804_v3 }
 0x2f6   : > { %3821 = vrot.lane.b32.xlu1 %v5470_v6, %s5664_s29  ;;  %3308 = vrot.lane.b32.xlu0 %v5469_v30, %s5660_s25 }
 0x2f8   : > { %v3806_v26 = vpop.permute.xlu1 %3805  ;;  %v3293_v27 = vpop.permute.xlu0 %3292 }
 0x2f9   : > { %3891 = vst.msk [vmem:[#allocation4 + $0x2c] sm:$0xf] %vm3879_vm0, %v3806_v26 }
 0x2fa   : > { %3377 = vst.msk [vmem:[#allocation4 + $0x30] sm:$0xf] %vm3364_vm14, %v3293_v27  ;;  %3310 = vrot.lane.b32.xlu1 %v5470_v6, %s5660_s25  ;;  %3312 = vrot.lane.b32.xlu0 %v5409_v11, %s5660_s25 }
 0x2fc   : > { %v3295_v49 = vpop.permute.xlu1 %3294  ;;  %v3297_v33 = vpop.permute.xlu0 %3296  ;;  %v5638_v10 = vld [vmem:[#allocation4 + $0x20] sm:$0xff]  }
 0x2fd   : > { %3378 = vst.msk [vmem:[#allocation4 + $0x34] sm:$0xf] %vm3364_vm14, %v3295_v49  ;;  %3379 = vst.msk [vmem:[#allocation4 + $0x38] sm:$0xf] %vm3364_vm14, %v3297_v33  ;;  %5570 = vmatprep.mubr.msk.bf16.mxu1 %vm4047_vm1, %v5638_v10 }
 0x2fe   : > { %3314 = vrot.lane.b32.xlu1 %v5410_v42, %s5660_s25  ;;  %3566 = vrot.lane.b32.xlu0 %v5439_v57, %s5662_s27 }
 0x300   : > { %v3299_v31 = vpop.permute.xlu1 %3298  ;;  %v3551_v39 = vpop.permute.xlu0 %3550  ;;  %v5639_v62 = vld [vmem:[#allocation4 + $0x28] sm:$0xff]  }
 0x301   : > { %3380 = vst.msk [vmem:[#allocation4 + $0x3c] sm:$0xf] %vm3364_vm14, %v3299_v31  ;;  %5571 = vmatmul.mubr.msk.bf16.gmra.mxu1 %vm4047_vm1, %v5639_v62 }
 0x302   : > { %3635 = vst.msk [vmem:[#allocation4 + $0x30] sm:$0xf] %vm3622_vm15, %v3551_v39  ;;  %3568 = vrot.lane.b32.xlu1 %v5440_v29, %s5662_s27 }
 0x304   : > { %v3553_v44 = vpop.permute.xlu1 %3552 }
 0x305   : > { %3636 = vst.msk [vmem:[#allocation4 + $0x34] sm:$0xf] %vm3622_vm15, %v3553_v44 }
 0x311   : > { %v5552_v45 = vpop.f32.mrf.mxu0 }
 0x312   : > { %v2808_v46 = vadd.f32 %v6900_v18, %v5552_v45  ;;  %v7045_v45 = vld [vmem:[%s7222_s4] ss:$0 sm:$0xff] }
 0x313   : > { %v2799_v25 = vpop.f32.mrf.mxu0 }
 0x314   : > { %v2856_v50 = vmax.f32 %v2808_v46, 0.0  ;;  %v2800_v51 = vadd.f32 %v6900_v18, %v2799_v25 }
 0x315   : > { %v5553_v54 = vpop.f32.mrf.mxu0 }
 0x316   : > { %2941 = vst.msk [vmem:[#allocation2 + $0x138] sm:$0xff] %vm2862_vm11, %v2856_v50  ;;  %v2854_v34 = vmax.f32 %v2800_v51, 0.0  ;;  %v2811_v52 = vadd.f32 %v6900_v18, %v5553_v54 }
 0x317   : > { %v2802_v53 = vpop.f32.mrf.mxu0 }
 0x318   : > { %2939 = vst.msk [vmem:[#allocation2 + $0x120] sm:$0xff] %vm2862_vm11, %v2854_v34  ;;  %v2857_v56 = vmax.f32 %v2811_v52, 0.0  ;;  %v2803_v35 = vadd.f32 %v6900_v18, %v2802_v53 }
 0x31a   : > { %2942 = vst.msk [vmem:[#allocation2 + $0x140] sm:$0xff] %vm2862_vm11, %v2857_v56  ;;  %v2855_v60 = vmax.f32 %v2803_v35, 0.0 }
 0x31c   : > { %2940 = vst.msk [vmem:[#allocation2 + $0x128] sm:$0xff] %vm2862_vm11, %v2855_v60 }
 0x31d   : > { %v3422_v15 = vld [vmem:[#allocation2 + $0x138] sm:$0xff] }
 0x31e   : > { %v5443_v61 = vpack.c.bf16 %v3422_v15, %v3422_v15 }
 0x31f   : > { %v3420_v1 = vld [vmem:[#allocation2 + $0x120] sm:$0xff] }
 0x320   : > { %v5441_v63 = vpack.c.bf16 %v3420_v1, %v3420_v1  ;;  %3134 = vst.msk [vmem:[#allocation4 + $0x68] sm:$0xf] %vm3107_vm13, %v5443_v61 }
 0x321   : > { %v3423_v8 = vld [vmem:[#allocation2 + $0x140] sm:$0xff] }
 0x322   : > { %3570 = vrot.lane.b32.xlu0 %v5441_v63, %s5662_s27  ;;  %v5444_v0 = vpack.c.bf16 %v3423_v8, %v3423_v8  ;;  %3132 = vst.msk [vmem:[#allocation4 + $0x60] sm:$0xf] %vm3107_vm13, %v5441_v63  ;;  %v3166_v20 = vld [vmem:[#allocation2 + $0x139] sm:$0xff]  ;;  %v3167_v24 = vld [vmem:[#allocation2 + $0x141] sm:$0xff] }
 0x323   : > { %v3421_v13 = vld [vmem:[#allocation2 + $0x128] sm:$0xff]  ;;  %v5413_v43 = vpack.c.bf16 %v3166_v20, %v3166_v20  ;;  %v5414_v57 = vpack.c.bf16 %v3167_v24, %v3167_v24 }
 0x324   : > { %v5442_v14 = vpack.c.bf16 %v3421_v13, %v3421_v13  ;;  %3135 = vst.msk [vmem:[#allocation4 + $0x6c] sm:$0xf] %vm3107_vm13, %v5444_v0  ;;  %v3555_v4 = vpop.permute.xlu0 %3554  ;;  %v3677_v5 = vld [vmem:[#allocation2 + $0x121] sm:$0xff]  ;;  %v3678_v12 = vld [vmem:[#allocation2 + $0x129] sm:$0xff] }
 0x325   : > { %3637 = vst.msk [vmem:[#allocation4 + $0x38] sm:$0xf] %vm3622_vm15, %v3555_v4  ;;  %v5473_v2 = vpack.c.bf16 %v3677_v5, %v3677_v5  ;;  %v5474_v16 = vpack.c.bf16 %v3678_v12, %v3678_v12  ;;  %v3428_v12 = vld [vmem:[#allocation2 + $0x180] sm:$0xff] }
 0x326   : > { %3572 = vrot.lane.b32.xlu1 %v5442_v14, %s5662_s27  ;;  %3823 = vrot.lane.b32.xlu0 %v5409_v11, %s5664_s29  ;;  %3133 = vst.msk [vmem:[#allocation4 + $0x64] sm:$0xf] %vm3107_vm13, %v5442_v14 }
 0x328   : > { %v3557_v7 = vpop.permute.xlu1 %3556  ;;  %v3808_v9 = vpop.permute.xlu0 %3807 }
 0x329   : > { %3638 = vst.msk [vmem:[#allocation4 + $0x3c] sm:$0xf] %vm3622_vm15, %v3557_v7 }
 0x32a   : > { %3892 = vst.msk [vmem:[#allocation4 + $0x30] sm:$0xf] %vm3879_vm0, %v3808_v9  ;;  %3825 = vrot.lane.b32.xlu1 %v5410_v42, %s5664_s29  ;;  %3827 = vrot.lane.b32.xlu0 %v5473_v2, %s5664_s29 }
 0x32c   : > { %v3810_v19 = vpop.permute.xlu1 %3809  ;;  %v3812_v47 = vpop.permute.xlu0 %3811 }
 0x32d   : > { %3893 = vst.msk [vmem:[#allocation4 + $0x34] sm:$0xf] %vm3879_vm0, %v3810_v19  ;;  %3894 = vst.msk [vmem:[#allocation4 + $0x38] sm:$0xf] %vm3879_vm0, %v3812_v47 }
 0x32e   : > { %3829 = vrot.lane.b32.xlu1 %v5474_v16, %s5664_s29  ;;  %3316 = vrot.lane.b32.xlu0 %v5473_v2, %s5660_s25 }
 0x330   : > { %v3814_v59 = vpop.permute.xlu1 %3813  ;;  %v3301_v55 = vpop.permute.xlu0 %3300 }
 0x331   : > { %3895 = vst.msk [vmem:[#allocation4 + $0x3c] sm:$0xf] %vm3879_vm0, %v3814_v59  ;;  %v3429_v59 = vld [vmem:[#allocation2 + $0x188] sm:$0xff] }
 0x332   : > { %3381 = vst.msk [vmem:[#allocation4 + $0x40] sm:$0xf] %vm3364_vm14, %v3301_v55  ;;  %3318 = vrot.lane.b32.xlu1 %v5474_v16, %s5660_s25  ;;  %3320 = vrot.lane.b32.xlu0 %v5413_v43, %s5660_s25 }
 0x334   : > { %v3303_v22 = vpop.permute.xlu1 %3302  ;;  %v3305_v58 = vpop.permute.xlu0 %3304  ;;  %v5640_v28 = vld [vmem:[#allocation4 + $0x30] sm:$0xff]  }
 0x335   : > { %3382 = vst.msk [vmem:[#allocation4 + $0x44] sm:$0xf] %vm3364_vm14, %v3303_v22  ;;  %3383 = vst.msk [vmem:[#allocation4 + $0x48] sm:$0xf] %vm3364_vm14, %v3305_v58  ;;  %5574 = vmatprep.mubr.msk.bf16.mxu1 %vm4047_vm1, %v5640_v28  ;;  %v5450_v22 = vpack.c.bf16 %v3429_v59, %v3429_v59  ;;  %v3685_v58 = vld [vmem:[#allocation2 + $0x181] sm:$0xff] }
 0x336   : > { %3322 = vrot.lane.b32.xlu1 %v5414_v57, %s5660_s25  ;;  %3574 = vrot.lane.b32.xlu0 %v5443_v61, %s5662_s27 }
 0x338   : > { %v3307_v29 = vpop.permute.xlu1 %3306  ;;  %v3559_v36 = vpop.permute.xlu0 %3558  ;;  %v5641_v17 = vld [vmem:[#allocation4 + $0x38] sm:$0xff]  }
 0x339   : > { %3384 = vst.msk [vmem:[#allocation4 + $0x4c] sm:$0xf] %vm3364_vm14, %v3307_v29  ;;  %5575 = vmatmul.mubr.msk.bf16.gmra.mxu1 %vm4047_vm1, %v5641_v17  ;;  %v5481_v29 = vpack.c.bf16 %v3685_v58, %v3685_v58 }
 0x33a   : > { %3639 = vst.msk [vmem:[#allocation4 + $0x40] sm:$0xf] %vm3622_vm15, %v3559_v36  ;;  %3576 = vrot.lane.b32.xlu1 %v5444_v0, %s5662_s27  ;;  %v3686_v36 = vld [vmem:[#allocation2 + $0x189] sm:$0xff] }
 0x33b   : > { %v5482_v17 = vpack.c.bf16 %v3686_v36, %v3686_v36 }
 0x33c   : > { %v3561_v21 = vpop.permute.xlu1 %3560 }
 0x33d   : > { %3640 = vst.msk [vmem:[#allocation4 + $0x44] sm:$0xf] %vm3622_vm15, %v3561_v21 }
 0x349   : > { %v5556_v37 = vpop.f32.mrf.mxu0 }
 0x34a   : > { %v2824_v38 = vadd.f32 %v6900_v18, %v5556_v37 }
 0x34b   : > { %v2815_v40 = vpop.f32.mrf.mxu0 }
 0x34c   : > { %v2860_v30 = vmax.f32 %v2824_v38, 0.0  ;;  %v2816_v32 = vadd.f32 %v6900_v18, %v2815_v40 }
 0x34d   : > { %v5557_v41 = vpop.f32.mrf.mxu0 }
 0x34e   : > { %2945 = vst.msk [vmem:[#allocation2 + $0x168] sm:$0xff] %vm2862_vm11, %v2860_v30  ;;  %v2858_v3 = vmax.f32 %v2816_v32, 0.0  ;;  %v2827_v6 = vadd.f32 %v6900_v18, %v5557_v41 }
 0x34f   : > { %v2818_v23 = vpop.f32.mrf.mxu0 }
 0x350   : > { %2943 = vst.msk [vmem:[#allocation2 + $0x150] sm:$0xff] %vm2862_vm11, %v2858_v3  ;;  %v2861_v26 = vmax.f32 %v2827_v6, 0.0  ;;  %v2819_v27 = vadd.f32 %v6900_v18, %v2818_v23 }
 0x352   : > { %2946 = vst.msk [vmem:[#allocation2 + $0x170] sm:$0xff] %vm2862_vm11, %v2861_v26  ;;  %v2859_v11 = vmax.f32 %v2819_v27, 0.0 }
 0x354   : > { %2944 = vst.msk [vmem:[#allocation2 + $0x158] sm:$0xff] %vm2862_vm11, %v2859_v11 }
 0x355   : > { %v3426_v48 = vld [vmem:[#allocation2 + $0x168] sm:$0xff] }
 0x356   : > { %v7028_v49 = vpack.c.bf16 %v3426_v48, %v3426_v48 }
 0x357   : > { %v3424_v33 = vld [vmem:[#allocation2 + $0x150] sm:$0xff] }
 0x358   : > { %v5445_v42 = vpack.c.bf16 %v3424_v33, %v3424_v33  ;;  %3138 = vst.msk [vmem:[#allocation4 + $0x78] sm:$0xf] %vm3107_vm13, %v7028_v49 }
 0x359   : > { %v3427_v10 = vld [vmem:[#allocation2 + $0x170] sm:$0xff] }
 0x35a   : > { %3578 = vrot.lane.b32.xlu0 %v5445_v42, %s5662_s27  ;;  %v7033_v31 = vpack.c.bf16 %v3427_v10, %v3427_v10  ;;  %3136 = vst.msk [vmem:[#allocation4 + $0x70] sm:$0xf] %vm3107_vm13, %v5445_v42  ;;  %v3170_v61 = vld [vmem:[#allocation2 + $0x169] sm:$0xff]  ;;  %v3171_v7 = vld [vmem:[#allocation2 + $0x171] sm:$0xff] }
 0x35b   : > { %v3425_v18 = vld [vmem:[#allocation2 + $0x158] sm:$0xff]  ;;  %v5417_v13 = vpack.c.bf16 %v3170_v61, %v3170_v61  ;;  %v5418_v16 = vpack.c.bf16 %v3171_v7, %v3171_v7 }
 0x35c   : > { %v5446_v39 = vpack.c.bf16 %v3425_v18, %v3425_v18  ;;  %3139 = vst.msk [vmem:[#allocation4 + $0x7c] sm:$0xf] %vm3107_vm13, %v7033_v31  ;;  %v3563_v62 = vpop.permute.xlu0 %3562  ;;  %v3681_v44 = vld [vmem:[#allocation2 + $0x151] sm:$0xff]  ;;  %v3682_v51 = vld [vmem:[#allocation2 + $0x159] sm:$0xff] }
 0x35d   : > { %3641 = vst.msk [vmem:[#allocation4 + $0x48] sm:$0xf] %vm3622_vm15, %v3563_v62  ;;  %v5477_v46 = vpack.c.bf16 %v3681_v44, %v3681_v44  ;;  %v5478_v53 = vpack.c.bf16 %v3682_v51, %v3682_v51 }
 0x35e   : > { %3580 = vrot.lane.b32.xlu1 %v5446_v39, %s5662_s27  ;;  %3831 = vrot.lane.b32.xlu0 %v5413_v43, %s5664_s29  ;;  %3137 = vst.msk [vmem:[#allocation4 + $0x74] sm:$0xf] %vm3107_vm13, %v5446_v39  ;;  %v5449_v43 = vpack.c.bf16 %v3428_v12, %v3428_v12 }
 0x360   : > { %v3565_v25 = vpop.permute.xlu1 %3564  ;;  %v3816_v50 = vpop.permute.xlu0 %3815 }
 0x361   : > { %3642 = vst.msk [vmem:[#allocation4 + $0x4c] sm:$0xf] %vm3622_vm15, %v3565_v25  ;;  %v5564_v54 = vpop.f32.mrf.mxu1 }
 0x362   : > { %3896 = vst.msk [vmem:[#allocation4 + $0x40] sm:$0xf] %vm3879_vm0, %v3816_v50  ;;  %3833 = vrot.lane.b32.xlu1 %v5414_v57, %s5664_s29  ;;  %3835 = vrot.lane.b32.xlu0 %v5477_v46, %s5664_s29  ;;  %v4139_v34 = vadd.f32 %v5564_v54, %v7045_v45 }
 0x363   : > { %v4130_v52 = vpop.f32.mrf.mxu1 }
 0x364   : > { %v4259_v56 = vmax.f32 %v4139_v34, 0.0  ;;  %v4131_v35 = vadd.f32 %v7045_v45, %v4130_v52  ;;  %v3818_v60 = vpop.permute.xlu1 %3817  ;;  %v3820_v15 = vpop.permute.xlu0 %3819 }
 0x365   : > { %3897 = vst.msk [vmem:[#allocation4 + $0x44] sm:$0xf] %vm3879_vm0, %v3818_v60  ;;  %3898 = vst.msk [vmem:[#allocation4 + $0x48] sm:$0xf] %vm3879_vm0, %v3820_v15  ;;  %v5565_v1 = vpop.f32.mrf.mxu1 }
 0x366   : > { %3837 = vrot.lane.b32.xlu1 %v5478_v53, %s5664_s29  ;;  %3324 = vrot.lane.b32.xlu0 %v5477_v46, %s5660_s25  ;;  %4292 = vst.msk [vmem:[%s7056_s6 + $0x10] sm:$0xff] %vm4289_vm2, %v4259_v56  ;;  %v4257_v63 = vmax.f32 %v4131_v35, 0.0  ;;  %v4142_v8 = vadd.f32 %v5565_v1, %v7045_v45 }
 0x367   : > { %v4133_v0 = vpop.f32.mrf.mxu1 }
 0x368   : > { %4290 = vst.msk [vmem:[%s7056_s6] sm:$0xff] %vm4289_vm2, %v4257_v63  ;;  %v4260_v14 = vmax.f32 %v4142_v8, 0.0  ;;  %v4134_v4 = vadd.f32 %v7045_v45, %v4133_v0  ;;  %v3822_v5 = vpop.permute.xlu1 %3821  ;;  %v3309_v2 = vpop.permute.xlu0 %3308 }
 0x369   : > { %3899 = vst.msk [vmem:[#allocation4 + $0x4c] sm:$0xf] %vm3879_vm0, %v3822_v5 }
 0x36a   : > { %3385 = vst.msk [vmem:[#allocation4 + $0x50] sm:$0xf] %vm3364_vm14, %v3309_v2  ;;  %3326 = vrot.lane.b32.xlu1 %v5478_v53, %s5660_s25  ;;  %3328 = vrot.lane.b32.xlu0 %v5417_v13, %s5660_s25  ;;  %v4258_v9 = vmax.f32 %v4134_v4, 0.0 }
 0x36b   : > { %4293 = vst.msk [vmem:[%s7056_s6 + $0x18] sm:$0xff] %vm4289_vm2, %v4260_v14 }
 0x36c   : > { %4291 = vst.msk [vmem:[%s7056_s6 + $0x8] sm:$0xff] %vm4289_vm2, %v4258_v9  ;;  %v3311_v19 = vpop.permute.xlu1 %3310  ;;  %v3313_v47 = vpop.permute.xlu0 %3312  ;;  %v5642_v20 = vld [vmem:[#allocation4 + $0x40] sm:$0xff]  }
 0x36d   : > { %3386 = vst.msk [vmem:[#allocation4 + $0x54] sm:$0xf] %vm3364_vm14, %v3311_v19  ;;  %3387 = vst.msk [vmem:[#allocation4 + $0x58] sm:$0xf] %vm3364_vm14, %v3313_v47  ;;  %5578 = vmatprep.mubr.msk.bf16.mxu1 %vm4047_vm1, %v5642_v20 }
 0x36e   : > { %3330 = vrot.lane.b32.xlu1 %v5418_v16, %s5660_s25  ;;  %3582 = vrot.lane.b32.xlu0 %v7028_v49, %s5662_s27 }
 0x370   : > { %v3315_v55 = vpop.permute.xlu1 %3314  ;;  %v3567_v24 = vpop.permute.xlu0 %3566  ;;  %v5643_v57 = vld [vmem:[#allocation4 + $0x48] sm:$0xff]  }
 0x371   : > { %3388 = vst.msk [vmem:[#allocation4 + $0x5c] sm:$0xf] %vm3364_vm14, %v3315_v55  ;;  %5579 = vmatmul.mubr.msk.bf16.gmra.mxu1 %vm4047_vm1, %v5643_v57 }
 0x372   : > { %3643 = vst.msk [vmem:[#allocation4 + $0x50] sm:$0xf] %vm3622_vm15, %v3567_v24  ;;  %3584 = vrot.lane.b32.xlu1 %v7033_v31, %s5662_s27  ;;  %3586 = vrot.lane.b32.xlu0 %v5449_v43, %s5662_s27 }
 0x374   : > { %v3569_v28 = vpop.permute.xlu1 %3568 }
 0x375   : > { %3644 = vst.msk [vmem:[#allocation4 + $0x54] sm:$0xf] %vm3622_vm15, %v3569_v28 }
 0x376   : > { %3588 = vrot.lane.b32.xlu1 %v5450_v22, %s5662_s27  ;;  %3839 = vrot.lane.b32.xlu0 %v5417_v13, %s5664_s29 }
 0x37a   : > { %3841 = vrot.lane.b32.xlu1 %v5418_v16, %s5664_s29  ;;  %3843 = vrot.lane.b32.xlu0 %v5481_v29, %s5664_s29 }
 0x37e   : > { %3845 = vrot.lane.b32.xlu1 %v5482_v17, %s5664_s29 }
 0x389   : > { %v5568_v21 = vpop.f32.mrf.mxu1 }
 0x38a   : > { %v4155_v37 = vadd.f32 %v5568_v21, %v7045_v45 }
 0x38b   : > { %v4146_v38 = vpop.f32.mrf.mxu1 }
 0x38c   : > { %v4263_v40 = vmax.f32 %v4155_v37, 0.0  ;;  %v4147_v30 = vadd.f32 %v7045_v45, %v4146_v38 }
 0x38d   : > { %v5569_v32 = vpop.f32.mrf.mxu1 }
 0x38e   : > { %4296 = vst.msk [vmem:[%s7056_s6 + $0x30] sm:$0xff] %vm4289_vm2, %v4263_v40  ;;  %v4261_v41 = vmax.f32 %v4147_v30, 0.0  ;;  %v4158_v3 = vadd.f32 %v5569_v32, %v7045_v45 }
 0x38f   : > { %v4149_v6 = vpop.f32.mrf.mxu1 }
 0x390   : > { %4294 = vst.msk [vmem:[%s7056_s6 + $0x20] sm:$0xff] %vm4289_vm2, %v4261_v41  ;;  %v4264_v23 = vmax.f32 %v4158_v3, 0.0  ;;  %v4150_v26 = vadd.f32 %v7045_v45, %v4149_v6 }
 0x392   : > { %4297 = vst.msk [vmem:[%s7056_s6 + $0x38] sm:$0xff] %vm4289_vm2, %v4264_v23  ;;  %v4262_v27 = vmax.f32 %v4150_v26, 0.0 }
 0x394   : > { %v3571_v11 = vpop.permute.xlu0 %3570  ;;  %4295 = vst.msk [vmem:[%s7056_s6 + $0x28] sm:$0xff] %vm4289_vm2, %v4262_v27 }
 0x395   : > { %3645 = vst.msk [vmem:[#allocation4 + $0x58] sm:$0xf] %vm3622_vm15, %v3571_v11 }
 0x398   : > { %v3573_v48 = vpop.permute.xlu1 %3572  ;;  %v3824_v49 = vpop.permute.xlu0 %3823 }
 0x399   : > { %3646 = vst.msk [vmem:[#allocation4 + $0x5c] sm:$0xf] %vm3622_vm15, %v3573_v48 }
 0x39a   : > { %3900 = vst.msk [vmem:[#allocation4 + $0x50] sm:$0xf] %vm3879_vm0, %v3824_v49 }
 0x39c   : > { %v3826_v33 = vpop.permute.xlu1 %3825  ;;  %v3828_v42 = vpop.permute.xlu0 %3827 }
 0x39d   : > { %3901 = vst.msk [vmem:[#allocation4 + $0x54] sm:$0xf] %vm3879_vm0, %v3826_v33  ;;  %3902 = vst.msk [vmem:[#allocation4 + $0x58] sm:$0xf] %vm3879_vm0, %v3828_v42 }
 0x3a0   : > { %v3830_v10 = vpop.permute.xlu1 %3829  ;;  %v3317_v31 = vpop.permute.xlu0 %3316 }
 0x3a1   : > { %3903 = vst.msk [vmem:[#allocation4 + $0x5c] sm:$0xf] %vm3879_vm0, %v3830_v10 }
 0x3a2   : > { %3389 = vst.msk [vmem:[#allocation4 + $0x60] sm:$0xf] %vm3364_vm14, %v3317_v31 }
 0x3a4   : > { %v3319_v18 = vpop.permute.xlu1 %3318  ;;  %v3321_v39 = vpop.permute.xlu0 %3320  ;;  %v5644_v62 = vld [vmem:[#allocation4 + $0x50] sm:$0xff]  }
 0x3a5   : > { %3390 = vst.msk [vmem:[#allocation4 + $0x64] sm:$0xf] %vm3364_vm14, %v3319_v18  ;;  %3391 = vst.msk [vmem:[#allocation4 + $0x68] sm:$0xf] %vm3364_vm14, %v3321_v39  ;;  %5582 = vmatprep.mubr.msk.bf16.mxu1 %vm4047_vm1, %v5644_v62 }
 0x3a8   : > { %v3323_v44 = vpop.permute.xlu1 %3322  ;;  %v3575_v46 = vpop.permute.xlu0 %3574  ;;  %v5645_v25 = vld [vmem:[#allocation4 + $0x58] sm:$0xff]  }
 0x3a9   : > { %3392 = vst.msk [vmem:[#allocation4 + $0x6c] sm:$0xf] %vm3364_vm14, %v3323_v44  ;;  %5583 = vmatmul.mubr.msk.bf16.gmra.mxu1 %vm4047_vm1, %v5645_v25 }
 0x3aa   : > { %3647 = vst.msk [vmem:[#allocation4 + $0x60] sm:$0xf] %vm3622_vm15, %v3575_v46 }
 0x3ac   : > { %v3577_v50 = vpop.permute.xlu1 %3576 }
 0x3ad   : > { %3648 = vst.msk [vmem:[#allocation4 + $0x64] sm:$0xf] %vm3622_vm15, %v3577_v50 }
 0x3c1   : > { %v5572_v51 = vpop.f32.mrf.mxu1 }
 0x3c2   : > { %v4171_v54 = vadd.f32 %v5572_v51, %v7045_v45 }
 0x3c3   : > { %v4162_v34 = vpop.f32.mrf.mxu1 }
 0x3c4   : > { %v4267_v52 = vmax.f32 %v4171_v54, 0.0  ;;  %v4163_v53 = vadd.f32 %v7045_v45, %v4162_v34 }
 0x3c5   : > { %v5573_v56 = vpop.f32.mrf.mxu1 }
 0x3c6   : > { %4300 = vst.msk [vmem:[%s7056_s6 + $0x50] sm:$0xff] %vm4289_vm2, %v4267_v52  ;;  %v4265_v35 = vmax.f32 %v4163_v53, 0.0  ;;  %v4174_v60 = vadd.f32 %v5573_v56, %v7045_v45 }
 0x3c7   : > { %v4165_v15 = vpop.f32.mrf.mxu1 }
 0x3c8   : > { %4298 = vst.msk [vmem:[%s7056_s6 + $0x40] sm:$0xff] %vm4289_vm2, %v4265_v35  ;;  %v4268_v61 = vmax.f32 %v4174_v60, 0.0  ;;  %v4166_v1 = vadd.f32 %v7045_v45, %v4165_v15 }
 0x3ca   : > { %4301 = vst.msk [vmem:[%s7056_s6 + $0x58] sm:$0xff] %vm4289_vm2, %v4268_v61  ;;  %v4266_v63 = vmax.f32 %v4166_v1, 0.0 }
 0x3cc   : > { %v3579_v8 = vpop.permute.xlu0 %3578  ;;  %4299 = vst.msk [vmem:[%s7056_s6 + $0x48] sm:$0xff] %vm4289_vm2, %v4266_v63 }
 0x3cd   : > { %3649 = vst.msk [vmem:[#allocation4 + $0x68] sm:$0xf] %vm3622_vm15, %v3579_v8 }
 0x3d0   : > { %v3581_v0 = vpop.permute.xlu1 %3580  ;;  %v3832_v13 = vpop.permute.xlu0 %3831 }
 0x3d1   : > { %3650 = vst.msk [vmem:[#allocation4 + $0x6c] sm:$0xf] %vm3622_vm15, %v3581_v0 }
 0x3d2   : > { %3904 = vst.msk [vmem:[#allocation4 + $0x60] sm:$0xf] %vm3879_vm0, %v3832_v13 }
 0x3d4   : > { %v3834_v14 = vpop.permute.xlu1 %3833  ;;  %v3836_v4 = vpop.permute.xlu0 %3835 }
 0x3d5   : > { %3905 = vst.msk [vmem:[#allocation4 + $0x64] sm:$0xf] %vm3879_vm0, %v3834_v14  ;;  %3906 = vst.msk [vmem:[#allocation4 + $0x68] sm:$0xf] %vm3879_vm0, %v3836_v4 }
 0x3d8   : > { %v3838_v5 = vpop.permute.xlu1 %3837  ;;  %v3325_v2 = vpop.permute.xlu0 %3324 }
 0x3d9   : > { %3907 = vst.msk [vmem:[#allocation4 + $0x6c] sm:$0xf] %vm3879_vm0, %v3838_v5 }
 0x3da   : > { %3393 = vst.msk [vmem:[#allocation4 + $0x70] sm:$0xf] %vm3364_vm14, %v3325_v2 }
 0x3dc   : > { %v3327_v7 = vpop.permute.xlu1 %3326  ;;  %v3329_v9 = vpop.permute.xlu0 %3328  ;;  %v5646_v12 = vld [vmem:[#allocation4 + $0x60] sm:$0xff]  }
 0x3dd   : > { %3394 = vst.msk [vmem:[#allocation4 + $0x74] sm:$0xf] %vm3364_vm14, %v3327_v7  ;;  %3395 = vst.msk [vmem:[#allocation4 + $0x78] sm:$0xf] %vm3364_vm14, %v3329_v9  ;;  %5586 = vmatprep.mubr.msk.bf16.mxu1 %vm4047_vm1, %v5646_v12 }
 0x3e0   : > { %v3331_v16 = vpop.permute.xlu1 %3330  ;;  %v3583_v19 = vpop.permute.xlu0 %3582  ;;  %v5647_v47 = vld [vmem:[#allocation4 + $0x68] sm:$0xff]  }
 0x3e1   : > { %3396 = vst.msk [vmem:[#allocation4 + $0x7c] sm:$0xf] %vm3364_vm14, %v3331_v16  ;;  %5587 = vmatmul.mubr.msk.bf16.gmra.mxu1 %vm4047_vm1, %v5647_v47 }
 0x3e2   : > { %3651 = vst.msk [vmem:[#allocation4 + $0x70] sm:$0xf] %vm3622_vm15, %v3583_v19 }
 0x3e4   : > { %v3585_v20 = vpop.permute.xlu1 %3584  ;;  %v3587_v43 = vpop.permute.xlu0 %3586 }
 0x3e5   : > { %3652 = vst.msk [vmem:[#allocation4 + $0x74] sm:$0xf] %vm3622_vm15, %v3585_v20  ;;  %3653 = vst.msk [vmem:[#allocation4 + $0x78] sm:$0xf] %vm3622_vm15, %v3587_v43 }
 0x3e8   : > { %v3589_v59 = vpop.permute.xlu1 %3588  ;;  %v3840_v55 = vpop.permute.xlu0 %3839 }
 0x3e9   : > { %3654 = vst.msk [vmem:[#allocation4 + $0x7c] sm:$0xf] %vm3622_vm15, %v3589_v59 }
 0x3ea   : > { %3908 = vst.msk [vmem:[#allocation4 + $0x70] sm:$0xf] %vm3879_vm0, %v3840_v55 }
 0x3ec   : > { %v3842_v24 = vpop.permute.xlu1 %3841  ;;  %v3844_v57 = vpop.permute.xlu0 %3843 }
 0x3ed   : > { %3909 = vst.msk [vmem:[#allocation4 + $0x74] sm:$0xf] %vm3879_vm0, %v3842_v24  ;;  %3910 = vst.msk [vmem:[#allocation4 + $0x78] sm:$0xf] %vm3879_vm0, %v3844_v57 }
 0x3f0   : > { %v3846_v22 = vpop.permute.xlu1 %3845 }
 0x3f1   : > { %3911 = vst.msk [vmem:[#allocation4 + $0x7c] sm:$0xf] %vm3879_vm0, %v3846_v22 }
 0x3f4   : > { %v5648_v58 = vld [vmem:[#allocation4 + $0x70] sm:$0xff]  }
 0x3f5   : > { %5590 = vmatprep.mubr.msk.bf16.mxu1 %vm4047_vm1, %v5648_v58 }
 0x3f8   : > { %v5649_v28 = vld [vmem:[#allocation4 + $0x78] sm:$0xff]  }
 0x3f9   : > { %5591 = vmatmul.mubr.msk.bf16.gmra.mxu1 %vm4047_vm1, %v5649_v28  ;;  %v5576_v29 = vpop.f32.mrf.mxu1 }
 0x3fa   : > { %v4187_v36 = vadd.f32 %v5576_v29, %v7045_v45 }
 0x3fb   : > { %v4178_v17 = vpop.f32.mrf.mxu1 }
 0x3fc   : > { %v4271_v21 = vmax.f32 %v4187_v36, 0.0  ;;  %v4179_v37 = vadd.f32 %v7045_v45, %v4178_v17 }
 0x3fd   : > { %v5577_v38 = vpop.f32.mrf.mxu1 }
 0x3fe   : > { %4304 = vst.msk [vmem:[%s7056_s6 + $0x70] sm:$0xff] %vm4289_vm2, %v4271_v21  ;;  %v4269_v40 = vmax.f32 %v4179_v37, 0.0  ;;  %v4190_v30 = vadd.f32 %v5577_v38, %v7045_v45 }
 0x3ff   : > { %v4181_v32 = vpop.f32.mrf.mxu1 }
 0x400   : > { %4302 = vst.msk [vmem:[%s7056_s6 + $0x60] sm:$0xff] %vm4289_vm2, %v4269_v40  ;;  %v4272_v41 = vmax.f32 %v4190_v30, 0.0  ;;  %v4182_v3 = vadd.f32 %v7045_v45, %v4181_v32 }
 0x402   : > { %4305 = vst.msk [vmem:[%s7056_s6 + $0x78] sm:$0xff] %vm4289_vm2, %v4272_v41  ;;  %v4270_v6 = vmax.f32 %v4182_v3, 0.0 }
 0x404   : > { %4303 = vst.msk [vmem:[%s7056_s6 + $0x68] sm:$0xff] %vm4289_vm2, %v4270_v6 }
 0x431   : > { %v5580_v23 = vpop.f32.mrf.mxu1 }
 0x432   : > { %v4203_v26 = vadd.f32 %v5580_v23, %v7045_v45 }
 0x433   : > { %v4194_v27 = vpop.f32.mrf.mxu1 }
 0x434   : > { %v4275_v11 = vmax.f32 %v4203_v26, 0.0  ;;  %v4195_v48 = vadd.f32 %v7045_v45, %v4194_v27 }
 0x435   : > { %v5581_v49 = vpop.f32.mrf.mxu1 }
 0x436   : > { %4308 = vst.msk [vmem:[%s7056_s6 + $0x90] sm:$0xff] %vm4289_vm2, %v4275_v11  ;;  %v4273_v33 = vmax.f32 %v4195_v48, 0.0  ;;  %v4206_v42 = vadd.f32 %v5581_v49, %v7045_v45 }
 0x437   : > { %v4197_v10 = vpop.f32.mrf.mxu1 }
 0x438   : > { %4306 = vst.msk [vmem:[%s7056_s6 + $0x80] sm:$0xff] %vm4289_vm2, %v4273_v33  ;;  %v4276_v31 = vmax.f32 %v4206_v42, 0.0  ;;  %v4198_v18 = vadd.f32 %v7045_v45, %v4197_v10 }
 0x43a   : > { %4309 = vst.msk [vmem:[%s7056_s6 + $0x98] sm:$0xff] %vm4289_vm2, %v4276_v31  ;;  %v4274_v39 = vmax.f32 %v4198_v18, 0.0 }
 0x43c   : > { %4307 = vst.msk [vmem:[%s7056_s6 + $0x88] sm:$0xff] %vm4289_vm2, %v4274_v39 }
 0x469   : > { %v5584_v62 = vpop.f32.mrf.mxu1 }
 0x46a   : > { %v4219_v44 = vadd.f32 %v5584_v62, %v7045_v45 }
 0x46b   : > { %v4210_v46 = vpop.f32.mrf.mxu1 }
 0x46c   : > { %v4279_v25 = vmax.f32 %v4219_v44, 0.0  ;;  %v4211_v50 = vadd.f32 %v7045_v45, %v4210_v46 }
 0x46d   : > { %v5585_v51 = vpop.f32.mrf.mxu1 }
 0x46e   : > { %4312 = vst.msk [vmem:[%s7056_s6 + $0xb0] sm:$0xff] %vm4289_vm2, %v4279_v25  ;;  %v4277_v54 = vmax.f32 %v4211_v50, 0.0  ;;  %v4222_v34 = vadd.f32 %v5585_v51, %v7045_v45 }
 0x46f   : > { %v4213_v52 = vpop.f32.mrf.mxu1 }
 0x470   : > { %4310 = vst.msk [vmem:[%s7056_s6 + $0xa0] sm:$0xff] %vm4289_vm2, %v4277_v54  ;;  %v4280_v53 = vmax.f32 %v4222_v34, 0.0  ;;  %v4214_v56 = vadd.f32 %v7045_v45, %v4213_v52 }
 0x472   : > { %4313 = vst.msk [vmem:[%s7056_s6 + $0xb8] sm:$0xff] %vm4289_vm2, %v4280_v53  ;;  %v4278_v35 = vmax.f32 %v4214_v56, 0.0 }
 0x474   : > { %4311 = vst.msk [vmem:[%s7056_s6 + $0xa8] sm:$0xff] %vm4289_vm2, %v4278_v35 }
 0x4a1   : > { %v5588_v60 = vpop.f32.mrf.mxu1 }
 0x4a2   : > { %v4235_v15 = vadd.f32 %v5588_v60, %v7045_v45 }
 0x4a3   : > { %v4226_v61 = vpop.f32.mrf.mxu1 }
 0x4a4   : > { %v4283_v1 = vmax.f32 %v4235_v15, 0.0  ;;  %v4227_v63 = vadd.f32 %v7045_v45, %v4226_v61 }
 0x4a5   : > { %v5589_v8 = vpop.f32.mrf.mxu1 }
 0x4a6   : > { %4316 = vst.msk [vmem:[%s7056_s6 + $0xd0] sm:$0xff] %vm4289_vm2, %v4283_v1  ;;  %v4281_v0 = vmax.f32 %v4227_v63, 0.0  ;;  %v4238_v13 = vadd.f32 %v5589_v8, %v7045_v45 }
 0x4a7   : > { %v4229_v14 = vpop.f32.mrf.mxu1 }
 0x4a8   : > { %4314 = vst.msk [vmem:[%s7056_s6 + $0xc0] sm:$0xff] %vm4289_vm2, %v4281_v0  ;;  %v4284_v4 = vmax.f32 %v4238_v13, 0.0  ;;  %v4230_v5 = vadd.f32 %v7045_v45, %v4229_v14 }
 0x4aa   : > { %4317 = vst.msk [vmem:[%s7056_s6 + $0xd8] sm:$0xff] %vm4289_vm2, %v4284_v4  ;;  %v4282_v2 = vmax.f32 %v4230_v5, 0.0 }
 0x4ac   : > { %4315 = vst.msk [vmem:[%s7056_s6 + $0xc8] sm:$0xff] %vm4289_vm2, %v4282_v2 }
 0x4b9   : > { %v5592_v7 = vpop.f32.mrf.mxu1 }
 0x4ba   : > { %v4251_v9 = vadd.f32 %v5592_v7, %v7045_v45 }
 0x4bb   : > { %v4242_v12 = vpop.f32.mrf.mxu1 }
 0x4bc   : > { %v4287_v16 = vmax.f32 %v4251_v9, 0.0  ;;  %v4243_v19 = vadd.f32 %v7045_v45, %v4242_v12 }
 0x4bd   : > { %v5593_v47 = vpop.f32.mrf.mxu1 }
 0x4be   : > { %4320 = vst.msk [vmem:[%s7056_s6 + $0xf0] sm:$0xff] %vm4289_vm2, %v4287_v16  ;;  %v4285_v20 = vmax.f32 %v4243_v19, 0.0  ;;  %v4254_v43 = vadd.f32 %v5593_v47, %v7045_v45 }
 0x4bf   : > { %v4245_v59 = vpop.f32.mrf.mxu1 }
 0x4c0   : > { %4318 = vst.msk [vmem:[%s7056_s6 + $0xe0] sm:$0xff] %vm4289_vm2, %v4285_v20  ;;  %v4288_v55 = vmax.f32 %v4254_v43, 0.0  ;;  %v4246_v24 = vadd.f32 %v7045_v45, %v4245_v59 }
 0x4c2   : > { %4321 = vst.msk [vmem:[%s7056_s6 + $0xf8] sm:$0xff] %vm4289_vm2, %v4288_v55  ;;  %v4286_v57 = vmax.f32 %v4246_v24, 0.0 }
 0x4c4   : > { %4319 = vst.msk [vmem:[%s7056_s6 + $0xe8] sm:$0xff] %vm4289_vm2, %v4286_v57 }
 0x4c5 PF: > { %s15_s18 = sadd.s32 1, %s5657_s18  }
 0x4c6   : > { %p12_p4 = scmp.ge.s32.totalorder %s15_s18, 4  }
 0x4c8   :  { %14 = sbr.rel (!%p12_p4) target bundleno = 1 (0x1), region = 73 }

</bundles_post_ra>
